<compile_context>
chip_gen: v7x
topology: tpu7x:2x2x1
jax: 0.10.0
libtpu: 0.0.40
codegen_flags: <defaults>
</compile_context>

<pallas_src>
import functools
import math

import jax
import jax.numpy as jnp
from jax import lax
from jax.experimental import pallas as pl
from jax.experimental.pallas import tpu as pltpu


# ----------------------------- fused Pallas kernel ------------------------------


def _make_decoder_layer_kernel(E, H):
    Dh = E // H

    def layer_norm(x, g, b):
        mu = jnp.mean(x, axis=-1, keepdims=True)
        xc = x - mu
        var = jnp.mean(xc * xc, axis=-1, keepdims=True)
        return xc * lax.rsqrt(var + 1e-5) * g + b

    def mha(xq_b, xkv_b, win, bin_, wvo_ref, bvo_ref, bout):
        """Multi-head attention for one batch element.

        xq_b  : (Mq, E) bf16 queries-source
        xkv_b : (Mk, E) bf16 keys/values-source
        win   : (E, 2E) bf16  = [Wq^T * 1/sqrt(Dh) | Wk^T]   (scale pre-folded)
        bin_  : (1, 2E) f32   = [bq * 1/sqrt(Dh) | bk]
        wvo_ref[h] : (E, E) bf16 = Wv_h^T @ Wout_h^T (V-proj and out-proj fused per head)
        bvo_ref[h] : (1, E) f32  = bv_h @ Wout_h^T
        bout  : (1, E) f32 out-projection bias (added once)

        All matmul contractions are over E or the key length; the only Dh-wide
        contraction left is the inherent q.k score dot (Dh is >=64 in production configs).
        """
        Mq = xq_b.shape[0]
        q = jnp.dot(xq_b, win[:, :E], preferred_element_type=jnp.float32) + bin_[:, :E]
        k = jnp.dot(xkv_b, win[:, E:], preferred_element_type=jnp.float32) + bin_[:, E:]
        q_b = q.astype(jnp.bfloat16)
        k_b = k.astype(jnp.bfloat16)

        out = jnp.zeros((Mq, E), jnp.float32)
        # Static head loop (H=4). For large H switch to lax.fori_loop(..., unroll=True).
        for h in range(H):
            lo, hi = h * Dh, (h + 1) * Dh
            s = lax.dot_general(q_b[:, lo:hi], k_b[:, lo:hi],
                                (((1,), (1,)), ((), ())),
                                preferred_element_type=jnp.float32)   # (Mq, Mk) f32
            s = s - jnp.max(s, axis=-1, keepdims=True)
            p = jnp.exp(s)
            p = p * pl.reciprocal(jnp.sum(p, axis=-1, keepdims=True), approx=True)
            # fused V-projection + out-projection for this head (K = E, then K = Mk)
            vo = jnp.dot(xkv_b, wvo_ref[h], preferred_element_type=jnp.float32) + bvo_ref[h]
            out = out + jnp.dot(p.astype(jnp.bfloat16), vo.astype(jnp.bfloat16),
                                preferred_element_type=jnp.float32)
        return out + bout

    def kernel(tgt_ref, mem_ref, a_ref,
               sa_win, sa_bin, sa_wvo, sa_bvo, sa_bout,
               at_win, at_bin, at_wvo, at_bvo, at_bout,
               ma_win, ma_bin, ma_wvo, ma_bvo, ma_bout,
               w1_ref, b1_ref, w2_ref, b2_ref,
               g1, be1, gt, bet, g2, be2, g3, be3,
               o_ref):
        x = tgt_ref[0].astype(jnp.float32)          # (L, E) residual stream, f32
        mem_b = mem_ref[0].astype(jnp.bfloat16)     # (S, E) keys/values source
        a_b = a_ref[0].astype(jnp.bfloat16)         # (1, E) A_tgt query for this batch

        # 1) self-attention -> residual -> norm1
        x_b = x.astype(jnp.bfloat16)
        t2 = mha(x_b, x_b, sa_win[...], sa_bin[...], sa_wvo, sa_bvo, sa_bout[...])
        x = layer_norm(x + t2, g1[...], be1[...])

        # 2) A_tgt-query cross-attention over memory -> residual -> norm_tgt.
        #    The L query rows are identical within a batch: compute once (Mq = 1)
        #    and let the residual add broadcast the (1, E) result over L.
        t2a = mha(a_b, mem_b, at_win[...], at_bin[...], at_wvo, at_bvo, at_bout[...])
        x = layer_norm(x + t2a, gt[...], bet[...])

        # 3) cross-attention over memory -> residual -> norm2
        t2 = mha(x.astype(jnp.bfloat16), mem_b, ma_win[...], ma_bin[...],
                 ma_wvo, ma_bvo, ma_bout[...])
        x = layer_norm(x + t2, g2[...], be2[...])

        # 4) FFN: linear1 -> relu -> linear2 (dropouts are identity) -> residual -> norm3
        hid = jnp.maximum(
            jnp.dot(x.astype(jnp.bfloat16), w1_ref[...],
                    preferred_element_type=jnp.float32) + b1_ref[...], 0.0)
        t2 = jnp.dot(hid.astype(jnp.bfloat16), w2_ref[...],
                     preferred_element_type=jnp.float32) + b2_ref[...]
        x = layer_norm(x + t2, g3[...], be3[...])

        o_ref[0] = x.astype(o_ref.dtype)

    return kernel


# --------------------------- forward wrapper ---------------------------


@functools.partial(jax.jit, static_argnames=("nhead", "target_max_len"))
def transformer_decoder_layer(tgt, memory, A_tgt, packed, *, nhead, target_max_len):
    L, N, E = tgt.shape
    S = memory.shape[0]
    assert L == target_max_len - 1, "module expands A_tgt to length target_max_len - 1"

    # Batch-contiguous layout: one grid step per batch element (no cross-batch masks).
    tgt_b = jnp.transpose(tgt, (1, 0, 2))       # (N, L, E)
    mem_b = jnp.transpose(memory, (1, 0, 2))    # (N, S, E)
    a_b = A_tgt.reshape(N, 1, E)                # (N, 1, E)

    weights = (
        packed["sa_win"], packed["sa_bin"], packed["sa_wvo"], packed["sa_bvo"], packed["sa_bout"],
        packed["at_win"], packed["at_bin"], packed["at_wvo"], packed["at_bvo"], packed["at_bout"],
        packed["ma_win"], packed["ma_bin"], packed["ma_wvo"], packed["ma_bvo"], packed["ma_bout"],
        packed["w1"], packed["b1"], packed["w2"], packed["b2"],
        packed["n1_g"], packed["n1_b"], packed["nt_g"], packed["nt_b"],
        packed["n2_g"], packed["n2_b"], packed["n3_g"], packed["n3_b"],
    )

    def resident(a):
        # whole array in VMEM; same block index every grid step -> stays resident
        return pl.BlockSpec(a.shape, lambda n, _z=(0,) * a.ndim: _z)

    in_specs = [
        pl.BlockSpec((1, L, E), lambda n: (n, 0, 0)),
        pl.BlockSpec((1, S, E), lambda n: (n, 0, 0)),
        pl.BlockSpec((1, 1, E), lambda n: (n, 0, 0)),
    ] + [resident(w) for w in weights]

    out = pl.pallas_call(
        _make_decoder_layer_kernel(E, nhead),
        out_shape=jax.ShapeDtypeStruct((N, L, E), tgt.dtype),
        grid=(N,),
        in_specs=in_specs,
        out_specs=pl.BlockSpec((1, L, E), lambda n: (n, 0, 0)),
        compiler_params=pltpu.CompilerParams(
            dimension_semantics=("parallel",)),   # shards batch across TCs on v7x
    )(tgt_b, mem_b, a_b, *weights)
    return jnp.transpose(out, (1, 0, 2))          # back to (L, N, E)


# ------------------------------ parameters ------------------------------


def init_params(key, d_model, nhead, dim_feedforward):
    """PyTorch-layout parameters (nn.MultiheadAttention / nn.Linear / nn.LayerNorm)."""
    ks = jax.random.split(key, 24)

    def mha_params(k1, k2, k3, k4):
        return {
            "in_w": 0.05 * jax.random.normal(k1, (3 * d_model, d_model), jnp.float32),
            "in_b": 0.05 * jax.random.normal(k2, (3 * d_model,), jnp.float32),
            "out_w": 0.05 * jax.random.normal(k3, (d_model, d_model), jnp.float32),
            "out_b": 0.05 * jax.random.normal(k4, (d_model,), jnp.float32),
        }

    params = {
        "self_attn": mha_params(*ks[0:4]),
        "attn_tgt": mha_params(*ks[4:8]),
        "multi_head_attn": mha_params(*ks[8:12]),
        "linear1_w": 0.05 * jax.random.normal(ks[12], (dim_feedforward, d_model), jnp.float32),
        "linear1_b": 0.05 * jax.random.normal(ks[13], (dim_feedforward,), jnp.float32),
        "linear2_w": 0.05 * jax.random.normal(ks[14], (d_model, dim_feedforward), jnp.float32),
        "linear2_b": 0.05 * jax.random.normal(ks[15], (d_model,), jnp.float32),
    }
    for i, name in enumerate(["norm1", "norm_tgt", "norm2", "norm3"]):
        params[f"{name}_g"] = 1.0 + 0.05 * jax.random.normal(ks[16 + 2 * i], (d_model,), jnp.float32)
        params[f"{name}_b"] = 0.05 * jax.random.normal(ks[17 + 2 * i], (d_model,), jnp.float32)
    return params


def pack_params(params, nhead):
    """One-time conversion to the fused-kernel layout.

    * weights transposed once and cast to bf16
    * 1/sqrt(Dh) folded into Wq / bq
    * per-head V-projection fused with the out-projection: Wvo_h = Wv_h^T @ Wout_h^T
      (eliminates every K=Dh contraction except the inherent q.k score dot)
    """
    E = params["norm1_g"].shape[0]
    F = params["linear1_b"].shape[0]
    H = nhead
    Dh = E // H
    scale = 1.0 / math.sqrt(Dh)

    def mha_pack(p, tag):
        in_w, in_b = p["in_w"], p["in_b"]
        wq = in_w[:E].T * scale            # (E, E), scale folded
        wk = in_w[E:2 * E].T               # (E, E)
        wv = in_w[2 * E:].T                # (E, E)
        bq = in_b[:E] * scale
        bk = in_b[E:2 * E]
        bv = in_b[2 * E:]
        wout = p["out_w"].T                # (E, E)
        wvo = jnp.stack([wv[:, h * Dh:(h + 1) * Dh] @ wout[h * Dh:(h + 1) * Dh, :]
                         for h in range(H)])                              # (H, E, E) f32
        bvo = jnp.stack([(bv[h * Dh:(h + 1) * Dh] @ wout[h * Dh:(h + 1) * Dh, :]).reshape(1, E)
                         for h in range(H)])                              # (H, 1, E) f32
        return {
            f"{tag}_win": jnp.concatenate([wq, wk], axis=1).astype(jnp.bfloat16),  # (E, 2E)
            f"{tag}_bin": jnp.concatenate([bq, bk]).reshape(1, 2 * E).astype(jnp.float32),
            f"{tag}_wvo": wvo.astype(jnp.bfloat16),
            f"{tag}_bvo": bvo.astype(jnp.float32),
            f"{tag}_bout": p["out_b"].reshape(1, E).astype(jnp.float32),
        }

    packed = {}
    packed.update(mha_pack(params["self_attn"], "sa"))
    packed.update(mha_pack(params["attn_tgt"], "at"))
    packed.update(mha_pack(params["multi_head_attn"], "ma"))
    packed.update({
        "w1": params["linear1_w"].T.astype(jnp.bfloat16),          # (E, F)
        "b1": params["linear1_b"].reshape(1, F).astype(jnp.float32),
        "w2": params["linear2_w"].T.astype(jnp.bfloat16),          # (F, E)
        "b2": params["linear2_b"].reshape(1, E).astype(jnp.float32),
        "n1_g": params["norm1_g"].reshape(1, E), "n1_b": params["norm1_b"].reshape(1, E),
        "nt_g": params["norm_tgt_g"].reshape(1, E), "nt_b": params["norm_tgt_b"].reshape(1, E),
        "n2_g": params["norm2_g"].reshape(1, E), "n2_b": params["norm2_b"].reshape(1, E),
        "n3_g": params["norm3_g"].reshape(1, E), "n3_b": params["norm3_b"].reshape(1, E),
    })
    return packed


# --------------------------- pure-JAX reference ---------------------------


def reference_forward(tgt, memory, A_tgt, params, *, nhead, target_max_len):
    L, N, E = tgt.shape
    H = nhead
    Dh = E // H
    hp = "highest"

    def mha_ref(q_in, k_in, v_in, p):
        Lq, Lk = q_in.shape[0], k_in.shape[0]
        wq, wk, wv = p["in_w"][:E], p["in_w"][E:2 * E], p["in_w"][2 * E:]
        bq, bk, bv = p["in_b"][:E], p["in_b"][E:2 * E], p["in_b"][2 * E:]
        q = jnp.einsum("lne,oe->lno", q_in, wq, precision=hp) + bq
        k = jnp.einsum("lne,oe->lno", k_in, wk, precision=hp) + bk
        v = jnp.einsum("lne,oe->lno", v_in, wv, precision=hp) + bv
        q = q.reshape(Lq, N, H, Dh).transpose(1, 2, 0, 3)
        k = k.reshape(Lk, N, H, Dh).transpose(1, 2, 0, 3)
        v = v.reshape(Lk, N, H, Dh).transpose(1, 2, 0, 3)
        s = jnp.einsum("nhqd,nhkd->nhqk", q, k, precision=hp) / math.sqrt(Dh)
        a = jax.nn.softmax(s, axis=-1)
        o = jnp.einsum("nhqk,nhkd->nhqd", a, v, precision=hp)
        o = o.transpose(2, 0, 1, 3).reshape(Lq, N, E)
        return jnp.einsum("lne,oe->lno", o, p["out_w"], precision=hp) + p["out_b"]

    def ln(x, g, b):
        mu = x.mean(-1, keepdims=True)
        var = ((x - mu) ** 2).mean(-1, keepdims=True)
        return (x - mu) / jnp.sqrt(var + 1e-5) * g + b

    x = tgt
    x = ln(x + mha_ref(x, x, x, params["self_attn"]), params["norm1_g"], params["norm1_b"])
    A = jnp.transpose(jnp.broadcast_to(A_tgt[:, None, :],
                                       (N, target_max_len - 1, E)), (1, 0, 2))
    x = ln(x + mha_ref(A, memory, memory, params["attn_tgt"]),
           params["norm_tgt_g"], params["norm_tgt_b"])
    x = ln(x + mha_ref(x, memory, memory, params["multi_head_attn"]),
           params["norm2_g"], params["norm2_b"])
    h = jax.nn.relu(jnp.einsum("lne,fe->lnf", x, params["linear1_w"], precision=hp)
                    + params["linear1_b"])
    t2 = jnp.einsum("lnf,ef->lne", h, params["linear2_w"], precision=hp) + params["linear2_b"]
    x = ln(x + t2, params["norm3_g"], params["norm3_b"])
    return x


# ---------------------------------- main ------------------------------------

if __name__ == "__main__":
    d_model = 32
    nhead = 4
    dim_feedforward = 64
    target_max_len = 9            # args.target_max_len; L = target_max_len - 1
    L = target_max_len - 1        # target sequence length
    S = 8                         # memory sequence length
    N = 2                         # batch size

    key = jax.random.PRNGKey(0)
    k_p, k_t, k_m, k_a = jax.random.split(key, 4)

    params = init_params(k_p, d_model, nhead, dim_feedforward)
    packed = pack_params(params, nhead)   # one-time weight transpose / fold / bf16 packing

    tgt = jax.random.normal(k_t, (L, N, d_model), jnp.float32)
    memory = jax.random.normal(k_m, (S, N, d_model), jnp.float32)
    A_tgt = jax.random.normal(k_a, (N, d_model), jnp.float32)

    out = transformer_decoder_layer(tgt, memory, A_tgt, packed,
                                    nhead=nhead, target_max_len=target_max_len)
    out = jax.block_until_ready(out)

    assert out.shape == (L, N, d_model)
    assert bool(jnp.all(jnp.isfinite(out)))

    ref = reference_forward(tgt, memory, A_tgt, params,
                            nhead=nhead, target_max_len=target_max_len)
    max_err = float(jnp.max(jnp.abs(out - ref)))
    assert max_err < 5e-2, f"mismatch vs pure-JAX reference: max abs err {max_err}"

    print("KERNEL_OK")
</pallas_src>

<mosaic_0001>
module attributes {stable_mosaic.version = 11 : i64} {
  func.func @kernel(%arg0: i32, %arg1: memref<1x8x32xf32, #tpu.memory_space<vmem>>, %arg2: memref<1x8x32xf32, #tpu.memory_space<vmem>>, %arg3: memref<1x1x32xf32, #tpu.memory_space<vmem>>, %arg4: memref<32x64xbf16, #tpu.memory_space<vmem>>, %arg5: memref<1x64xf32, #tpu.memory_space<vmem>>, %arg6: memref<4x32x32xbf16, #tpu.memory_space<vmem>>, %arg7: memref<4x1x32xf32, #tpu.memory_space<vmem>>, %arg8: memref<1x32xf32, #tpu.memory_space<vmem>>, %arg9: memref<32x64xbf16, #tpu.memory_space<vmem>>, %arg10: memref<1x64xf32, #tpu.memory_space<vmem>>, %arg11: memref<4x32x32xbf16, #tpu.memory_space<vmem>>, %arg12: memref<4x1x32xf32, #tpu.memory_space<vmem>>, %arg13: memref<1x32xf32, #tpu.memory_space<vmem>>, %arg14: memref<32x64xbf16, #tpu.memory_space<vmem>>, %arg15: memref<1x64xf32, #tpu.memory_space<vmem>>, %arg16: memref<4x32x32xbf16, #tpu.memory_space<vmem>>, %arg17: memref<4x1x32xf32, #tpu.memory_space<vmem>>, %arg18: memref<1x32xf32, #tpu.memory_space<vmem>>, %arg19: memref<32x64xbf16, #tpu.memory_space<vmem>>, %arg20: memref<1x64xf32, #tpu.memory_space<vmem>>, %arg21: memref<64x32xbf16, #tpu.memory_space<vmem>>, %arg22: memref<1x32xf32, #tpu.memory_space<vmem>>, %arg23: memref<1x32xf32, #tpu.memory_space<vmem>>, %arg24: memref<1x32xf32, #tpu.memory_space<vmem>>, %arg25: memref<1x32xf32, #tpu.memory_space<vmem>>, %arg26: memref<1x32xf32, #tpu.memory_space<vmem>>, %arg27: memref<1x32xf32, #tpu.memory_space<vmem>>, %arg28: memref<1x32xf32, #tpu.memory_space<vmem>>, %arg29: memref<1x32xf32, #tpu.memory_space<vmem>>, %arg30: memref<1x32xf32, #tpu.memory_space<vmem>>, %arg31: memref<1x8x32xf32, #tpu.memory_space<vmem>>) attributes {dimension_semantics = [#tpu.dimension_semantics<parallel>], iteration_bounds = array<i64: 2>, scalar_prefetch = 0 : i64, scratch_operands = 0 : i64, tpu.core_type = #tpu.core_type<tc>, window_params = [{transform_indices = @transform_0, window_bounds = array<i64: 1, 8, 32>}, {transform_indices = @transform_1, window_bounds = array<i64: 1, 8, 32>}, {transform_indices = @transform_2, window_bounds = array<i64: 1, 1, 32>}, {pipeline_mode = #tpu.pipeline_mode<synchronous>, transform_indices = @transform_3, window_bounds = array<i64: 32, 64>}, {pipeline_mode = #tpu.pipeline_mode<synchronous>, transform_indices = @transform_4, window_bounds = array<i64: 1, 64>}, {pipeline_mode = #tpu.pipeline_mode<synchronous>, transform_indices = @transform_5, window_bounds = array<i64: 4, 32, 32>}, {pipeline_mode = #tpu.pipeline_mode<synchronous>, transform_indices = @transform_6, window_bounds = array<i64: 4, 1, 32>}, {pipeline_mode = #tpu.pipeline_mode<synchronous>, transform_indices = @transform_7, window_bounds = array<i64: 1, 32>}, {pipeline_mode = #tpu.pipeline_mode<synchronous>, transform_indices = @transform_8, window_bounds = array<i64: 32, 64>}, {pipeline_mode = #tpu.pipeline_mode<synchronous>, transform_indices = @transform_9, window_bounds = array<i64: 1, 64>}, {pipeline_mode = #tpu.pipeline_mode<synchronous>, transform_indices = @transform_10, window_bounds = array<i64: 4, 32, 32>}, {pipeline_mode = #tpu.pipeline_mode<synchronous>, transform_indices = @transform_11, window_bounds = array<i64: 4, 1, 32>}, {pipeline_mode = #tpu.pipeline_mode<synchronous>, transform_indices = @transform_12, window_bounds = array<i64: 1, 32>}, {pipeline_mode = #tpu.pipeline_mode<synchronous>, transform_indices = @transform_13, window_bounds = array<i64: 32, 64>}, {pipeline_mode = #tpu.pipeline_mode<synchronous>, transform_indices = @transform_14, window_bounds = array<i64: 1, 64>}, {pipeline_mode = #tpu.pipeline_mode<synchronous>, transform_indices = @transform_15, window_bounds = array<i64: 4, 32, 32>}, {pipeline_mode = #tpu.pipeline_mode<synchronous>, transform_indices = @transform_16, window_bounds = array<i64: 4, 1, 32>}, {pipeline_mode = #tpu.pipeline_mode<synchronous>, transform_indices = @transform_17, window_bounds = array<i64: 1, 32>}, {pipeline_mode = #tpu.pipeline_mode<synchronous>, transform_indices = @transform_18, window_bounds = array<i64: 32, 64>}, {pipeline_mode = #tpu.pipeline_mode<synchronous>, transform_indices = @transform_19, window_bounds = array<i64: 1, 64>}, {pipeline_mode = #tpu.pipeline_mode<synchronous>, transform_indices = @transform_20, window_bounds = array<i64: 64, 32>}, {pipeline_mode = #tpu.pipeline_mode<synchronous>, transform_indices = @transform_21, window_bounds = array<i64: 1, 32>}, {pipeline_mode = #tpu.pipeline_mode<synchronous>, transform_indices = @transform_22, window_bounds = array<i64: 1, 32>}, {pipeline_mode = #tpu.pipeline_mode<synchronous>, transform_indices = @transform_23, window_bounds = array<i64: 1, 32>}, {pipeline_mode = #tpu.pipeline_mode<synchronous>, transform_indices = @transform_24, window_bounds = array<i64: 1, 32>}, {pipeline_mode = #tpu.pipeline_mode<synchronous>, transform_indices = @transform_25, window_bounds = array<i64: 1, 32>}, {pipeline_mode = #tpu.pipeline_mode<synchronous>, transform_indices = @transform_26, window_bounds = array<i64: 1, 32>}, {pipeline_mode = #tpu.pipeline_mode<synchronous>, transform_indices = @transform_27, window_bounds = array<i64: 1, 32>}, {pipeline_mode = #tpu.pipeline_mode<synchronous>, transform_indices = @transform_28, window_bounds = array<i64: 1, 32>}, {pipeline_mode = #tpu.pipeline_mode<synchronous>, transform_indices = @transform_29, window_bounds = array<i64: 1, 32>}, {transform_indices = @transform_30, window_bounds = array<i64: 1, 8, 32>}]} {
    %c0 = arith.constant 0 : index
    %c0_0 = arith.constant 0 : index
    %c0_1 = arith.constant 0 : index
    %0 = vector.load %arg1[%c0, %c0_0, %c0_1] : memref<1x8x32xf32, #tpu.memory_space<vmem>>, vector<1x8x32xf32>
    %1 = vector.shape_cast %0 : vector<1x8x32xf32> to vector<8x32xf32>
    %c0_2 = arith.constant 0 : index
    %c0_3 = arith.constant 0 : index
    %c0_4 = arith.constant 0 : index
    %2 = vector.load %arg2[%c0_2, %c0_3, %c0_4] : memref<1x8x32xf32, #tpu.memory_space<vmem>>, vector<1x8x32xf32>
    %3 = vector.shape_cast %2 : vector<1x8x32xf32> to vector<8x32xf32>
    %4 = arith.truncf %3 : vector<8x32xf32> to vector<8x32xbf16>
    %c0_5 = arith.constant 0 : index
    %c0_6 = arith.constant 0 : index
    %c0_7 = arith.constant 0 : index
    %5 = vector.load %arg3[%c0_5, %c0_6, %c0_7] : memref<1x1x32xf32, #tpu.memory_space<vmem>>, vector<1x1x32xf32>
    %6 = vector.shape_cast %5 : vector<1x1x32xf32> to vector<1x32xf32>
    %7 = arith.truncf %6 : vector<1x32xf32> to vector<1x32xbf16>
    %8 = arith.truncf %1 : vector<8x32xf32> to vector<8x32xbf16>
    %c0_8 = arith.constant 0 : index
    %c0_9 = arith.constant 0 : index
    %9 = vector.load %arg4[%c0_8, %c0_9] : memref<32x64xbf16, #tpu.memory_space<vmem>>, vector<32x64xbf16>
    %c0_10 = arith.constant 0 : index
    %c0_11 = arith.constant 0 : index
    %10 = vector.load %arg5[%c0_10, %c0_11] : memref<1x64xf32, #tpu.memory_space<vmem>>, vector<1x64xf32>
    %c0_12 = arith.constant 0 : index
    %c0_13 = arith.constant 0 : index
    %11 = vector.load %arg8[%c0_12, %c0_13] : memref<1x32xf32, #tpu.memory_space<vmem>>, vector<1x32xf32>
    %12 = vector.extract_strided_slice %9 {offsets = [0, 0], sizes = [32, 32], strides = [1, 1]} : vector<32x64xbf16> to vector<32x32xbf16>
    %cst = arith.constant dense<0.000000e+00> : vector<8x32xf32>
    %13 = tpu.matmul %8, %12, %cst {dimension_numbers = #tpu.dot_dimension_numbers<[1], [0], [0], [1], [0, 0, 1, 1], [], []>} : vector<8x32xbf16>, vector<32x32xbf16>, vector<8x32xf32> -> vector<8x32xf32>
    %14 = vector.extract_strided_slice %10 {offsets = [0, 0], sizes = [1, 32], strides = [1, 1]} : vector<1x64xf32> to vector<1x32xf32>
    %15 = vector.broadcast %14 : vector<1x32xf32> to vector<8x32xf32>
    %16 = arith.addf %13, %15 : vector<8x32xf32>
    %17 = vector.extract_strided_slice %9 {offsets = [0, 32], sizes = [32, 32], strides = [1, 1]} : vector<32x64xbf16> to vector<32x32xbf16>
    %cst_14 = arith.constant dense<0.000000e+00> : vector<8x32xf32>
    %18 = tpu.matmul %8, %17, %cst_14 {dimension_numbers = #tpu.dot_dimension_numbers<[1], [0], [0], [1], [0, 0, 1, 1], [], []>} : vector<8x32xbf16>, vector<32x32xbf16>, vector<8x32xf32> -> vector<8x32xf32>
    %19 = vector.extract_strided_slice %10 {offsets = [0, 32], sizes = [1, 32], strides = [1, 1]} : vector<1x64xf32> to vector<1x32xf32>
    %20 = vector.broadcast %19 : vector<1x32xf32> to vector<8x32xf32>
    %21 = arith.addf %18, %20 : vector<8x32xf32>
    %22 = arith.truncf %16 : vector<8x32xf32> to vector<8x32xbf16>
    %23 = arith.truncf %21 : vector<8x32xf32> to vector<8x32xbf16>
    %cst_15 = arith.constant 0.000000e+00 : f32
    %24 = vector.broadcast %cst_15 : f32 to vector<8x32xf32>
    %25 = vector.extract_strided_slice %22 {offsets = [0, 0], sizes = [8, 8], strides = [1, 1]} : vector<8x32xbf16> to vector<8x8xbf16>
    %26 = vector.extract_strided_slice %23 {offsets = [0, 0], sizes = [8, 8], strides = [1, 1]} : vector<8x32xbf16> to vector<8x8xbf16>
    %cst_16 = arith.constant dense<0.000000e+00> : vector<8x8xf32>
    %27 = tpu.matmul %25, %26, %cst_16 {dimension_numbers = #tpu.dot_dimension_numbers<[1], [1], [0], [0], [0, 0, 1, 0], [], []>} : vector<8x8xbf16>, vector<8x8xbf16>, vector<8x8xf32> -> vector<8x8xf32>
    %cst_17 = arith.constant dense<0xFF800000> : vector<8xf32>
    %28 = vector.multi_reduction <maximumf>, %27, %cst_17 [1] : vector<8x8xf32> to vector<8xf32>
    %29 = vector.shape_cast %28 : vector<8xf32> to vector<8x1xf32>
    %30 = vector.broadcast %29 : vector<8x1xf32> to vector<8x8xf32>
    %31 = arith.subf %27, %30 : vector<8x8xf32>
    %32 = math.exp %31 : vector<8x8xf32>
    %cst_18 = arith.constant dense<0.000000e+00> : vector<8xf32>
    %33 = vector.multi_reduction <add>, %32, %cst_18 [1] : vector<8x8xf32> to vector<8xf32>
    %34 = vector.shape_cast %33 : vector<8xf32> to vector<8x1xf32>
    %35 = tpu.reciprocal %34 {approx = true} : vector<8x1xf32> -> vector<8x1xf32>
    %36 = vector.broadcast %35 : vector<8x1xf32> to vector<8x8xf32>
    %37 = arith.mulf %32, %36 : vector<8x8xf32>
    %c0_19 = arith.constant 0 : index
    %c0_20 = arith.constant 0 : index
    %c0_21 = arith.constant 0 : index
    %38 = vector.load %arg6[%c0_19, %c0_20, %c0_21] : memref<4x32x32xbf16, #tpu.memory_space<vmem>>, vector<1x32x32xbf16>
    %39 = vector.shape_cast %38 : vector<1x32x32xbf16> to vector<32x32xbf16>
    %cst_22 = arith.constant dense<0.000000e+00> : vector<8x32xf32>
    %40 = tpu.matmul %8, %39, %cst_22 {dimension_numbers = #tpu.dot_dimension_numbers<[1], [0], [0], [1], [0, 0, 1, 1], [], []>} : vector<8x32xbf16>, vector<32x32xbf16>, vector<8x32xf32> -> vector<8x32xf32>
    %c0_23 = arith.constant 0 : index
    %c0_24 = arith.constant 0 : index
    %c0_25 = arith.constant 0 : index
    %41 = vector.load %arg7[%c0_23, %c0_24, %c0_25] : memref<4x1x32xf32, #tpu.memory_space<vmem>>, vector<1x1x32xf32>
    %42 = vector.shape_cast %41 : vector<1x1x32xf32> to vector<1x32xf32>
    %43 = vector.broadcast %42 : vector<1x32xf32> to vector<8x32xf32>
    %44 = arith.addf %40, %43 : vector<8x32xf32>
    %45 = arith.truncf %37 : vector<8x8xf32> to vector<8x8xbf16>
    %46 = arith.truncf %44 : vector<8x32xf32> to vector<8x32xbf16>
    %cst_26 = arith.constant dense<0.000000e+00> : vector<8x32xf32>
    %47 = tpu.matmul %45, %46, %cst_26 {dimension_numbers = #tpu.dot_dimension_numbers<[1], [0], [0], [1], [0, 0, 1, 1], [], []>} : vector<8x8xbf16>, vector<8x32xbf16>, vector<8x32xf32> -> vector<8x32xf32>
    %48 = arith.addf %24, %47 : vector<8x32xf32>
    %49 = vector.extract_strided_slice %22 {offsets = [0, 8], sizes = [8, 8], strides = [1, 1]} : vector<8x32xbf16> to vector<8x8xbf16>
    %50 = vector.extract_strided_slice %23 {offsets = [0, 8], sizes = [8, 8], strides = [1, 1]} : vector<8x32xbf16> to vector<8x8xbf16>
    %cst_27 = arith.constant dense<0.000000e+00> : vector<8x8xf32>
    %51 = tpu.matmul %49, %50, %cst_27 {dimension_numbers = #tpu.dot_dimension_numbers<[1], [1], [0], [0], [0, 0, 1, 0], [], []>} : vector<8x8xbf16>, vector<8x8xbf16>, vector<8x8xf32> -> vector<8x8xf32>
    %cst_28 = arith.constant dense<0xFF800000> : vector<8xf32>
    %52 = vector.multi_reduction <maximumf>, %51, %cst_28 [1] : vector<8x8xf32> to vector<8xf32>
    %53 = vector.shape_cast %52 : vector<8xf32> to vector<8x1xf32>
    %54 = vector.broadcast %53 : vector<8x1xf32> to vector<8x8xf32>
    %55 = arith.subf %51, %54 : vector<8x8xf32>
    %56 = math.exp %55 : vector<8x8xf32>
    %cst_29 = arith.constant dense<0.000000e+00> : vector<8xf32>
    %57 = vector.multi_reduction <add>, %56, %cst_29 [1] : vector<8x8xf32> to vector<8xf32>
    %58 = vector.shape_cast %57 : vector<8xf32> to vector<8x1xf32>
    %59 = tpu.reciprocal %58 {approx = true} : vector<8x1xf32> -> vector<8x1xf32>
    %60 = vector.broadcast %59 : vector<8x1xf32> to vector<8x8xf32>
    %61 = arith.mulf %56, %60 : vector<8x8xf32>
    %c1 = arith.constant 1 : index
    %c0_30 = arith.constant 0 : index
    %c0_31 = arith.constant 0 : index
    %62 = vector.load %arg6[%c1, %c0_30, %c0_31] : memref<4x32x32xbf16, #tpu.memory_space<vmem>>, vector<1x32x32xbf16>
    %63 = vector.shape_cast %62 : vector<1x32x32xbf16> to vector<32x32xbf16>
    %cst_32 = arith.constant dense<0.000000e+00> : vector<8x32xf32>
    %64 = tpu.matmul %8, %63, %cst_32 {dimension_numbers = #tpu.dot_dimension_numbers<[1], [0], [0], [1], [0, 0, 1, 1], [], []>} : vector<8x32xbf16>, vector<32x32xbf16>, vector<8x32xf32> -> vector<8x32xf32>
    %c1_33 = arith.constant 1 : index
    %c0_34 = arith.constant 0 : index
    %c0_35 = arith.constant 0 : index
    %65 = vector.load %arg7[%c1_33, %c0_34, %c0_35] : memref<4x1x32xf32, #tpu.memory_space<vmem>>, vector<1x1x32xf32>
    %66 = vector.shape_cast %65 : vector<1x1x32xf32> to vector<1x32xf32>
    %67 = vector.broadcast %66 : vector<1x32xf32> to vector<8x32xf32>
    %68 = arith.addf %64, %67 : vector<8x32xf32>
    %69 = arith.truncf %61 : vector<8x8xf32> to vector<8x8xbf16>
    %70 = arith.truncf %68 : vector<8x32xf32> to vector<8x32xbf16>
    %cst_36 = arith.constant dense<0.000000e+00> : vector<8x32xf32>
    %71 = tpu.matmul %69, %70, %cst_36 {dimension_numbers = #tpu.dot_dimension_numbers<[1], [0], [0], [1], [0, 0, 1, 1], [], []>} : vector<8x8xbf16>, vector<8x32xbf16>, vector<8x32xf32> -> vector<8x32xf32>
    %72 = arith.addf %48, %71 : vector<8x32xf32>
    %73 = vector.extract_strided_slice %22 {offsets = [0, 16], sizes = [8, 8], strides = [1, 1]} : vector<8x32xbf16> to vector<8x8xbf16>
    %74 = vector.extract_strided_slice %23 {offsets = [0, 16], sizes = [8, 8], strides = [1, 1]} : vector<8x32xbf16> to vector<8x8xbf16>
    %cst_37 = arith.constant dense<0.000000e+00> : vector<8x8xf32>
    %75 = tpu.matmul %73, %74, %cst_37 {dimension_numbers = #tpu.dot_dimension_numbers<[1], [1], [0], [0], [0, 0, 1, 0], [], []>} : vector<8x8xbf16>, vector<8x8xbf16>, vector<8x8xf32> -> vector<8x8xf32>
    %cst_38 = arith.constant dense<0xFF800000> : vector<8xf32>
    %76 = vector.multi_reduction <maximumf>, %75, %cst_38 [1] : vector<8x8xf32> to vector<8xf32>
    %77 = vector.shape_cast %76 : vector<8xf32> to vector<8x1xf32>
    %78 = vector.broadcast %77 : vector<8x1xf32> to vector<8x8xf32>
    %79 = arith.subf %75, %78 : vector<8x8xf32>
    %80 = math.exp %79 : vector<8x8xf32>
    %cst_39 = arith.constant dense<0.000000e+00> : vector<8xf32>
    %81 = vector.multi_reduction <add>, %80, %cst_39 [1] : vector<8x8xf32> to vector<8xf32>
    %82 = vector.shape_cast %81 : vector<8xf32> to vector<8x1xf32>
    %83 = tpu.reciprocal %82 {approx = true} : vector<8x1xf32> -> vector<8x1xf32>
    %84 = vector.broadcast %83 : vector<8x1xf32> to vector<8x8xf32>
    %85 = arith.mulf %80, %84 : vector<8x8xf32>
    %c2 = arith.constant 2 : index
    %c0_40 = arith.constant 0 : index
    %c0_41 = arith.constant 0 : index
    %86 = vector.load %arg6[%c2, %c0_40, %c0_41] : memref<4x32x32xbf16, #tpu.memory_space<vmem>>, vector<1x32x32xbf16>
    %87 = vector.shape_cast %86 : vector<1x32x32xbf16> to vector<32x32xbf16>
    %cst_42 = arith.constant dense<0.000000e+00> : vector<8x32xf32>
    %88 = tpu.matmul %8, %87, %cst_42 {dimension_numbers = #tpu.dot_dimension_numbers<[1], [0], [0], [1], [0, 0, 1, 1], [], []>} : vector<8x32xbf16>, vector<32x32xbf16>, vector<8x32xf32> -> vector<8x32xf32>
    %c2_43 = arith.constant 2 : index
    %c0_44 = arith.constant 0 : index
    %c0_45 = arith.constant 0 : index
    %89 = vector.load %arg7[%c2_43, %c0_44, %c0_45] : memref<4x1x32xf32, #tpu.memory_space<vmem>>, vector<1x1x32xf32>
    %90 = vector.shape_cast %89 : vector<1x1x32xf32> to vector<1x32xf32>
    %91 = vector.broadcast %90 : vector<1x32xf32> to vector<8x32xf32>
    %92 = arith.addf %88, %91 : vector<8x32xf32>
    %93 = arith.truncf %85 : vector<8x8xf32> to vector<8x8xbf16>
    %94 = arith.truncf %92 : vector<8x32xf32> to vector<8x32xbf16>
    %cst_46 = arith.constant dense<0.000000e+00> : vector<8x32xf32>
    %95 = tpu.matmul %93, %94, %cst_46 {dimension_numbers = #tpu.dot_dimension_numbers<[1], [0], [0], [1], [0, 0, 1, 1], [], []>} : vector<8x8xbf16>, vector<8x32xbf16>, vector<8x32xf32> -> vector<8x32xf32>
    %96 = arith.addf %72, %95 : vector<8x32xf32>
    %97 = vector.extract_strided_slice %22 {offsets = [0, 24], sizes = [8, 8], strides = [1, 1]} : vector<8x32xbf16> to vector<8x8xbf16>
    %98 = vector.extract_strided_slice %23 {offsets = [0, 24], sizes = [8, 8], strides = [1, 1]} : vector<8x32xbf16> to vector<8x8xbf16>
    %cst_47 = arith.constant dense<0.000000e+00> : vector<8x8xf32>
    %99 = tpu.matmul %97, %98, %cst_47 {dimension_numbers = #tpu.dot_dimension_numbers<[1], [1], [0], [0], [0, 0, 1, 0], [], []>} : vector<8x8xbf16>, vector<8x8xbf16>, vector<8x8xf32> -> vector<8x8xf32>
    %cst_48 = arith.constant dense<0xFF800000> : vector<8xf32>
    %100 = vector.multi_reduction <maximumf>, %99, %cst_48 [1] : vector<8x8xf32> to vector<8xf32>
    %101 = vector.shape_cast %100 : vector<8xf32> to vector<8x1xf32>
    %102 = vector.broadcast %101 : vector<8x1xf32> to vector<8x8xf32>
    %103 = arith.subf %99, %102 : vector<8x8xf32>
    %104 = math.exp %103 : vector<8x8xf32>
    %cst_49 = arith.constant dense<0.000000e+00> : vector<8xf32>
    %105 = vector.multi_reduction <add>, %104, %cst_49 [1] : vector<8x8xf32> to vector<8xf32>
    %106 = vector.shape_cast %105 : vector<8xf32> to vector<8x1xf32>
    %107 = tpu.reciprocal %106 {approx = true} : vector<8x1xf32> -> vector<8x1xf32>
    %108 = vector.broadcast %107 : vector<8x1xf32> to vector<8x8xf32>
    %109 = arith.mulf %104, %108 : vector<8x8xf32>
    %c3 = arith.constant 3 : index
    %c0_50 = arith.constant 0 : index
    %c0_51 = arith.constant 0 : index
    %110 = vector.load %arg6[%c3, %c0_50, %c0_51] : memref<4x32x32xbf16, #tpu.memory_space<vmem>>, vector<1x32x32xbf16>
    %111 = vector.shape_cast %110 : vector<1x32x32xbf16> to vector<32x32xbf16>
    %cst_52 = arith.constant dense<0.000000e+00> : vector<8x32xf32>
    %112 = tpu.matmul %8, %111, %cst_52 {dimension_numbers = #tpu.dot_dimension_numbers<[1], [0], [0], [1], [0, 0, 1, 1], [], []>} : vector<8x32xbf16>, vector<32x32xbf16>, vector<8x32xf32> -> vector<8x32xf32>
    %c3_53 = arith.constant 3 : index
    %c0_54 = arith.constant 0 : index
    %c0_55 = arith.constant 0 : index
    %113 = vector.load %arg7[%c3_53, %c0_54, %c0_55] : memref<4x1x32xf32, #tpu.memory_space<vmem>>, vector<1x1x32xf32>
    %114 = vector.shape_cast %113 : vector<1x1x32xf32> to vector<1x32xf32>
    %115 = vector.broadcast %114 : vector<1x32xf32> to vector<8x32xf32>
    %116 = arith.addf %112, %115 : vector<8x32xf32>
    %117 = arith.truncf %109 : vector<8x8xf32> to vector<8x8xbf16>
    %118 = arith.truncf %116 : vector<8x32xf32> to vector<8x32xbf16>
    %cst_56 = arith.constant dense<0.000000e+00> : vector<8x32xf32>
    %119 = tpu.matmul %117, %118, %cst_56 {dimension_numbers = #tpu.dot_dimension_numbers<[1], [0], [0], [1], [0, 0, 1, 1], [], []>} : vector<8x8xbf16>, vector<8x32xbf16>, vector<8x32xf32> -> vector<8x32xf32>
    %120 = arith.addf %96, %119 : vector<8x32xf32>
    %121 = vector.broadcast %11 : vector<1x32xf32> to vector<8x32xf32>
    %122 = arith.addf %120, %121 : vector<8x32xf32>
    %123 = arith.addf %1, %122 : vector<8x32xf32>
    %c0_57 = arith.constant 0 : index
    %c0_58 = arith.constant 0 : index
    %124 = vector.load %arg23[%c0_57, %c0_58] : memref<1x32xf32, #tpu.memory_space<vmem>>, vector<1x32xf32>
    %c0_59 = arith.constant 0 : index
    %c0_60 = arith.constant 0 : index
    %125 = vector.load %arg24[%c0_59, %c0_60] : memref<1x32xf32, #tpu.memory_space<vmem>>, vector<1x32xf32>
    %cst_61 = arith.constant dense<0.000000e+00> : vector<8xf32>
    %126 = vector.multi_reduction <add>, %123, %cst_61 [1] : vector<8x32xf32> to vector<8xf32>
    %127 = vector.shape_cast %126 : vector<8xf32> to vector<8x1xf32>
    %cst_62 = arith.constant 3.200000e+01 : f32
    %128 = vector.broadcast %cst_62 : f32 to vector<8x1xf32>
    %129 = arith.divf %127, %128 : vector<8x1xf32>
    %130 = vector.broadcast %129 : vector<8x1xf32> to vector<8x32xf32>
    %131 = arith.subf %123, %130 : vector<8x32xf32>
    %132 = arith.mulf %131, %131 : vector<8x32xf32>
    %cst_63 = arith.constant dense<0.000000e+00> : vector<8xf32>
    %133 = vector.multi_reduction <add>, %132, %cst_63 [1] : vector<8x32xf32> to vector<8xf32>
    %134 = vector.shape_cast %133 : vector<8xf32> to vector<8x1xf32>
    %cst_64 = arith.constant 3.200000e+01 : f32
    %135 = vector.broadcast %cst_64 : f32 to vector<8x1xf32>
    %136 = arith.divf %134, %135 : vector<8x1xf32>
    %cst_65 = arith.constant 9.99999974E-6 : f32
    %137 = vector.broadcast %cst_65 : f32 to vector<8x1xf32>
    %138 = arith.addf %136, %137 : vector<8x1xf32>
    %139 = math.rsqrt %138 : vector<8x1xf32>
    %140 = vector.broadcast %139 : vector<8x1xf32> to vector<8x32xf32>
    %141 = arith.mulf %131, %140 : vector<8x32xf32>
    %142 = vector.broadcast %124 : vector<1x32xf32> to vector<8x32xf32>
    %143 = arith.mulf %141, %142 : vector<8x32xf32>
    %144 = vector.broadcast %125 : vector<1x32xf32> to vector<8x32xf32>
    %145 = arith.addf %143, %144 : vector<8x32xf32>
    %c0_66 = arith.constant 0 : index
    %c0_67 = arith.constant 0 : index
    %146 = vector.load %arg9[%c0_66, %c0_67] : memref<32x64xbf16, #tpu.memory_space<vmem>>, vector<32x64xbf16>
    %c0_68 = arith.constant 0 : index
    %c0_69 = arith.constant 0 : index
    %147 = vector.load %arg10[%c0_68, %c0_69] : memref<1x64xf32, #tpu.memory_space<vmem>>, vector<1x64xf32>
    %c0_70 = arith.constant 0 : index
    %c0_71 = arith.constant 0 : index
    %148 = vector.load %arg13[%c0_70, %c0_71] : memref<1x32xf32, #tpu.memory_space<vmem>>, vector<1x32xf32>
    %149 = vector.extract_strided_slice %146 {offsets = [0, 0], sizes = [32, 32], strides = [1, 1]} : vector<32x64xbf16> to vector<32x32xbf16>
    %cst_72 = arith.constant dense<0.000000e+00> : vector<1x32xf32>
    %150 = tpu.matmul %7, %149, %cst_72 {dimension_numbers = #tpu.dot_dimension_numbers<[1], [0], [0], [1], [0, 0, 1, 1], [], []>} : vector<1x32xbf16>, vector<32x32xbf16>, vector<1x32xf32> -> vector<1x32xf32>
    %151 = vector.extract_strided_slice %147 {offsets = [0, 0], sizes = [1, 32], strides = [1, 1]} : vector<1x64xf32> to vector<1x32xf32>
    %152 = arith.addf %150, %151 : vector<1x32xf32>
    %153 = vector.extract_strided_slice %146 {offsets = [0, 32], sizes = [32, 32], strides = [1, 1]} : vector<32x64xbf16> to vector<32x32xbf16>
    %cst_73 = arith.constant dense<0.000000e+00> : vector<8x32xf32>
    %154 = tpu.matmul %4, %153, %cst_73 {dimension_numbers = #tpu.dot_dimension_numbers<[1], [0], [0], [1], [0, 0, 1, 1], [], []>} : vector<8x32xbf16>, vector<32x32xbf16>, vector<8x32xf32> -> vector<8x32xf32>
    %155 = vector.extract_strided_slice %147 {offsets = [0, 32], sizes = [1, 32], strides = [1, 1]} : vector<1x64xf32> to vector<1x32xf32>
    %156 = vector.broadcast %155 : vector<1x32xf32> to vector<8x32xf32>
    %157 = arith.addf %154, %156 : vector<8x32xf32>
    %158 = arith.truncf %152 : vector<1x32xf32> to vector<1x32xbf16>
    %159 = arith.truncf %157 : vector<8x32xf32> to vector<8x32xbf16>
    %cst_74 = arith.constant 0.000000e+00 : f32
    %160 = vector.broadcast %cst_74 : f32 to vector<1x32xf32>
    %161 = vector.extract_strided_slice %158 {offsets = [0, 0], sizes = [1, 8], strides = [1, 1]} : vector<1x32xbf16> to vector<1x8xbf16>
    %162 = vector.extract_strided_slice %159 {offsets = [0, 0], sizes = [8, 8], strides = [1, 1]} : vector<8x32xbf16> to vector<8x8xbf16>
    %cst_75 = arith.constant dense<0.000000e+00> : vector<1x8xf32>
    %163 = tpu.matmul %161, %162, %cst_75 {dimension_numbers = #tpu.dot_dimension_numbers<[1], [1], [0], [0], [0, 0, 1, 0], [], []>} : vector<1x8xbf16>, vector<8x8xbf16>, vector<1x8xf32> -> vector<1x8xf32>
    %cst_76 = arith.constant dense<0xFF800000> : vector<1xf32>
    %164 = vector.multi_reduction <maximumf>, %163, %cst_76 [1] : vector<1x8xf32> to vector<1xf32>
    %165 = vector.shape_cast %164 : vector<1xf32> to vector<1x1xf32>
    %166 = vector.broadcast %165 : vector<1x1xf32> to vector<1x8xf32>
    %167 = arith.subf %163, %166 : vector<1x8xf32>
    %168 = math.exp %167 : vector<1x8xf32>
    %cst_77 = arith.constant dense<0.000000e+00> : vector<1xf32>
    %169 = vector.multi_reduction <add>, %168, %cst_77 [1] : vector<1x8xf32> to vector<1xf32>
    %170 = vector.shape_cast %169 : vector<1xf32> to vector<1x1xf32>
    %171 = tpu.reciprocal %170 {approx = true} : vector<1x1xf32> -> vector<1x1xf32>
    %172 = vector.broadcast %171 : vector<1x1xf32> to vector<1x8xf32>
    %173 = arith.mulf %168, %172 : vector<1x8xf32>
    %c0_78 = arith.constant 0 : index
    %c0_79 = arith.constant 0 : index
    %c0_80 = arith.constant 0 : index
    %174 = vector.load %arg11[%c0_78, %c0_79, %c0_80] : memref<4x32x32xbf16, #tpu.memory_space<vmem>>, vector<1x32x32xbf16>
    %175 = vector.shape_cast %174 : vector<1x32x32xbf16> to vector<32x32xbf16>
    %cst_81 = arith.constant dense<0.000000e+00> : vector<8x32xf32>
    %176 = tpu.matmul %4, %175, %cst_81 {dimension_numbers = #tpu.dot_dimension_numbers<[1], [0], [0], [1], [0, 0, 1, 1], [], []>} : vector<8x32xbf16>, vector<32x32xbf16>, vector<8x32xf32> -> vector<8x32xf32>
    %c0_82 = arith.constant 0 : index
    %c0_83 = arith.constant 0 : index
    %c0_84 = arith.constant 0 : index
    %177 = vector.load %arg12[%c0_82, %c0_83, %c0_84] : memref<4x1x32xf32, #tpu.memory_space<vmem>>, vector<1x1x32xf32>
    %178 = vector.shape_cast %177 : vector<1x1x32xf32> to vector<1x32xf32>
    %179 = vector.broadcast %178 : vector<1x32xf32> to vector<8x32xf32>
    %180 = arith.addf %176, %179 : vector<8x32xf32>
    %181 = arith.truncf %173 : vector<1x8xf32> to vector<1x8xbf16>
    %182 = arith.truncf %180 : vector<8x32xf32> to vector<8x32xbf16>
    %cst_85 = arith.constant dense<0.000000e+00> : vector<1x32xf32>
    %183 = tpu.matmul %181, %182, %cst_85 {dimension_numbers = #tpu.dot_dimension_numbers<[1], [0], [0], [1], [0, 0, 1, 1], [], []>} : vector<1x8xbf16>, vector<8x32xbf16>, vector<1x32xf32> -> vector<1x32xf32>
    %184 = arith.addf %160, %183 : vector<1x32xf32>
    %185 = vector.extract_strided_slice %158 {offsets = [0, 8], sizes = [1, 8], strides = [1, 1]} : vector<1x32xbf16> to vector<1x8xbf16>
    %186 = vector.extract_strided_slice %159 {offsets = [0, 8], sizes = [8, 8], strides = [1, 1]} : vector<8x32xbf16> to vector<8x8xbf16>
    %cst_86 = arith.constant dense<0.000000e+00> : vector<1x8xf32>
    %187 = tpu.matmul %185, %186, %cst_86 {dimension_numbers = #tpu.dot_dimension_numbers<[1], [1], [0], [0], [0, 0, 1, 0], [], []>} : vector<1x8xbf16>, vector<8x8xbf16>, vector<1x8xf32> -> vector<1x8xf32>
    %cst_87 = arith.constant dense<0xFF800000> : vector<1xf32>
    %188 = vector.multi_reduction <maximumf>, %187, %cst_87 [1] : vector<1x8xf32> to vector<1xf32>
    %189 = vector.shape_cast %188 : vector<1xf32> to vector<1x1xf32>
    %190 = vector.broadcast %189 : vector<1x1xf32> to vector<1x8xf32>
    %191 = arith.subf %187, %190 : vector<1x8xf32>
    %192 = math.exp %191 : vector<1x8xf32>
    %cst_88 = arith.constant dense<0.000000e+00> : vector<1xf32>
    %193 = vector.multi_reduction <add>, %192, %cst_88 [1] : vector<1x8xf32> to vector<1xf32>
    %194 = vector.shape_cast %193 : vector<1xf32> to vector<1x1xf32>
    %195 = tpu.reciprocal %194 {approx = true} : vector<1x1xf32> -> vector<1x1xf32>
    %196 = vector.broadcast %195 : vector<1x1xf32> to vector<1x8xf32>
    %197 = arith.mulf %192, %196 : vector<1x8xf32>
    %c1_89 = arith.constant 1 : index
    %c0_90 = arith.constant 0 : index
    %c0_91 = arith.constant 0 : index
    %198 = vector.load %arg11[%c1_89, %c0_90, %c0_91] : memref<4x32x32xbf16, #tpu.memory_space<vmem>>, vector<1x32x32xbf16>
    %199 = vector.shape_cast %198 : vector<1x32x32xbf16> to vector<32x32xbf16>
    %cst_92 = arith.constant dense<0.000000e+00> : vector<8x32xf32>
    %200 = tpu.matmul %4, %199, %cst_92 {dimension_numbers = #tpu.dot_dimension_numbers<[1], [0], [0], [1], [0, 0, 1, 1], [], []>} : vector<8x32xbf16>, vector<32x32xbf16>, vector<8x32xf32> -> vector<8x32xf32>
    %c1_93 = arith.constant 1 : index
    %c0_94 = arith.constant 0 : index
    %c0_95 = arith.constant 0 : index
    %201 = vector.load %arg12[%c1_93, %c0_94, %c0_95] : memref<4x1x32xf32, #tpu.memory_space<vmem>>, vector<1x1x32xf32>
    %202 = vector.shape_cast %201 : vector<1x1x32xf32> to vector<1x32xf32>
    %203 = vector.broadcast %202 : vector<1x32xf32> to vector<8x32xf32>
    %204 = arith.addf %200, %203 : vector<8x32xf32>
    %205 = arith.truncf %197 : vector<1x8xf32> to vector<1x8xbf16>
    %206 = arith.truncf %204 : vector<8x32xf32> to vector<8x32xbf16>
    %cst_96 = arith.constant dense<0.000000e+00> : vector<1x32xf32>
    %207 = tpu.matmul %205, %206, %cst_96 {dimension_numbers = #tpu.dot_dimension_numbers<[1], [0], [0], [1], [0, 0, 1, 1], [], []>} : vector<1x8xbf16>, vector<8x32xbf16>, vector<1x32xf32> -> vector<1x32xf32>
    %208 = arith.addf %184, %207 : vector<1x32xf32>
    %209 = vector.extract_strided_slice %158 {offsets = [0, 16], sizes = [1, 8], strides = [1, 1]} : vector<1x32xbf16> to vector<1x8xbf16>
    %210 = vector.extract_strided_slice %159 {offsets = [0, 16], sizes = [8, 8], strides = [1, 1]} : vector<8x32xbf16> to vector<8x8xbf16>
    %cst_97 = arith.constant dense<0.000000e+00> : vector<1x8xf32>
    %211 = tpu.matmul %209, %210, %cst_97 {dimension_numbers = #tpu.dot_dimension_numbers<[1], [1], [0], [0], [0, 0, 1, 0], [], []>} : vector<1x8xbf16>, vector<8x8xbf16>, vector<1x8xf32> -> vector<1x8xf32>
    %cst_98 = arith.constant dense<0xFF800000> : vector<1xf32>
    %212 = vector.multi_reduction <maximumf>, %211, %cst_98 [1] : vector<1x8xf32> to vector<1xf32>
    %213 = vector.shape_cast %212 : vector<1xf32> to vector<1x1xf32>
    %214 = vector.broadcast %213 : vector<1x1xf32> to vector<1x8xf32>
    %215 = arith.subf %211, %214 : vector<1x8xf32>
    %216 = math.exp %215 : vector<1x8xf32>
    %cst_99 = arith.constant dense<0.000000e+00> : vector<1xf32>
    %217 = vector.multi_reduction <add>, %216, %cst_99 [1] : vector<1x8xf32> to vector<1xf32>
    %218 = vector.shape_cast %217 : vector<1xf32> to vector<1x1xf32>
    %219 = tpu.reciprocal %218 {approx = true} : vector<1x1xf32> -> vector<1x1xf32>
    %220 = vector.broadcast %219 : vector<1x1xf32> to vector<1x8xf32>
    %221 = arith.mulf %216, %220 : vector<1x8xf32>
    %c2_100 = arith.constant 2 : index
    %c0_101 = arith.constant 0 : index
    %c0_102 = arith.constant 0 : index
    %222 = vector.load %arg11[%c2_100, %c0_101, %c0_102] : memref<4x32x32xbf16, #tpu.memory_space<vmem>>, vector<1x32x32xbf16>
    %223 = vector.shape_cast %222 : vector<1x32x32xbf16> to vector<32x32xbf16>
    %cst_103 = arith.constant dense<0.000000e+00> : vector<8x32xf32>
    %224 = tpu.matmul %4, %223, %cst_103 {dimension_numbers = #tpu.dot_dimension_numbers<[1], [0], [0], [1], [0, 0, 1, 1], [], []>} : vector<8x32xbf16>, vector<32x32xbf16>, vector<8x32xf32> -> vector<8x32xf32>
    %c2_104 = arith.constant 2 : index
    %c0_105 = arith.constant 0 : index
    %c0_106 = arith.constant 0 : index
    %225 = vector.load %arg12[%c2_104, %c0_105, %c0_106] : memref<4x1x32xf32, #tpu.memory_space<vmem>>, vector<1x1x32xf32>
    %226 = vector.shape_cast %225 : vector<1x1x32xf32> to vector<1x32xf32>
    %227 = vector.broadcast %226 : vector<1x32xf32> to vector<8x32xf32>
    %228 = arith.addf %224, %227 : vector<8x32xf32>
    %229 = arith.truncf %221 : vector<1x8xf32> to vector<1x8xbf16>
    %230 = arith.truncf %228 : vector<8x32xf32> to vector<8x32xbf16>
    %cst_107 = arith.constant dense<0.000000e+00> : vector<1x32xf32>
    %231 = tpu.matmul %229, %230, %cst_107 {dimension_numbers = #tpu.dot_dimension_numbers<[1], [0], [0], [1], [0, 0, 1, 1], [], []>} : vector<1x8xbf16>, vector<8x32xbf16>, vector<1x32xf32> -> vector<1x32xf32>
    %232 = arith.addf %208, %231 : vector<1x32xf32>
    %233 = vector.extract_strided_slice %158 {offsets = [0, 24], sizes = [1, 8], strides = [1, 1]} : vector<1x32xbf16> to vector<1x8xbf16>
    %234 = vector.extract_strided_slice %159 {offsets = [0, 24], sizes = [8, 8], strides = [1, 1]} : vector<8x32xbf16> to vector<8x8xbf16>
    %cst_108 = arith.constant dense<0.000000e+00> : vector<1x8xf32>
    %235 = tpu.matmul %233, %234, %cst_108 {dimension_numbers = #tpu.dot_dimension_numbers<[1], [1], [0], [0], [0, 0, 1, 0], [], []>} : vector<1x8xbf16>, vector<8x8xbf16>, vector<1x8xf32> -> vector<1x8xf32>
    %cst_109 = arith.constant dense<0xFF800000> : vector<1xf32>
    %236 = vector.multi_reduction <maximumf>, %235, %cst_109 [1] : vector<1x8xf32> to vector<1xf32>
    %237 = vector.shape_cast %236 : vector<1xf32> to vector<1x1xf32>
    %238 = vector.broadcast %237 : vector<1x1xf32> to vector<1x8xf32>
    %239 = arith.subf %235, %238 : vector<1x8xf32>
    %240 = math.exp %239 : vector<1x8xf32>
    %cst_110 = arith.constant dense<0.000000e+00> : vector<1xf32>
    %241 = vector.multi_reduction <add>, %240, %cst_110 [1] : vector<1x8xf32> to vector<1xf32>
    %242 = vector.shape_cast %241 : vector<1xf32> to vector<1x1xf32>
    %243 = tpu.reciprocal %242 {approx = true} : vector<1x1xf32> -> vector<1x1xf32>
    %244 = vector.broadcast %243 : vector<1x1xf32> to vector<1x8xf32>
    %245 = arith.mulf %240, %244 : vector<1x8xf32>
    %c3_111 = arith.constant 3 : index
    %c0_112 = arith.constant 0 : index
    %c0_113 = arith.constant 0 : index
    %246 = vector.load %arg11[%c3_111, %c0_112, %c0_113] : memref<4x32x32xbf16, #tpu.memory_space<vmem>>, vector<1x32x32xbf16>
    %247 = vector.shape_cast %246 : vector<1x32x32xbf16> to vector<32x32xbf16>
    %cst_114 = arith.constant dense<0.000000e+00> : vector<8x32xf32>
    %248 = tpu.matmul %4, %247, %cst_114 {dimension_numbers = #tpu.dot_dimension_numbers<[1], [0], [0], [1], [0, 0, 1, 1], [], []>} : vector<8x32xbf16>, vector<32x32xbf16>, vector<8x32xf32> -> vector<8x32xf32>
    %c3_115 = arith.constant 3 : index
    %c0_116 = arith.constant 0 : index
    %c0_117 = arith.constant 0 : index
    %249 = vector.load %arg12[%c3_115, %c0_116, %c0_117] : memref<4x1x32xf32, #tpu.memory_space<vmem>>, vector<1x1x32xf32>
    %250 = vector.shape_cast %249 : vector<1x1x32xf32> to vector<1x32xf32>
    %251 = vector.broadcast %250 : vector<1x32xf32> to vector<8x32xf32>
    %252 = arith.addf %248, %251 : vector<8x32xf32>
    %253 = arith.truncf %245 : vector<1x8xf32> to vector<1x8xbf16>
    %254 = arith.truncf %252 : vector<8x32xf32> to vector<8x32xbf16>
    %cst_118 = arith.constant dense<0.000000e+00> : vector<1x32xf32>
    %255 = tpu.matmul %253, %254, %cst_118 {dimension_numbers = #tpu.dot_dimension_numbers<[1], [0], [0], [1], [0, 0, 1, 1], [], []>} : vector<1x8xbf16>, vector<8x32xbf16>, vector<1x32xf32> -> vector<1x32xf32>
    %256 = arith.addf %232, %255 : vector<1x32xf32>
    %257 = arith.addf %256, %148 : vector<1x32xf32>
    %258 = vector.broadcast %257 : vector<1x32xf32> to vector<8x32xf32>
    %259 = arith.addf %145, %258 : vector<8x32xf32>
    %c0_119 = arith.constant 0 : index
    %c0_120 = arith.constant 0 : index
    %260 = vector.load %arg25[%c0_119, %c0_120] : memref<1x32xf32, #tpu.memory_space<vmem>>, vector<1x32xf32>
    %c0_121 = arith.constant 0 : index
    %c0_122 = arith.constant 0 : index
    %261 = vector.load %arg26[%c0_121, %c0_122] : memref<1x32xf32, #tpu.memory_space<vmem>>, vector<1x32xf32>
    %cst_123 = arith.constant dense<0.000000e+00> : vector<8xf32>
    %262 = vector.multi_reduction <add>, %259, %cst_123 [1] : vector<8x32xf32> to vector<8xf32>
    %263 = vector.shape_cast %262 : vector<8xf32> to vector<8x1xf32>
    %cst_124 = arith.constant 3.200000e+01 : f32
    %264 = vector.broadcast %cst_124 : f32 to vector<8x1xf32>
    %265 = arith.divf %263, %264 : vector<8x1xf32>
    %266 = vector.broadcast %265 : vector<8x1xf32> to vector<8x32xf32>
    %267 = arith.subf %259, %266 : vector<8x32xf32>
    %268 = arith.mulf %267, %267 : vector<8x32xf32>
    %cst_125 = arith.constant dense<0.000000e+00> : vector<8xf32>
    %269 = vector.multi_reduction <add>, %268, %cst_125 [1] : vector<8x32xf32> to vector<8xf32>
    %270 = vector.shape_cast %269 : vector<8xf32> to vector<8x1xf32>
    %cst_126 = arith.constant 3.200000e+01 : f32
    %271 = vector.broadcast %cst_126 : f32 to vector<8x1xf32>
    %272 = arith.divf %270, %271 : vector<8x1xf32>
    %cst_127 = arith.constant 9.99999974E-6 : f32
    %273 = vector.broadcast %cst_127 : f32 to vector<8x1xf32>
    %274 = arith.addf %272, %273 : vector<8x1xf32>
    %275 = math.rsqrt %274 : vector<8x1xf32>
    %276 = vector.broadcast %275 : vector<8x1xf32> to vector<8x32xf32>
    %277 = arith.mulf %267, %276 : vector<8x32xf32>
    %278 = vector.broadcast %260 : vector<1x32xf32> to vector<8x32xf32>
    %279 = arith.mulf %277, %278 : vector<8x32xf32>
    %280 = vector.broadcast %261 : vector<1x32xf32> to vector<8x32xf32>
    %281 = arith.addf %279, %280 : vector<8x32xf32>
    %282 = arith.truncf %281 : vector<8x32xf32> to vector<8x32xbf16>
    %c0_128 = arith.constant 0 : index
    %c0_129 = arith.constant 0 : index
    %283 = vector.load %arg14[%c0_128, %c0_129] : memref<32x64xbf16, #tpu.memory_space<vmem>>, vector<32x64xbf16>
    %c0_130 = arith.constant 0 : index
    %c0_131 = arith.constant 0 : index
    %284 = vector.load %arg15[%c0_130, %c0_131] : memref<1x64xf32, #tpu.memory_space<vmem>>, vector<1x64xf32>
    %c0_132 = arith.constant 0 : index
    %c0_133 = arith.constant 0 : index
    %285 = vector.load %arg18[%c0_132, %c0_133] : memref<1x32xf32, #tpu.memory_space<vmem>>, vector<1x32xf32>
    %286 = vector.extract_strided_slice %283 {offsets = [0, 0], sizes = [32, 32], strides = [1, 1]} : vector<32x64xbf16> to vector<32x32xbf16>
    %cst_134 = arith.constant dense<0.000000e+00> : vector<8x32xf32>
    %287 = tpu.matmul %282, %286, %cst_134 {dimension_numbers = #tpu.dot_dimension_numbers<[1], [0], [0], [1], [0, 0, 1, 1], [], []>} : vector<8x32xbf16>, vector<32x32xbf16>, vector<8x32xf32> -> vector<8x32xf32>
    %288 = vector.extract_strided_slice %284 {offsets = [0, 0], sizes = [1, 32], strides = [1, 1]} : vector<1x64xf32> to vector<1x32xf32>
    %289 = vector.broadcast %288 : vector<1x32xf32> to vector<8x32xf32>
    %290 = arith.addf %287, %289 : vector<8x32xf32>
    %291 = vector.extract_strided_slice %283 {offsets = [0, 32], sizes = [32, 32], strides = [1, 1]} : vector<32x64xbf16> to vector<32x32xbf16>
    %cst_135 = arith.constant dense<0.000000e+00> : vector<8x32xf32>
    %292 = tpu.matmul %4, %291, %cst_135 {dimension_numbers = #tpu.dot_dimension_numbers<[1], [0], [0], [1], [0, 0, 1, 1], [], []>} : vector<8x32xbf16>, vector<32x32xbf16>, vector<8x32xf32> -> vector<8x32xf32>
    %293 = vector.extract_strided_slice %284 {offsets = [0, 32], sizes = [1, 32], strides = [1, 1]} : vector<1x64xf32> to vector<1x32xf32>
    %294 = vector.broadcast %293 : vector<1x32xf32> to vector<8x32xf32>
    %295 = arith.addf %292, %294 : vector<8x32xf32>
    %296 = arith.truncf %290 : vector<8x32xf32> to vector<8x32xbf16>
    %297 = arith.truncf %295 : vector<8x32xf32> to vector<8x32xbf16>
    %cst_136 = arith.constant 0.000000e+00 : f32
    %298 = vector.broadcast %cst_136 : f32 to vector<8x32xf32>
    %299 = vector.extract_strided_slice %296 {offsets = [0, 0], sizes = [8, 8], strides = [1, 1]} : vector<8x32xbf16> to vector<8x8xbf16>
    %300 = vector.extract_strided_slice %297 {offsets = [0, 0], sizes = [8, 8], strides = [1, 1]} : vector<8x32xbf16> to vector<8x8xbf16>
    %cst_137 = arith.constant dense<0.000000e+00> : vector<8x8xf32>
    %301 = tpu.matmul %299, %300, %cst_137 {dimension_numbers = #tpu.dot_dimension_numbers<[1], [1], [0], [0], [0, 0, 1, 0], [], []>} : vector<8x8xbf16>, vector<8x8xbf16>, vector<8x8xf32> -> vector<8x8xf32>
    %cst_138 = arith.constant dense<0xFF800000> : vector<8xf32>
    %302 = vector.multi_reduction <maximumf>, %301, %cst_138 [1] : vector<8x8xf32> to vector<8xf32>
    %303 = vector.shape_cast %302 : vector<8xf32> to vector<8x1xf32>
    %304 = vector.broadcast %303 : vector<8x1xf32> to vector<8x8xf32>
    %305 = arith.subf %301, %304 : vector<8x8xf32>
    %306 = math.exp %305 : vector<8x8xf32>
    %cst_139 = arith.constant dense<0.000000e+00> : vector<8xf32>
    %307 = vector.multi_reduction <add>, %306, %cst_139 [1] : vector<8x8xf32> to vector<8xf32>
    %308 = vector.shape_cast %307 : vector<8xf32> to vector<8x1xf32>
    %309 = tpu.reciprocal %308 {approx = true} : vector<8x1xf32> -> vector<8x1xf32>
    %310 = vector.broadcast %309 : vector<8x1xf32> to vector<8x8xf32>
    %311 = arith.mulf %306, %310 : vector<8x8xf32>
    %c0_140 = arith.constant 0 : index
    %c0_141 = arith.constant 0 : index
    %c0_142 = arith.constant 0 : index
    %312 = vector.load %arg16[%c0_140, %c0_141, %c0_142] : memref<4x32x32xbf16, #tpu.memory_space<vmem>>, vector<1x32x32xbf16>
    %313 = vector.shape_cast %312 : vector<1x32x32xbf16> to vector<32x32xbf16>
    %cst_143 = arith.constant dense<0.000000e+00> : vector<8x32xf32>
    %314 = tpu.matmul %4, %313, %cst_143 {dimension_numbers = #tpu.dot_dimension_numbers<[1], [0], [0], [1], [0, 0, 1, 1], [], []>} : vector<8x32xbf16>, vector<32x32xbf16>, vector<8x32xf32> -> vector<8x32xf32>
    %c0_144 = arith.constant 0 : index
    %c0_145 = arith.constant 0 : index
    %c0_146 = arith.constant 0 : index
    %315 = vector.load %arg17[%c0_144, %c0_145, %c0_146] : memref<4x1x32xf32, #tpu.memory_space<vmem>>, vector<1x1x32xf32>
    %316 = vector.shape_cast %315 : vector<1x1x32xf32> to vector<1x32xf32>
    %317 = vector.broadcast %316 : vector<1x32xf32> to vector<8x32xf32>
    %318 = arith.addf %314, %317 : vector<8x32xf32>
    %319 = arith.truncf %311 : vector<8x8xf32> to vector<8x8xbf16>
    %320 = arith.truncf %318 : vector<8x32xf32> to vector<8x32xbf16>
    %cst_147 = arith.constant dense<0.000000e+00> : vector<8x32xf32>
    %321 = tpu.matmul %319, %320, %cst_147 {dimension_numbers = #tpu.dot_dimension_numbers<[1], [0], [0], [1], [0, 0, 1, 1], [], []>} : vector<8x8xbf16>, vector<8x32xbf16>, vector<8x32xf32> -> vector<8x32xf32>
    %322 = arith.addf %298, %321 : vector<8x32xf32>
    %323 = vector.extract_strided_slice %296 {offsets = [0, 8], sizes = [8, 8], strides = [1, 1]} : vector<8x32xbf16> to vector<8x8xbf16>
    %324 = vector.extract_strided_slice %297 {offsets = [0, 8], sizes = [8, 8], strides = [1, 1]} : vector<8x32xbf16> to vector<8x8xbf16>
    %cst_148 = arith.constant dense<0.000000e+00> : vector<8x8xf32>
    %325 = tpu.matmul %323, %324, %cst_148 {dimension_numbers = #tpu.dot_dimension_numbers<[1], [1], [0], [0], [0, 0, 1, 0], [], []>} : vector<8x8xbf16>, vector<8x8xbf16>, vector<8x8xf32> -> vector<8x8xf32>
    %cst_149 = arith.constant dense<0xFF800000> : vector<8xf32>
    %326 = vector.multi_reduction <maximumf>, %325, %cst_149 [1] : vector<8x8xf32> to vector<8xf32>
    %327 = vector.shape_cast %326 : vector<8xf32> to vector<8x1xf32>
    %328 = vector.broadcast %327 : vector<8x1xf32> to vector<8x8xf32>
    %329 = arith.subf %325, %328 : vector<8x8xf32>
    %330 = math.exp %329 : vector<8x8xf32>
    %cst_150 = arith.constant dense<0.000000e+00> : vector<8xf32>
    %331 = vector.multi_reduction <add>, %330, %cst_150 [1] : vector<8x8xf32> to vector<8xf32>
    %332 = vector.shape_cast %331 : vector<8xf32> to vector<8x1xf32>
    %333 = tpu.reciprocal %332 {approx = true} : vector<8x1xf32> -> vector<8x1xf32>
    %334 = vector.broadcast %333 : vector<8x1xf32> to vector<8x8xf32>
    %335 = arith.mulf %330, %334 : vector<8x8xf32>
    %c1_151 = arith.constant 1 : index
    %c0_152 = arith.constant 0 : index
    %c0_153 = arith.constant 0 : index
    %336 = vector.load %arg16[%c1_151, %c0_152, %c0_153] : memref<4x32x32xbf16, #tpu.memory_space<vmem>>, vector<1x32x32xbf16>
    %337 = vector.shape_cast %336 : vector<1x32x32xbf16> to vector<32x32xbf16>
    %cst_154 = arith.constant dense<0.000000e+00> : vector<8x32xf32>
    %338 = tpu.matmul %4, %337, %cst_154 {dimension_numbers = #tpu.dot_dimension_numbers<[1], [0], [0], [1], [0, 0, 1, 1], [], []>} : vector<8x32xbf16>, vector<32x32xbf16>, vector<8x32xf32> -> vector<8x32xf32>
    %c1_155 = arith.constant 1 : index
    %c0_156 = arith.constant 0 : index
    %c0_157 = arith.constant 0 : index
    %339 = vector.load %arg17[%c1_155, %c0_156, %c0_157] : memref<4x1x32xf32, #tpu.memory_space<vmem>>, vector<1x1x32xf32>
    %340 = vector.shape_cast %339 : vector<1x1x32xf32> to vector<1x32xf32>
    %341 = vector.broadcast %340 : vector<1x32xf32> to vector<8x32xf32>
    %342 = arith.addf %338, %341 : vector<8x32xf32>
    %343 = arith.truncf %335 : vector<8x8xf32> to vector<8x8xbf16>
    %344 = arith.truncf %342 : vector<8x32xf32> to vector<8x32xbf16>
    %cst_158 = arith.constant dense<0.000000e+00> : vector<8x32xf32>
    %345 = tpu.matmul %343, %344, %cst_158 {dimension_numbers = #tpu.dot_dimension_numbers<[1], [0], [0], [1], [0, 0, 1, 1], [], []>} : vector<8x8xbf16>, vector<8x32xbf16>, vector<8x32xf32> -> vector<8x32xf32>
    %346 = arith.addf %322, %345 : vector<8x32xf32>
    %347 = vector.extract_strided_slice %296 {offsets = [0, 16], sizes = [8, 8], strides = [1, 1]} : vector<8x32xbf16> to vector<8x8xbf16>
    %348 = vector.extract_strided_slice %297 {offsets = [0, 16], sizes = [8, 8], strides = [1, 1]} : vector<8x32xbf16> to vector<8x8xbf16>
    %cst_159 = arith.constant dense<0.000000e+00> : vector<8x8xf32>
    %349 = tpu.matmul %347, %348, %cst_159 {dimension_numbers = #tpu.dot_dimension_numbers<[1], [1], [0], [0], [0, 0, 1, 0], [], []>} : vector<8x8xbf16>, vector<8x8xbf16>, vector<8x8xf32> -> vector<8x8xf32>
    %cst_160 = arith.constant dense<0xFF800000> : vector<8xf32>
    %350 = vector.multi_reduction <maximumf>, %349, %cst_160 [1] : vector<8x8xf32> to vector<8xf32>
    %351 = vector.shape_cast %350 : vector<8xf32> to vector<8x1xf32>
    %352 = vector.broadcast %351 : vector<8x1xf32> to vector<8x8xf32>
    %353 = arith.subf %349, %352 : vector<8x8xf32>
    %354 = math.exp %353 : vector<8x8xf32>
    %cst_161 = arith.constant dense<0.000000e+00> : vector<8xf32>
    %355 = vector.multi_reduction <add>, %354, %cst_161 [1] : vector<8x8xf32> to vector<8xf32>
    %356 = vector.shape_cast %355 : vector<8xf32> to vector<8x1xf32>
    %357 = tpu.reciprocal %356 {approx = true} : vector<8x1xf32> -> vector<8x1xf32>
    %358 = vector.broadcast %357 : vector<8x1xf32> to vector<8x8xf32>
    %359 = arith.mulf %354, %358 : vector<8x8xf32>
    %c2_162 = arith.constant 2 : index
    %c0_163 = arith.constant 0 : index
    %c0_164 = arith.constant 0 : index
    %360 = vector.load %arg16[%c2_162, %c0_163, %c0_164] : memref<4x32x32xbf16, #tpu.memory_space<vmem>>, vector<1x32x32xbf16>
    %361 = vector.shape_cast %360 : vector<1x32x32xbf16> to vector<32x32xbf16>
    %cst_165 = arith.constant dense<0.000000e+00> : vector<8x32xf32>
    %362 = tpu.matmul %4, %361, %cst_165 {dimension_numbers = #tpu.dot_dimension_numbers<[1], [0], [0], [1], [0, 0, 1, 1], [], []>} : vector<8x32xbf16>, vector<32x32xbf16>, vector<8x32xf32> -> vector<8x32xf32>
    %c2_166 = arith.constant 2 : index
    %c0_167 = arith.constant 0 : index
    %c0_168 = arith.constant 0 : index
    %363 = vector.load %arg17[%c2_166, %c0_167, %c0_168] : memref<4x1x32xf32, #tpu.memory_space<vmem>>, vector<1x1x32xf32>
    %364 = vector.shape_cast %363 : vector<1x1x32xf32> to vector<1x32xf32>
    %365 = vector.broadcast %364 : vector<1x32xf32> to vector<8x32xf32>
    %366 = arith.addf %362, %365 : vector<8x32xf32>
    %367 = arith.truncf %359 : vector<8x8xf32> to vector<8x8xbf16>
    %368 = arith.truncf %366 : vector<8x32xf32> to vector<8x32xbf16>
    %cst_169 = arith.constant dense<0.000000e+00> : vector<8x32xf32>
    %369 = tpu.matmul %367, %368, %cst_169 {dimension_numbers = #tpu.dot_dimension_numbers<[1], [0], [0], [1], [0, 0, 1, 1], [], []>} : vector<8x8xbf16>, vector<8x32xbf16>, vector<8x32xf32> -> vector<8x32xf32>
    %370 = arith.addf %346, %369 : vector<8x32xf32>
    %371 = vector.extract_strided_slice %296 {offsets = [0, 24], sizes = [8, 8], strides = [1, 1]} : vector<8x32xbf16> to vector<8x8xbf16>
    %372 = vector.extract_strided_slice %297 {offsets = [0, 24], sizes = [8, 8], strides = [1, 1]} : vector<8x32xbf16> to vector<8x8xbf16>
    %cst_170 = arith.constant dense<0.000000e+00> : vector<8x8xf32>
    %373 = tpu.matmul %371, %372, %cst_170 {dimension_numbers = #tpu.dot_dimension_numbers<[1], [1], [0], [0], [0, 0, 1, 0], [], []>} : vector<8x8xbf16>, vector<8x8xbf16>, vector<8x8xf32> -> vector<8x8xf32>
    %cst_171 = arith.constant dense<0xFF800000> : vector<8xf32>
    %374 = vector.multi_reduction <maximumf>, %373, %cst_171 [1] : vector<8x8xf32> to vector<8xf32>
    %375 = vector.shape_cast %374 : vector<8xf32> to vector<8x1xf32>
    %376 = vector.broadcast %375 : vector<8x1xf32> to vector<8x8xf32>
    %377 = arith.subf %373, %376 : vector<8x8xf32>
    %378 = math.exp %377 : vector<8x8xf32>
    %cst_172 = arith.constant dense<0.000000e+00> : vector<8xf32>
    %379 = vector.multi_reduction <add>, %378, %cst_172 [1] : vector<8x8xf32> to vector<8xf32>
    %380 = vector.shape_cast %379 : vector<8xf32> to vector<8x1xf32>
    %381 = tpu.reciprocal %380 {approx = true} : vector<8x1xf32> -> vector<8x1xf32>
    %382 = vector.broadcast %381 : vector<8x1xf32> to vector<8x8xf32>
    %383 = arith.mulf %378, %382 : vector<8x8xf32>
    %c3_173 = arith.constant 3 : index
    %c0_174 = arith.constant 0 : index
    %c0_175 = arith.constant 0 : index
    %384 = vector.load %arg16[%c3_173, %c0_174, %c0_175] : memref<4x32x32xbf16, #tpu.memory_space<vmem>>, vector<1x32x32xbf16>
    %385 = vector.shape_cast %384 : vector<1x32x32xbf16> to vector<32x32xbf16>
    %cst_176 = arith.constant dense<0.000000e+00> : vector<8x32xf32>
    %386 = tpu.matmul %4, %385, %cst_176 {dimension_numbers = #tpu.dot_dimension_numbers<[1], [0], [0], [1], [0, 0, 1, 1], [], []>} : vector<8x32xbf16>, vector<32x32xbf16>, vector<8x32xf32> -> vector<8x32xf32>
    %c3_177 = arith.constant 3 : index
    %c0_178 = arith.constant 0 : index
    %c0_179 = arith.constant 0 : index
    %387 = vector.load %arg17[%c3_177, %c0_178, %c0_179] : memref<4x1x32xf32, #tpu.memory_space<vmem>>, vector<1x1x32xf32>
    %388 = vector.shape_cast %387 : vector<1x1x32xf32> to vector<1x32xf32>
    %389 = vector.broadcast %388 : vector<1x32xf32> to vector<8x32xf32>
    %390 = arith.addf %386, %389 : vector<8x32xf32>
    %391 = arith.truncf %383 : vector<8x8xf32> to vector<8x8xbf16>
    %392 = arith.truncf %390 : vector<8x32xf32> to vector<8x32xbf16>
    %cst_180 = arith.constant dense<0.000000e+00> : vector<8x32xf32>
    %393 = tpu.matmul %391, %392, %cst_180 {dimension_numbers = #tpu.dot_dimension_numbers<[1], [0], [0], [1], [0, 0, 1, 1], [], []>} : vector<8x8xbf16>, vector<8x32xbf16>, vector<8x32xf32> -> vector<8x32xf32>
    %394 = arith.addf %370, %393 : vector<8x32xf32>
    %395 = vector.broadcast %285 : vector<1x32xf32> to vector<8x32xf32>
    %396 = arith.addf %394, %395 : vector<8x32xf32>
    %397 = arith.addf %281, %396 : vector<8x32xf32>
    %c0_181 = arith.constant 0 : index
    %c0_182 = arith.constant 0 : index
    %398 = vector.load %arg27[%c0_181, %c0_182] : memref<1x32xf32, #tpu.memory_space<vmem>>, vector<1x32xf32>
    %c0_183 = arith.constant 0 : index
    %c0_184 = arith.constant 0 : index
    %399 = vector.load %arg28[%c0_183, %c0_184] : memref<1x32xf32, #tpu.memory_space<vmem>>, vector<1x32xf32>
    %cst_185 = arith.constant dense<0.000000e+00> : vector<8xf32>
    %400 = vector.multi_reduction <add>, %397, %cst_185 [1] : vector<8x32xf32> to vector<8xf32>
    %401 = vector.shape_cast %400 : vector<8xf32> to vector<8x1xf32>
    %cst_186 = arith.constant 3.200000e+01 : f32
    %402 = vector.broadcast %cst_186 : f32 to vector<8x1xf32>
    %403 = arith.divf %401, %402 : vector<8x1xf32>
    %404 = vector.broadcast %403 : vector<8x1xf32> to vector<8x32xf32>
    %405 = arith.subf %397, %404 : vector<8x32xf32>
    %406 = arith.mulf %405, %405 : vector<8x32xf32>
    %cst_187 = arith.constant dense<0.000000e+00> : vector<8xf32>
    %407 = vector.multi_reduction <add>, %406, %cst_187 [1] : vector<8x32xf32> to vector<8xf32>
    %408 = vector.shape_cast %407 : vector<8xf32> to vector<8x1xf32>
    %cst_188 = arith.constant 3.200000e+01 : f32
    %409 = vector.broadcast %cst_188 : f32 to vector<8x1xf32>
    %410 = arith.divf %408, %409 : vector<8x1xf32>
    %cst_189 = arith.constant 9.99999974E-6 : f32
    %411 = vector.broadcast %cst_189 : f32 to vector<8x1xf32>
    %412 = arith.addf %410, %411 : vector<8x1xf32>
    %413 = math.rsqrt %412 : vector<8x1xf32>
    %414 = vector.broadcast %413 : vector<8x1xf32> to vector<8x32xf32>
    %415 = arith.mulf %405, %414 : vector<8x32xf32>
    %416 = vector.broadcast %398 : vector<1x32xf32> to vector<8x32xf32>
    %417 = arith.mulf %415, %416 : vector<8x32xf32>
    %418 = vector.broadcast %399 : vector<1x32xf32> to vector<8x32xf32>
    %419 = arith.addf %417, %418 : vector<8x32xf32>
    %420 = arith.truncf %419 : vector<8x32xf32> to vector<8x32xbf16>
    %c0_190 = arith.constant 0 : index
    %c0_191 = arith.constant 0 : index
    %421 = vector.load %arg19[%c0_190, %c0_191] : memref<32x64xbf16, #tpu.memory_space<vmem>>, vector<32x64xbf16>
    %cst_192 = arith.constant dense<0.000000e+00> : vector<8x64xf32>
    %422 = tpu.matmul %420, %421, %cst_192 {dimension_numbers = #tpu.dot_dimension_numbers<[1], [0], [0], [1], [0, 0, 1, 1], [], []>} : vector<8x32xbf16>, vector<32x64xbf16>, vector<8x64xf32> -> vector<8x64xf32>
    %c0_193 = arith.constant 0 : index
    %c0_194 = arith.constant 0 : index
    %423 = vector.load %arg20[%c0_193, %c0_194] : memref<1x64xf32, #tpu.memory_space<vmem>>, vector<1x64xf32>
    %424 = vector.broadcast %423 : vector<1x64xf32> to vector<8x64xf32>
    %425 = arith.addf %422, %424 : vector<8x64xf32>
    %cst_195 = arith.constant 0.000000e+00 : f32
    %426 = vector.broadcast %cst_195 : f32 to vector<8x64xf32>
    %427 = arith.maximumf %425, %426 : vector<8x64xf32>
    %428 = arith.truncf %427 : vector<8x64xf32> to vector<8x64xbf16>
    %c0_196 = arith.constant 0 : index
    %c0_197 = arith.constant 0 : index
    %429 = vector.load %arg21[%c0_196, %c0_197] : memref<64x32xbf16, #tpu.memory_space<vmem>>, vector<64x32xbf16>
    %cst_198 = arith.constant dense<0.000000e+00> : vector<8x32xf32>
    %430 = tpu.matmul %428, %429, %cst_198 {dimension_numbers = #tpu.dot_dimension_numbers<[1], [0], [0], [1], [0, 0, 1, 1], [], []>} : vector<8x64xbf16>, vector<64x32xbf16>, vector<8x32xf32> -> vector<8x32xf32>
    %c0_199 = arith.constant 0 : index
    %c0_200 = arith.constant 0 : index
    %431 = vector.load %arg22[%c0_199, %c0_200] : memref<1x32xf32, #tpu.memory_space<vmem>>, vector<1x32xf32>
    %432 = vector.broadcast %431 : vector<1x32xf32> to vector<8x32xf32>
    %433 = arith.addf %430, %432 : vector<8x32xf32>
    %434 = arith.addf %419, %433 : vector<8x32xf32>
    %c0_201 = arith.constant 0 : index
    %c0_202 = arith.constant 0 : index
    %435 = vector.load %arg29[%c0_201, %c0_202] : memref<1x32xf32, #tpu.memory_space<vmem>>, vector<1x32xf32>
    %c0_203 = arith.constant 0 : index
    %c0_204 = arith.constant 0 : index
    %436 = vector.load %arg30[%c0_203, %c0_204] : memref<1x32xf32, #tpu.memory_space<vmem>>, vector<1x32xf32>
    %cst_205 = arith.constant dense<0.000000e+00> : vector<8xf32>
    %437 = vector.multi_reduction <add>, %434, %cst_205 [1] : vector<8x32xf32> to vector<8xf32>
    %438 = vector.shape_cast %437 : vector<8xf32> to vector<8x1xf32>
    %cst_206 = arith.constant 3.200000e+01 : f32
    %439 = vector.broadcast %cst_206 : f32 to vector<8x1xf32>
    %440 = arith.divf %438, %439 : vector<8x1xf32>
    %441 = vector.broadcast %440 : vector<8x1xf32> to vector<8x32xf32>
    %442 = arith.subf %434, %441 : vector<8x32xf32>
    %443 = arith.mulf %442, %442 : vector<8x32xf32>
    %cst_207 = arith.constant dense<0.000000e+00> : vector<8xf32>
    %444 = vector.multi_reduction <add>, %443, %cst_207 [1] : vector<8x32xf32> to vector<8xf32>
    %445 = vector.shape_cast %444 : vector<8xf32> to vector<8x1xf32>
    %cst_208 = arith.constant 3.200000e+01 : f32
    %446 = vector.broadcast %cst_208 : f32 to vector<8x1xf32>
    %447 = arith.divf %445, %446 : vector<8x1xf32>
    %cst_209 = arith.constant 9.99999974E-6 : f32
    %448 = vector.broadcast %cst_209 : f32 to vector<8x1xf32>
    %449 = arith.addf %447, %448 : vector<8x1xf32>
    %450 = math.rsqrt %449 : vector<8x1xf32>
    %451 = vector.broadcast %450 : vector<8x1xf32> to vector<8x32xf32>
    %452 = arith.mulf %442, %451 : vector<8x32xf32>
    %453 = vector.broadcast %435 : vector<1x32xf32> to vector<8x32xf32>
    %454 = arith.mulf %452, %453 : vector<8x32xf32>
    %455 = vector.broadcast %436 : vector<1x32xf32> to vector<8x32xf32>
    %456 = arith.addf %454, %455 : vector<8x32xf32>
    %c0_210 = arith.constant 0 : index
    %c0_211 = arith.constant 0 : index
    %c0_212 = arith.constant 0 : index
    %457 = vector.load %arg31[%c0_210, %c0_211, %c0_212] : memref<1x8x32xf32, #tpu.memory_space<vmem>>, vector<1x8x32xf32>
    %458 = vector.shape_cast %457 : vector<1x8x32xf32> to vector<8x32xf32>
    %459 = vector.shape_cast %456 : vector<8x32xf32> to vector<1x8x32xf32>
    tpu.vector_store %arg31[%c0_210, %c0_211, %c0_212], %459 {strides = array<i32>} : memref<1x8x32xf32, #tpu.memory_space<vmem>>, vector<1x8x32xf32>,
    return
  }
  func.func @transform_0(%arg0: i32) -> (i32, i32, i32) {
    %c0_i32 = arith.constant 0 : i32
    %c0_i32_0 = arith.constant 0 : i32
    %c0_i32_1 = arith.constant 0 : i32
    return %arg0, %c0_i32, %c0_i32_0 : i32, i32, i32
  }
  func.func @transform_1(%arg0: i32) -> (i32, i32, i32) {
    %c0_i32 = arith.constant 0 : i32
    %c0_i32_0 = arith.constant 0 : i32
    %c0_i32_1 = arith.constant 0 : i32
    return %arg0, %c0_i32, %c0_i32_0 : i32, i32, i32
  }
  func.func @transform_2(%arg0: i32) -> (i32, i32, i32) {
    %c0_i32 = arith.constant 0 : i32
    %c0_i32_0 = arith.constant 0 : i32
    %c0_i32_1 = arith.constant 0 : i32
    return %arg0, %c0_i32, %c0_i32_0 : i32, i32, i32
  }
  func.func @transform_3(%arg0: i32) -> (i32, i32) {
    %c0_i32 = arith.constant 0 : i32
    %c0_i32_0 = arith.constant 0 : i32
    %c0_i32_1 = arith.constant 0 : i32
    return %c0_i32, %c0_i32_0 : i32, i32
  }
  func.func @transform_4(%arg0: i32) -> (i32, i32) {
    %c0_i32 = arith.constant 0 : i32
    %c0_i32_0 = arith.constant 0 : i32
    %c0_i32_1 = arith.constant 0 : i32
    return %c0_i32, %c0_i32_0 : i32, i32
  }
  func.func @transform_5(%arg0: i32) -> (i32, i32, i32) {
    %c0_i32 = arith.constant 0 : i32
    %c0_i32_0 = arith.constant 0 : i32
    %c0_i32_1 = arith.constant 0 : i32
    %c0_i32_2 = arith.constant 0 : i32
    return %c0_i32, %c0_i32_0, %c0_i32_1 : i32, i32, i32
  }
  func.func @transform_6(%arg0: i32) -> (i32, i32, i32) {
    %c0_i32 = arith.constant 0 : i32
    %c0_i32_0 = arith.constant 0 : i32
    %c0_i32_1 = arith.constant 0 : i32
    %c0_i32_2 = arith.constant 0 : i32
    return %c0_i32, %c0_i32_0, %c0_i32_1 : i32, i32, i32
  }
  func.func @transform_7(%arg0: i32) -> (i32, i32) {
    %c0_i32 = arith.constant 0 : i32
    %c0_i32_0 = arith.constant 0 : i32
    %c0_i32_1 = arith.constant 0 : i32
    return %c0_i32, %c0_i32_0 : i32, i32
  }
  func.func @transform_8(%arg0: i32) -> (i32, i32) {
    %c0_i32 = arith.constant 0 : i32
    %c0_i32_0 = arith.constant 0 : i32
    %c0_i32_1 = arith.constant 0 : i32
    return %c0_i32, %c0_i32_0 : i32, i32
  }
  func.func @transform_9(%arg0: i32) -> (i32, i32) {
    %c0_i32 = arith.constant 0 : i32
    %c0_i32_0 = arith.constant 0 : i32
    %c0_i32_1 = arith.constant 0 : i32
    return %c0_i32, %c0_i32_0 : i32, i32
  }
  func.func @transform_10(%arg0: i32) -> (i32, i32, i32) {
    %c0_i32 = arith.constant 0 : i32
    %c0_i32_0 = arith.constant 0 : i32
    %c0_i32_1 = arith.constant 0 : i32
    %c0_i32_2 = arith.constant 0 : i32
    return %c0_i32, %c0_i32_0, %c0_i32_1 : i32, i32, i32
  }
  func.func @transform_11(%arg0: i32) -> (i32, i32, i32) {
    %c0_i32 = arith.constant 0 : i32
    %c0_i32_0 = arith.constant 0 : i32
    %c0_i32_1 = arith.constant 0 : i32
    %c0_i32_2 = arith.constant 0 : i32
    return %c0_i32, %c0_i32_0, %c0_i32_1 : i32, i32, i32
  }
  func.func @transform_12(%arg0: i32) -> (i32, i32) {
    %c0_i32 = arith.constant 0 : i32
    %c0_i32_0 = arith.constant 0 : i32
    %c0_i32_1 = arith.constant 0 : i32
    return %c0_i32, %c0_i32_0 : i32, i32
  }
  func.func @transform_13(%arg0: i32) -> (i32, i32) {
    %c0_i32 = arith.constant 0 : i32
    %c0_i32_0 = arith.constant 0 : i32
    %c0_i32_1 = arith.constant 0 : i32
    return %c0_i32, %c0_i32_0 : i32, i32
  }
  func.func @transform_14(%arg0: i32) -> (i32, i32) {
    %c0_i32 = arith.constant 0 : i32
    %c0_i32_0 = arith.constant 0 : i32
    %c0_i32_1 = arith.constant 0 : i32
    return %c0_i32, %c0_i32_0 : i32, i32
  }
  func.func @transform_15(%arg0: i32) -> (i32, i32, i32) {
    %c0_i32 = arith.constant 0 : i32
    %c0_i32_0 = arith.constant 0 : i32
    %c0_i32_1 = arith.constant 0 : i32
    %c0_i32_2 = arith.constant 0 : i32
    return %c0_i32, %c0_i32_0, %c0_i32_1 : i32, i32, i32
  }
  func.func @transform_16(%arg0: i32) -> (i32, i32, i32) {
    %c0_i32 = arith.constant 0 : i32
    %c0_i32_0 = arith.constant 0 : i32
    %c0_i32_1 = arith.constant 0 : i32
    %c0_i32_2 = arith.constant 0 : i32
    return %c0_i32, %c0_i32_0, %c0_i32_1 : i32, i32, i32
  }
  func.func @transform_17(%arg0: i32) -> (i32, i32) {
    %c0_i32 = arith.constant 0 : i32
    %c0_i32_0 = arith.constant 0 : i32
    %c0_i32_1 = arith.constant 0 : i32
    return %c0_i32, %c0_i32_0 : i32, i32
  }
  func.func @transform_18(%arg0: i32) -> (i32, i32) {
    %c0_i32 = arith.constant 0 : i32
    %c0_i32_0 = arith.constant 0 : i32
    %c0_i32_1 = arith.constant 0 : i32
    return %c0_i32, %c0_i32_0 : i32, i32
  }
  func.func @transform_19(%arg0: i32) -> (i32, i32) {
    %c0_i32 = arith.constant 0 : i32
    %c0_i32_0 = arith.constant 0 : i32
    %c0_i32_1 = arith.constant 0 : i32
    return %c0_i32, %c0_i32_0 : i32, i32
  }
  func.func @transform_20(%arg0: i32) -> (i32, i32) {
    %c0_i32 = arith.constant 0 : i32
    %c0_i32_0 = arith.constant 0 : i32
    %c0_i32_1 = arith.constant 0 : i32
    return %c0_i32, %c0_i32_0 : i32, i32
  }
  func.func @transform_21(%arg0: i32) -> (i32, i32) {
    %c0_i32 = arith.constant 0 : i32
    %c0_i32_0 = arith.constant 0 : i32
    %c0_i32_1 = arith.constant 0 : i32
    return %c0_i32, %c0_i32_0 : i32, i32
  }
  func.func @transform_22(%arg0: i32) -> (i32, i32) {
    %c0_i32 = arith.constant 0 : i32
    %c0_i32_0 = arith.constant 0 : i32
    %c0_i32_1 = arith.constant 0 : i32
    return %c0_i32, %c0_i32_0 : i32, i32
  }
  func.func @transform_23(%arg0: i32) -> (i32, i32) {
    %c0_i32 = arith.constant 0 : i32
    %c0_i32_0 = arith.constant 0 : i32
    %c0_i32_1 = arith.constant 0 : i32
    return %c0_i32, %c0_i32_0 : i32, i32
  }
  func.func @transform_24(%arg0: i32) -> (i32, i32) {
    %c0_i32 = arith.constant 0 : i32
    %c0_i32_0 = arith.constant 0 : i32
    %c0_i32_1 = arith.constant 0 : i32
    return %c0_i32, %c0_i32_0 : i32, i32
  }
  func.func @transform_25(%arg0: i32) -> (i32, i32) {
    %c0_i32 = arith.constant 0 : i32
    %c0_i32_0 = arith.constant 0 : i32
    %c0_i32_1 = arith.constant 0 : i32
    return %c0_i32, %c0_i32_0 : i32, i32
  }
  func.func @transform_26(%arg0: i32) -> (i32, i32) {
    %c0_i32 = arith.constant 0 : i32
    %c0_i32_0 = arith.constant 0 : i32
    %c0_i32_1 = arith.constant 0 : i32
    return %c0_i32, %c0_i32_0 : i32, i32
  }
  func.func @transform_27(%arg0: i32) -> (i32, i32) {
    %c0_i32 = arith.constant 0 : i32
    %c0_i32_0 = arith.constant 0 : i32
    %c0_i32_1 = arith.constant 0 : i32
    return %c0_i32, %c0_i32_0 : i32, i32
  }
  func.func @transform_28(%arg0: i32) -> (i32, i32) {
    %c0_i32 = arith.constant 0 : i32
    %c0_i32_0 = arith.constant 0 : i32
    %c0_i32_1 = arith.constant 0 : i32
    return %c0_i32, %c0_i32_0 : i32, i32
  }
  func.func @transform_29(%arg0: i32) -> (i32, i32) {
    %c0_i32 = arith.constant 0 : i32
    %c0_i32_0 = arith.constant 0 : i32
    %c0_i32_1 = arith.constant 0 : i32
    return %c0_i32, %c0_i32_0 : i32, i32
  }
  func.func @transform_30(%arg0: i32) -> (i32, i32, i32) {
    %c0_i32 = arith.constant 0 : i32
    %c0_i32_0 = arith.constant 0 : i32
    %c0_i32_1 = arith.constant 0 : i32
    return %arg0, %c0_i32, %c0_i32_0 : i32, i32, i32
  }
}

</mosaic_0001>

<bundles_post_ra>
// kernel: transformer_decoder_layer.1
= control target key start
LH: loop header
LB: loop body
LE: loop exit
PB: predicated region body
PF: predicated region fallthrough
CT: control target
= control target key end

     0   :  { %s5413_s6 = smov 1   ;;  %s5414_s10 = smov 2   ;;  %s6318_s0 = inlined_call_operand.smem [shape: u32[31], index: -1, kind: input, shape index: {}] }
   0x1   :  { %s5474_s5 = sld [smem:[%s6318_s0]]   ;;  %s5415_s14 = smov 3  }
   0x2   :  { %s5479_s9 = sld [smem:[%s6318_s0 + %s5413_s6]]   ;;  %s5416_s18 = smov 4  }
   0x3   :  { %s5484_s13 = sld [smem:[%s6318_s0 + %s5414_s10]]   ;;  %s5417_s22 = smov 5  }
   0x4   :  { %s5489_s17 = sld [smem:[%s6318_s0 + %s5415_s14]]   ;;  %s5418_s26 = smov 6  }
   0x5   :  { %s5494_s21 = sld [smem:[%s6318_s0 + %s5416_s18]]   ;;  %s5419_s30 = smov 7  }
   0x6   :  { %s5499_s25 = sld [smem:[%s6318_s0 + %s5417_s22]]   ;;  %s5420_s4 = smov 8  }
   0x7   :  { %s5504_s29 = sld [smem:[%s6318_s0 + %s5418_s26]]   ;;  %s5421_s10 = smov 9  }
   0x8   :  { %6334 = sst [smem:[#allocation29_spill]] %s5479_s9  ;;  %s5422_s15 = smov 10  }
   0x9   :  { %s5509_s3 = sld [smem:[%s6318_s0 + %s5419_s30]]   ;;  %s5423_s20 = smov 11  }
   0xa   :  { %6335 = sst [smem:[#allocation30_spill]] %s5489_s17  ;;  %s5424_s26 = smov 12  }
   0xb   :  { %6336 = sst [smem:[#allocation31_spill]] %s5494_s21  ;;  %s5425_s1 = smov 13  }
   0xc   :  { %6337 = sst [smem:[#allocation32_spill]] %s5499_s25  ;;  %s5426_s7 = smov 14  }
   0xd   :  { %6338 = sst [smem:[#allocation33_spill]] %s5504_s29  ;;  %s5428_s22 = smov 16  }
   0xe   :  { %s5514_s8 = sld [smem:[%s6318_s0 + %s5420_s4]]   ;;  %s5429_s28 = smov 17  }
   0xf   :  { %6339 = sst [smem:[#allocation34_spill]] %s5509_s3 }
  0x10   :  { %s5519_s14 = sld [smem:[%s6318_s0 + %s5421_s10]]  }
  0x11   :  { %s5524_s19 = sld [smem:[%s6318_s0 + %s5422_s15]]   ;;  %s5427_s15 = smov 15  }
  0x12   :  { %s5529_s24 = sld [smem:[%s6318_s0 + %s5423_s20]]  }
  0x13   :  { %s5534_s30 = sld [smem:[%s6318_s0 + %s5424_s26]]  }
  0x14   :  { %6340 = sst [smem:[#allocation35_spill]] %s5514_s8 }
  0x15   :  { %s5539_s6 = sld [smem:[%s6318_s0 + %s5425_s1]]  }
  0x16   :  { %s5544_s12 = sld [smem:[%s6318_s0 + %s5426_s7]]   ;;  %s5430_s7 = smov 18  }
  0x17   :  { %6341 = sst [smem:[#allocation36_spill]] %s5524_s19 }
  0x18   :  { %6342 = sst [smem:[#allocation37_spill]] %s5529_s24 }
  0x19   :  { %s5549_s20 = sld [smem:[%s6318_s0 + %s5427_s15]]   ;;  %s5431_s15 = smov 19  }
  0x1a   :  { %s5554_s27 = sld [smem:[%s6318_s0 + %s5428_s22]]   ;;  %s5432_s22 = smov 20  }
  0x1b   :  { %s5559_s4 = sld [smem:[%s6318_s0 + %s5429_s28]]   ;;  %s5433_s28 = smov 21  }
  0x1c   :  { %s5564_s3 = sld [smem:[%s6318_s0 + %s5430_s7]]   ;;  %s5434_s7 = smov 22  }
  0x1d   :  { %s5569_s19 = sld [smem:[%s6318_s0 + %s5431_s15]]   ;;  %s5435_s15 = smov 23  }
  0x1e   :  { %s5574_s9 = sld [smem:[%s6318_s0 + %s5432_s22]]   ;;  %s5436_s22 = smov 24  }
  0x1f   :  { %s5579_s29 = sld [smem:[%s6318_s0 + %s5433_s28]]   ;;  %s5437_s28 = smov 25  }
  0x20   :  { %s5589_s25 = sld [smem:[%s6318_s0 + %s5435_s15]]   ;;  %s5439_s15 = smov 27  }
  0x21   :  { %s5599_s21 = sld [smem:[%s6318_s0 + %s5437_s28]]   ;;  %s5441_s28 = smov 29  }
  0x22   :  { %6343 = sst [smem:[#allocation38_spill]] %s5564_s3 }
  0x23   :  { %s5584_s3 = sld [smem:[%s6318_s0 + %s5434_s7]]   ;;  %s5438_s7 = smov 26  }
  0x24   :  { %6344 = sst [smem:[#allocation39_spill]] %s5574_s9 }
  0x25   :  { %s5594_s9 = sld [smem:[%s6318_s0 + %s5436_s22]]   ;;  %s5440_s22 = smov 28  }
  0x26   :  { %s5609_s17 = sld [smem:[%s6318_s0 + %s5439_s15]]  }
  0x27   :  { %6347 = sst [smem:[#allocation42_spill]] %s5599_s21 }
  0x28   :  { %s5619_s21 = sld [smem:[%s6318_s0 + %s5441_s28]]  }
  0x29   :  { %6345 = sst [smem:[#allocation40_spill]] %s5584_s3 }
  0x2a   :  { %s5604_s3 = sld [smem:[%s6318_s0 + %s5438_s7]]   ;;  %s5442_s7 = smov 30  }
  0x2b   :  { %6346 = sst [smem:[#allocation41_spill]] %s5594_s9 }
  0x2c   :  { %s5614_s9 = sld [smem:[%s6318_s0 + %s5440_s22]]  }
  0x2e   :  { %6349 = sst [smem:[#allocation44_spill]] %s5619_s21 }
  0x30   :  { %6348 = sst [smem:[#allocation43_spill]] %s5604_s3 }
  0x31   :  { %s5624_s3 = sld [smem:[%s6318_s0 + %s5442_s7]]  }
  0x37   :  { %6350 = sst [smem:[#allocation45_spill]] %s5624_s3 }
  0x38   :  { %66 = vsyncpa [#allocation3], 0 }
  0x39   :  { %68 = vsyncpa [#allocation3 + $0x1], 0 }
  0x3a   :  { %69 = vsyncpa [#allocation5], 0 }
  0x3b   :  { %70 = vsyncpa [#allocation8], 0 }
  0x3c   :  { %71 = vsyncpa [#allocation11], 0 }
  0x3d   :  { %72 = vsyncpa [#allocation14], 0 }
  0x3e   :  { %73 = vsyncpa [#allocation17], 0 }
  0x3f   :  { %74 = vsyncpa [#allocation20], 0  ;;  %s5626_s15 = smov 0   ;;  %s5628_s16 = smov 0  }
  0x40   :  { %s5630_s18 = smov 0   ;;  %s5632_s22 = smov 0  }
  0x41 LB: > { %s6351_s24 = sld [smem:[#allocation37_spill]]  ;;  %s6352_s8 = sld [smem:[#allocation35_spill]]  ;;  %s5403_s16 = sphi %s5628_s16, %s6392_s16   ;;  %s5399_s15 = sphi %s5626_s15, %s6391_s15   ;;  %s5411_s22 = sphi %s5632_s22, %s6394_s22   ;;  %s5407_s18 = sphi %s5630_s18, %s6393_s18  }
  0x42   : > { %s5443_s0 = smov [#allocation4]   ;;  %s5647_s26 = sadd.s32 4294967295, %s5411_s22  }
  0x43   : > { %s783_s23 = sshll.u32 %s5443_s0, 4  ;;  %p4111_p0 = scmp.ge.s32.totalorder %s5411_s22, 1  ;;  %s5652_s23 = int_to_ptr.vmem [resolvable:$true] %s783_s23 }
  0x44   : > { %p6325_p1 = scmp.eq.s32.totalorder %s5647_s26, 0  ;;  %p756_p2 = scmp.lt.s32.totalorder %s5411_s22, 3 }
  0x45   : > { %s5444_s1 = smov [#allocation7]   ;;  %s5445_s10 = smov [#allocation10]  }
  0x46   : > { %p5654_p3 = pnand %p4111_p0, %p756_p2  ;;  %s810_s2 = sshll.u32 %s5444_s1, 4  ;;  %s5666_s2 = int_to_ptr.vmem [resolvable:$true] %s810_s2 }
  0x47   : > { %s5668_s11 = sshll.u32 %s5445_s10, 4  ;;  %s4987_s0 = scalar_lea.hbm %s6352_s8, 256  ;;  %s835_s11 = int_to_ptr.vmem [resolvable:$true] %s5668_s11 }
  0x48   : > { %s6353_s28 = scalar_select %p5654_p3, 1, 0 }
  0x49   : > { %p4745_p4 = pneg %p5654_p3  ;;  %p4988_p6 = scmp.ne.s32.totalorder %s6352_s8, %s4987_s0 }
  0x4a   : > { %p4994_p10 = scmp.lt.u32.totalorder %s4987_s0, %s6352_s8 }
  0x4b   : > { %p5662_p5 = pnand %p4745_p4, %p6325_p1 }
  0x4d   : > { %p5674_p7 = pneg %p5662_p5 }
  0x4f   : > { %p4990_p8 = pnand %p5674_p7, %p4988_p6 }
  0x51   : > { %p4991_p9 = pneg %p4990_p8 }
  0x53   : > { %p4996_p11 = pnand %p4994_p10, %p4991_p9 }
  0x55   : > { %4999 = shalt.err (!%p4996_p11)
}
  0x56   : > { %s5000_s1 = scalar_lea.vmem %s5652_s23, 256  ;;  %p5008_p2 = scmp.lt.s32.totalorder %s5652_s23, %s5652_s23 }
  0x57   : > { %p5001_p12 = scmp.ne.s32.totalorder %s5652_s23, %s5000_s1  ;;  %p5009_p4 = scmp.lt.s32.totalorder %s5000_s1, %s5000_s1 }
  0x59   : > { %p5003_p13 = pnand %p5001_p12, %p5674_p7  ;;  %p5010_p1 = por %p5009_p4, %p5008_p2 }
  0x5b   : > { %p5004_p0 = pneg %p5003_p13 }
  0x5d   : > { %p5011_p3 = pnand %p5010_p1, %p5004_p0 }
  0x5f   : > { %5014 = shalt.err (!%p5011_p3)
}
  0x60   : > { %s6327_s10 = smov 64   ;;  %s5447_s0 = smov 4  }
  0x61   : > { %4748 = dma.hbm_to_vmem [thread:$0]  (!%p5662_p5), %s6352_s8, 256, %s5652_s23, [#allocation5], %s6327_s10, %s6327_s10, %s5447_s0  }
  0x62   : > { %s5015_s21 = scalar_lea.hbm %s6351_s24, 64 }
  0x63   : > { %p5016_p6 = scmp.ne.s32.totalorder %s6351_s24, %s5015_s21  ;;  %p5022_p3 = scmp.lt.u32.totalorder %s5015_s21, %s6351_s24 }
  0x65   : > { %p5018_p8 = pnand %p5016_p6, %p5674_p7 }
  0x67   : > { %p5019_p1 = pneg %p5018_p8 }
  0x69   : > { %p5024_p9 = pnand %p5022_p3, %p5019_p1 }
  0x6b   : > { %5027 = shalt.err (!%p5024_p9)
}
  0x6c   : > { %s5028_s1 = scalar_lea.vmem %s5666_s2, 64  ;;  %p5036_p13 = scmp.lt.s32.totalorder %s5666_s2, %s5666_s2 }
  0x6d   : > { %p5029_p10 = scmp.ne.s32.totalorder %s5666_s2, %s5028_s1  ;;  %p5037_p0 = scmp.lt.s32.totalorder %s5028_s1, %s5028_s1 }
  0x6f   : > { %p5031_p11 = pnand %p5029_p10, %p5674_p7  ;;  %p5038_p2 = por %p5037_p0, %p5036_p13 }
  0x71   : > { %p5032_p12 = pneg %p5031_p11 }
  0x73   : > { %p5039_p4 = pnand %p5038_p2, %p5032_p12 }
  0x75   : > { %5042 = shalt.err (!%p5039_p4)
}
  0x76   : > { %s6329_s23 = smov 16   ;;  %s6330_s21 = smov 1  }
  0x77   : > { %4754 = dma.hbm_to_vmem [thread:$0]  (!%p5662_p5), %s6351_s24, 64, %s5666_s2, [#allocation8], %s6329_s23, %s6329_s23, %s6330_s21  }
  0x78   : > { %s5043_s1 = scalar_lea.hbm %s5539_s6, 256 }
  0x79   : > { %p5044_p6 = scmp.ne.s32.totalorder %s5539_s6, %s5043_s1  ;;  %p5050_p3 = scmp.lt.u32.totalorder %s5043_s1, %s5539_s6 }
  0x7b   : > { %p5046_p8 = pnand %p5044_p6, %p5674_p7 }
  0x7d   : > { %p5047_p1 = pneg %p5046_p8 }
  0x7f   : > { %p5052_p9 = pnand %p5050_p3, %p5047_p1 }
  0x81   : > { %5055 = shalt.err (!%p5052_p9)
}
  0x82   : > { %s5056_s10 = scalar_lea.vmem %s835_s11, 256  ;;  %p5064_p13 = scmp.lt.s32.totalorder %s835_s11, %s835_s11 }
  0x83   : > { %p5057_p10 = scmp.ne.s32.totalorder %s835_s11, %s5056_s10  ;;  %p5065_p0 = scmp.lt.s32.totalorder %s5056_s10, %s5056_s10 }
  0x85   : > { %p5059_p11 = pnand %p5057_p10, %p5674_p7  ;;  %p5066_p2 = por %p5065_p0, %p5064_p13 }
  0x87   : > { %p5060_p12 = pneg %p5059_p11 }
  0x89   : > { %p5067_p4 = pnand %p5066_p2, %p5060_p12 }
  0x8b   : > { %5070 = shalt.err (!%p5067_p4)
}
  0x8c   : > { %s6356_s2 = smov 64   ;;  %s5450_s1 = smov [#allocation13]  }
  0x8d   : > { %4760 = dma.hbm_to_vmem [thread:$0]  (!%p5662_p5), %s5539_s6, 256, %s835_s11, [#allocation11], %s6356_s2, %s6356_s2, %s5447_s0  }
  0x8e   : > { %s858_s23 = sshll.u32 %s5450_s1, 4  ;;  %s5451_s21 = smov [#allocation16]   ;;  %s859_s23 = int_to_ptr.vmem [resolvable:$true] %s858_s23 }
  0x8f   : > { %s885_s8 = sshll.u32 %s5451_s21, 4  ;;  %s5071_s10 = scalar_lea.hbm %s5549_s20, 1024  ;;  %s886_s8 = int_to_ptr.vmem [resolvable:$true] %s885_s8 }
  0x90   : > { %p5072_p6 = scmp.ne.s32.totalorder %s5549_s20, %s5071_s10  ;;  %p5078_p3 = scmp.lt.u32.totalorder %s5071_s10, %s5549_s20 }
  0x92   : > { %p5074_p8 = pnand %p5072_p6, %p5674_p7 }
  0x94   : > { %p5075_p1 = pneg %p5074_p8 }
  0x96   : > { %p5080_p9 = pnand %p5078_p3, %p5075_p1 }
  0x98   : > { %5083 = shalt.err (!%p5080_p9)
}
  0x99   : > { %s5084_s24 = scalar_lea.vmem %s859_s23, 1024  ;;  %p5092_p13 = scmp.lt.s32.totalorder %s859_s23, %s859_s23 }
  0x9a   : > { %p5085_p10 = scmp.ne.s32.totalorder %s859_s23, %s5084_s24  ;;  %p5093_p0 = scmp.lt.s32.totalorder %s5084_s24, %s5084_s24 }
  0x9c   : > { %p5087_p11 = pnand %p5085_p10, %p5674_p7  ;;  %p5094_p2 = por %p5093_p0, %p5092_p13 }
  0x9e   : > { %p5088_p12 = pneg %p5087_p11 }
  0xa0   : > { %p5095_p4 = pnand %p5094_p2, %p5088_p12 }
  0xa2   : > { %5098 = shalt.err (!%p5095_p4)
}
  0xa3   : > { %4766 = dma.hbm_to_vmem [thread:$0]  (!%p5662_p5), %s5549_s20, 1024, %s859_s23, [#allocation14], %s6356_s2, %s6356_s2, %s5447_s0  }
  0xa4   : > { %s5099_s11 = scalar_lea.hbm %s5559_s4, 16 }
  0xa5   : > { %p5100_p6 = scmp.ne.s32.totalorder %s5559_s4, %s5099_s11  ;;  %p5106_p3 = scmp.lt.u32.totalorder %s5099_s11, %s5559_s4 }
  0xa7   : > { %p5102_p8 = pnand %p5100_p6, %p5674_p7 }
  0xa9   : > { %p5103_p1 = pneg %p5102_p8 }
  0xab   : > { %p5108_p9 = pnand %p5106_p3, %p5103_p1 }
  0xad   : > { %5111 = shalt.err (!%p5108_p9)
}
  0xae   : > { %s5112_s24 = scalar_lea.vmem %s886_s8, 16  ;;  %s5119_s21 = scalar_lea.vmem %s886_s8, 32 }
  0xaf   : > { %p5113_p10 = scmp.ne.s32.totalorder %s886_s8, %s5112_s24  ;;  %p5120_p13 = scmp.lt.s32.totalorder %s886_s8, %s886_s8 }
  0xb0   : > { %p5121_p0 = scmp.lt.s32.totalorder %s5119_s21, %s5112_s24 }
  0xb1   : > { %p5115_p11 = pnand %p5113_p10, %p5674_p7 }
  0xb2   : > { %p5122_p2 = por %p5121_p0, %p5120_p13 }
  0xb3   : > { %p5116_p12 = pneg %p5115_p11 }
  0xb5   : > { %p5123_p4 = pnand %p5122_p2, %p5116_p12 }
  0xb7   : > { %5126 = shalt.err (!%p5123_p4)
}
  0xb8   : > { %4772 = dma.hbm_to_vmem [thread:$0]  (!%p5662_p5), %s5559_s4, 16, %s886_s8, [#allocation17]  }
  0xb9   : > { %s5452_s0 = smov [#allocation19]   ;;  %s5453_s2 = smov [#allocation6]  }
  0xba   : > { %s913_s23 = sshll.u32 %s5452_s0, 4  ;;  %s797_s1 = sshll.u32 %s5453_s2, 4  ;;  %s914_s23 = int_to_ptr.vmem [resolvable:$true] %s913_s23  ;;  %s798_s1 = int_to_ptr.vmem [resolvable:$true] %s797_s1 }
  0xbb   : > { %s5127_s10 = scalar_lea.hbm %s5579_s29, 16 }
  0xbc   : > { %p5128_p6 = scmp.ne.s32.totalorder %s5579_s29, %s5127_s10  ;;  %p5134_p3 = scmp.lt.u32.totalorder %s5127_s10, %s5579_s29 }
  0xbe   : > { %p5130_p8 = pnand %p5128_p6, %p5674_p7 }
  0xc0   : > { %p5131_p1 = pneg %p5130_p8 }
  0xc2   : > { %p5136_p9 = pnand %p5134_p3, %p5131_p1 }
  0xc4   : > { %5139 = shalt.err (!%p5136_p9)
}
  0xc5   : > { %s5140_s11 = scalar_lea.vmem %s914_s23, 16  ;;  %s5147_s8 = scalar_lea.vmem %s914_s23, 32 }
  0xc6   : > { %p5141_p10 = scmp.ne.s32.totalorder %s914_s23, %s5140_s11  ;;  %p5148_p13 = scmp.lt.s32.totalorder %s914_s23, %s914_s23 }
  0xc7   : > { %p5149_p0 = scmp.lt.s32.totalorder %s5147_s8, %s5140_s11 }
  0xc8   : > { %p5143_p11 = pnand %p5141_p10, %p5674_p7 }
  0xc9   : > { %p5150_p2 = por %p5149_p0, %p5148_p13 }
  0xca   : > { %p5144_p12 = pneg %p5143_p11 }
  0xcc   : > { %p5151_p4 = pnand %p5150_p2, %p5144_p12 }
  0xce   : > { %5154 = shalt.err (!%p5151_p4)
}
  0xcf   : > { %4778 = dma.hbm_to_vmem [thread:$0]  (!%p5662_p5), %s5579_s29, 16, %s914_s23, [#allocation20]  }
  0xd0   : > { %s5155_s24 = scalar_lea.hbm %s5519_s14, 16 }
  0xd1   : > { %p5156_p6 = scmp.ne.s32.totalorder %s5519_s14, %s5155_s24  ;;  %p5162_p3 = scmp.lt.u32.totalorder %s5155_s24, %s5519_s14 }
  0xd3   : > { %p5158_p8 = pnand %p5156_p6, %p5674_p7 }
  0xd5   : > { %p5159_p1 = pneg %p5158_p8 }
  0xd7   : > { %p5164_p9 = pnand %p5162_p3, %p5159_p1 }
  0xd9   : > { %5167 = shalt.err (!%p5164_p9)
}
  0xda   : > { %s5168_s21 = scalar_lea.vmem %s798_s1, 16  ;;  %s5175_s0 = scalar_lea.vmem %s798_s1, 32 }
  0xdb   : > { %p5169_p10 = scmp.ne.s32.totalorder %s798_s1, %s5168_s21  ;;  %p5176_p13 = scmp.lt.s32.totalorder %s798_s1, %s798_s1 }
  0xdc   : > { %p5177_p0 = scmp.lt.s32.totalorder %s5175_s0, %s5168_s21 }
  0xdd   : > { %p5171_p11 = pnand %p5169_p10, %p5674_p7 }
  0xde   : > { %p5178_p2 = por %p5177_p0, %p5176_p13 }
  0xdf   : > { %p5172_p12 = pneg %p5171_p11 }
  0xe1   : > { %p5179_p4 = pnand %p5178_p2, %p5172_p12 }
  0xe3   : > { %5182 = shalt.err (!%p5179_p4)
}
  0xe4   : > { %4751 = dma.hbm_to_vmem [thread:$0]  (!%p5662_p5), %s5519_s14, 16, %s798_s1, [#allocation5]  }
  0xe5   : > { %s5454_s23 = smov [#allocation9]   ;;  %s5455_s10 = smov [#allocation12]  }
  0xe6   : > { %s824_s2 = sshll.u32 %s5454_s23, 4  ;;  %s848_s11 = sshll.u32 %s5455_s10, 4  ;;  %s825_s2 = int_to_ptr.vmem [resolvable:$true] %s824_s2  ;;  %s849_s11 = int_to_ptr.vmem [resolvable:$true] %s848_s11 }
  0xe7   : > { %s5183_s8 = scalar_lea.hbm %s5534_s30, 16 }
  0xe8   : > { %p5184_p6 = scmp.ne.s32.totalorder %s5534_s30, %s5183_s8  ;;  %p5190_p3 = scmp.lt.u32.totalorder %s5183_s8, %s5534_s30 }
  0xea   : > { %p5186_p8 = pnand %p5184_p6, %p5674_p7 }
  0xec   : > { %p5187_p1 = pneg %p5186_p8 }
  0xee   : > { %p5192_p9 = pnand %p5190_p3, %p5187_p1 }
  0xf0   : > { %5195 = shalt.err (!%p5192_p9)
}
  0xf1   : > { %s5196_s24 = scalar_lea.vmem %s825_s2, 16  ;;  %s5203_s1 = scalar_lea.vmem %s825_s2, 32 }
  0xf2   : > { %p5197_p10 = scmp.ne.s32.totalorder %s825_s2, %s5196_s24  ;;  %p5204_p13 = scmp.lt.s32.totalorder %s825_s2, %s825_s2 }
  0xf3   : > { %p5205_p0 = scmp.lt.s32.totalorder %s5203_s1, %s5196_s24 }
  0xf4   : > { %p5199_p11 = pnand %p5197_p10, %p5674_p7 }
  0xf5   : > { %p5206_p2 = por %p5205_p0, %p5204_p13 }
  0xf6   : > { %p5200_p12 = pneg %p5199_p11 }
  0xf8   : > { %p5207_p4 = pnand %p5206_p2, %p5200_p12 }
  0xfa   : > { %5210 = shalt.err (!%p5207_p4)
}
  0xfb   : > { %4757 = dma.hbm_to_vmem [thread:$0]  (!%p5662_p5), %s5534_s30, 16, %s825_s2, [#allocation8]  }
  0xfc   : > { %s5211_s21 = scalar_lea.hbm %s5544_s12, 16 }
  0xfd   : > { %p5212_p6 = scmp.ne.s32.totalorder %s5544_s12, %s5211_s21  ;;  %p5218_p3 = scmp.lt.u32.totalorder %s5211_s21, %s5544_s12 }
  0xff   : > { %p5214_p8 = pnand %p5212_p6, %p5674_p7 }
 0x101   : > { %p5215_p1 = pneg %p5214_p8 }
 0x103   : > { %p5220_p9 = pnand %p5218_p3, %p5215_p1 }
 0x105   : > { %5223 = shalt.err (!%p5220_p9)
}
 0x106   : > { %s5224_s0 = scalar_lea.vmem %s849_s11, 16  ;;  %s5231_s23 = scalar_lea.vmem %s849_s11, 32 }
 0x107   : > { %p5225_p10 = scmp.ne.s32.totalorder %s849_s11, %s5224_s0  ;;  %p5232_p13 = scmp.lt.s32.totalorder %s849_s11, %s849_s11 }
 0x108   : > { %p5233_p0 = scmp.lt.s32.totalorder %s5231_s23, %s5224_s0 }
 0x109   : > { %p5227_p11 = pnand %p5225_p10, %p5674_p7 }
 0x10a   : > { %p5234_p2 = por %p5233_p0, %p5232_p13 }
 0x10b   : > { %p5228_p12 = pneg %p5227_p11 }
 0x10d   : > { %p5235_p4 = pnand %p5234_p2, %p5228_p12 }
 0x10f   : > { %5238 = shalt.err (!%p5235_p4)
}
 0x110   : > { %4763 = dma.hbm_to_vmem [thread:$0]  (!%p5662_p5), %s5544_s12, 16, %s849_s11, [#allocation11]  }
 0x111   : > { %s5456_s2 = smov [#allocation15]   ;;  %s5457_s8 = smov [#allocation18]  }
 0x112   : > { %s871_s10 = sshll.u32 %s5456_s2, 4  ;;  %s899_s24 = sshll.u32 %s5457_s8, 4  ;;  %s872_s10 = int_to_ptr.vmem [resolvable:$true] %s871_s10  ;;  %s900_s24 = int_to_ptr.vmem [resolvable:$true] %s899_s24 }
 0x113   : > { %s5239_s1 = scalar_lea.hbm %s5554_s27, 64 }
 0x114   : > { %p5240_p6 = scmp.ne.s32.totalorder %s5554_s27, %s5239_s1  ;;  %p5246_p3 = scmp.lt.u32.totalorder %s5239_s1, %s5554_s27 }
 0x116   : > { %p5242_p8 = pnand %p5240_p6, %p5674_p7 }
 0x118   : > { %p5243_p1 = pneg %p5242_p8 }
 0x11a   : > { %p5248_p9 = pnand %p5246_p3, %p5243_p1 }
 0x11c   : > { %5251 = shalt.err (!%p5248_p9)
}
 0x11d   : > { %s5252_s21 = scalar_lea.vmem %s872_s10, 64  ;;  %p5260_p13 = scmp.lt.s32.totalorder %s872_s10, %s872_s10 }
 0x11e   : > { %p5253_p10 = scmp.ne.s32.totalorder %s872_s10, %s5252_s21  ;;  %p5261_p0 = scmp.lt.s32.totalorder %s5252_s21, %s5252_s21 }
 0x120   : > { %p5255_p11 = pnand %p5253_p10, %p5674_p7  ;;  %p5262_p2 = por %p5261_p0, %p5260_p13 }
 0x122   : > { %p5256_p12 = pneg %p5255_p11 }
 0x124   : > { %p5263_p4 = pnand %p5262_p2, %p5256_p12 }
 0x126   : > { %5266 = shalt.err (!%p5263_p4)
}
 0x127   : > { %s6357_s11 = smov 1   ;;  %s6358_s0 = smov 16  }
 0x128   : > { %4769 = dma.hbm_to_vmem [thread:$0]  (!%p5662_p5), %s5554_s27, 64, %s872_s10, [#allocation14], %s6358_s0, %s6358_s0, %s6357_s11  }
 0x129   : > { %s5267_s23 = scalar_lea.hbm %s5569_s19, 16 }
 0x12a   : > { %p5268_p6 = scmp.ne.s32.totalorder %s5569_s19, %s5267_s23  ;;  %p5274_p3 = scmp.lt.u32.totalorder %s5267_s23, %s5569_s19 }
 0x12c   : > { %p5270_p8 = pnand %p5268_p6, %p5674_p7 }
 0x12e   : > { %p5271_p1 = pneg %p5270_p8 }
 0x130   : > { %p5276_p9 = pnand %p5274_p3, %p5271_p1 }
 0x132   : > { %5279 = shalt.err (!%p5276_p9)
}
 0x133   : > { %s5280_s2 = scalar_lea.vmem %s900_s24, 16  ;;  %s5287_s8 = scalar_lea.vmem %s900_s24, 32 }
 0x134   : > { %p5281_p10 = scmp.ne.s32.totalorder %s900_s24, %s5280_s2  ;;  %p5288_p13 = scmp.lt.s32.totalorder %s900_s24, %s900_s24 }
 0x135   : > { %p5289_p0 = scmp.lt.s32.totalorder %s5287_s8, %s5280_s2 }
 0x136   : > { %p5283_p11 = pnand %p5281_p10, %p5674_p7 }
 0x137   : > { %p5290_p2 = por %p5289_p0, %p5288_p13 }
 0x138   : > { %p5284_p12 = pneg %p5283_p11 }
 0x13a   : > { %p5291_p4 = pnand %p5290_p2, %p5284_p12 }
 0x13c   : > { %5294 = shalt.err (!%p5291_p4)
}
 0x13d   : > { %4775 = dma.hbm_to_vmem [thread:$0]  (!%p5662_p5), %s5569_s19, 16, %s900_s24, [#allocation17]  }
 0x13e   : > { %s5458_s10 = smov [#allocation21]   ;;  %s5295_s21 = scalar_lea.hbm %s5589_s25, 16 }
 0x13f   : > { %s927_s1 = sshll.u32 %s5458_s10, 4  ;;  %p5296_p6 = scmp.ne.s32.totalorder %s5589_s25, %s5295_s21  ;;  %s928_s1 = int_to_ptr.vmem [resolvable:$true] %s927_s1 }
 0x140   : > { %p5302_p3 = scmp.lt.u32.totalorder %s5295_s21, %s5589_s25 }
 0x141   : > { %p5298_p8 = pnand %p5296_p6, %p5674_p7 }
 0x143   : > { %p5299_p1 = pneg %p5298_p8 }
 0x145   : > { %p5304_p9 = pnand %p5302_p3, %p5299_p1 }
 0x147   : > { %5307 = shalt.err (!%p5304_p9)
}
 0x148   : > { %s5308_s11 = scalar_lea.vmem %s928_s1, 16  ;;  %s5315_s0 = scalar_lea.vmem %s928_s1, 32 }
 0x149   : > { %p5309_p10 = scmp.ne.s32.totalorder %s928_s1, %s5308_s11  ;;  %p5316_p13 = scmp.lt.s32.totalorder %s928_s1, %s928_s1 }
 0x14a   : > { %p5317_p0 = scmp.lt.s32.totalorder %s5315_s0, %s5308_s11 }
 0x14b   : > { %p5311_p11 = pnand %p5309_p10, %p5674_p7 }
 0x14c   : > { %p5318_p2 = por %p5317_p0, %p5316_p13 }
 0x14d   : > { %p5312_p12 = pneg %p5311_p11 }
 0x14f   : > { %p5319_p4 = pnand %p5318_p2, %p5312_p12 }
 0x151   : > { %5322 = shalt.err (!%p5319_p4)
}
 0x152   : > { %4781 = dma.hbm_to_vmem [thread:$0]  (!%p5662_p5), %s5589_s25, 16, %s928_s1, [#allocation20]  }
 0x153   : > { %s5823_s3 = sadd.s32 1, %s5411_s22   ;;  %s139_s7 = sadd.s32 1, %s5407_s18 }
 0x154   : > { %s136_s24 = ssub.s32 %s5411_s22, %s5823_s3  ;;  %p146_p7 = scmp.ne.s32.totalorder %s5407_s18, %s5403_s16 }
 0x155   : > { %p137_p6 = scmp.eq.s32.totalorder %s136_s24, 0  ;;  %p147_p8 = scmp.eq.s32.totalorder %s5411_s22, 0 }
 0x156   : > { %p152_p1 = scmp.ne.s32.totalorder %s5403_s16, %s5399_s15  ;;  %p4798_p3 = scmp.lt.s32.totalorder %s5411_s22, 2 }
 0x157   : > { %s5835_s23 = scalar_select %p137_p6, %s5407_s18, %s139_s7  }
 0x158   : > { %p148_p9 = por %p147_p8, %p146_p7  ;;  %p6359_p10 = scmp.eq.s32.totalorder %s5647_s26, 0 }
 0x159   : > { %s970_s8 = sand.u32 1, %s5407_s18   ;;  %s4125_s10 = sshll.u32 %s5411_s22, 4 }
 0x15a   : > { %p5839_p11 = por %p6359_p10, %p152_p1  ;;  %s5846_s1 = scalar_lea.hbm %s5484_s13, %s4125_s10 }
 0x15b   : > { %s973_s15 = scalar_lea.vmem [#allocation2], %s970_s8  ;;  %p5850_p5 = pnand %p4798_p3, %p148_p9 }
 0x15c   : > { %s6360_s2 = scalar_select %p5839_p11, 1, 0 }
 0x15d   : > { %s980_s21 = sshll.u32 %s973_s15, 4  ;;  %s971_s0 = scalar_lea.sflag [#allocation3], %s970_s8  ;;  %s5848_s21 = int_to_ptr.vmem [resolvable:$true] %s980_s21 }
 0x15e   : > { %s5323_s7 = scalar_lea.hbm %s5846_s1, 16  ;;  %p5325_p13 = pneg %p5850_p5 }
 0x15f   : > { %p5324_p12 = scmp.ne.s32.totalorder %s5846_s1, %s5323_s7  ;;  %s5328_s22 = scalar_lea.hbm %s5484_s13, 32 }
 0x160   : > { %p5329_p4 = scmp.lt.u32.totalorder %s5846_s1, %s5484_s13  ;;  %p5330_p7 = scmp.lt.u32.totalorder %s5328_s22, %s5323_s7 }
 0x161   : > { %p5326_p0 = pnand %p5325_p13, %p5324_p12  ;;  %p5332_p8 = scmp.lt.u32.totalorder %s5323_s7, %s5846_s1 }
 0x162   : > { %p5331_p6 = por %p5330_p7, %p5329_p4 }
 0x163   : > { %p5327_p2 = pneg %p5326_p0 }
 0x164   : > { %p5333_p1 = por %p5332_p8, %p5331_p6 }
 0x166   : > { %p5334_p3 = pnand %p5333_p1, %p5327_p2 }
 0x168   : > { %5337 = shalt.err (!%p5334_p3)
}
 0x169   : > { %s5338_s24 = scalar_lea.vmem %s5848_s21, 16  ;;  %s5459_s8 = smov [#allocation2]  }
 0x16a   : > { %p5339_p9 = scmp.ne.s32.totalorder %s5848_s21, %s5338_s24  ;;  %s5343_s10 = sshll.u32 %s5459_s8, 4  ;;  %s5344_s10 = int_to_ptr.vmem [resolvable:$false] %s5343_s10 }
 0x16b   : > { %s5345_s15 = scalar_lea.vmem %s5344_s10, 32  ;;  %p5346_p12 = scmp.lt.s32.totalorder %s5848_s21, %s5344_s10 }
 0x16c   : > { %p5341_p10 = pnand %p5339_p9, %p5325_p13  ;;  %p5347_p0 = scmp.lt.s32.totalorder %s5345_s15, %s5338_s24 }
 0x16e   : > { %p5342_p11 = pneg %p5341_p10  ;;  %p5348_p4 = por %p5347_p0, %p5346_p12 }
 0x170   : > { %p5349_p7 = pnand %p5348_p4, %p5342_p11 }
 0x172   : > { %5352 = shalt.err (!%p5349_p7)
}
 0x173   : > { %4785 = dma.hbm_to_vmem [thread:$0]  (!%p5850_p5), %s5846_s1, 16, %s5848_s21, %s971_s0  }
 0x174   : > { %p6362_p2 = scmp.ne.s32.totalorder %s6353_s28, 0 }
 0x175   : > { %s991_s7 = sand.u32 (!%p6362_p2), 1, %s5403_s16   ;;  %p6363_p13 = scmp.ne.s32.totalorder (!%p6362_p2), %s6360_s2, 0 }
 0x176   : > { %989 = sbr.rel (%p6362_p2) target bundleno = 7240 (0x1c48), region = 140  ;;  %s992_s22 = scalar_lea.sflag (!%p6362_p2), [#allocation3], %s991_s7 }
 0x177   : > { %s5878_s8 = scalar_lea.vmem (!%p6362_p2), [#allocation2], %s991_s7 }
 0x17d   : > { %5370 = dma.done.wait (%p6363_p13), %s992_s22, 16  }
 0x17e   : > { %5372 = vsyncadd (%p6363_p13), %s992_s22, 4294967280  ;;  %p6364_p11 = scmp.eq.s32.totalorder %s5647_s26, 0 }
 0x180   : > { %5374 = dma.done.wait (%p6364_p11), [#allocation5], 272   ;;  %p6365_p6 = pmov %p6364_p11 }
 0x182   : > { %5376 = vsyncadd (%p6365_p6), [#allocation5], 4294967024  ;;  %p6366_p5 = pmov %p6365_p6 }
 0x184   : > { %5378 = dma.done.wait (%p6366_p5), [#allocation8], 80   ;;  %p6367_p8 = pmov %p6366_p5 }
 0x185   : > { %p6368_p1 = pmov %p6366_p5 }
 0x186   : > { %5380 = vsyncadd (%p6367_p8), [#allocation8], 4294967216 }
 0x187   : > { %5382 = dma.done.wait (%p6368_p1), [#allocation11], 272   ;;  %p6369_p3 = pmov %p6368_p1 }
 0x188   : > { %p6370_p9 = pmov %p6368_p1 }
 0x189   : > { %5384 = vsyncadd (%p6369_p3), [#allocation11], 4294967024 }
 0x18a   : > { %5386 = dma.done.wait (%p6370_p9), [#allocation14], 1088   ;;  %p6371_p10 = pmov %p6368_p1 }
 0x18b   : > { %p6372_p12 = pmov %p6368_p1 }
 0x18c   : > { %5388 = vsyncadd (%p6371_p10), [#allocation14], 4294966208 }
 0x18d   : > { %5390 = dma.done.wait (%p6372_p12), [#allocation17], 32   ;;  %p6373_p0 = pmov %p6368_p1 }
 0x18f   : > { %5392 = vsyncadd (%p6373_p0), [#allocation17], 4294967264  ;;  %p6374_p4 = pmov %p6373_p0 }
 0x190   : > { %p6375_p7 = pmov %p6373_p0 }
 0x191   : > { %5394 = dma.done.wait (%p6374_p4), [#allocation20], 32  }
 0x192   : > { %5396 = vsyncadd (%p6375_p7), [#allocation20], 4294967264  ;;  %s6376_s28 = sld [smem:[#allocation30_spill]]  ;;  %p1125_p2 = scmp.lt.s32.totalorder %s5647_s26, 1  ;;  %v5460_v0 = vmov 0.0   ;;  %vm5461_vm0 = vmmov 0  }
 0x193   : > { %s6377_s2 = sld [smem:[#allocation31_spill]]  ;;  %4395 = vmatprep.subr.bf16.mxu1 %v5460_v0  ;;  %4387 = vmatprep.subr.bf16.mxu0 %v5460_v0  ;;  %s5462_s11 = smov 96   ;;  %vm1168_vm1 = vcmask 261120   ;;  %vm1263_vm2 = vcmask 64512   ;;  %vm1519_vm3 = vcmask 1043456   ;;  %vm2163_vm4 = vcmask 57344  }
 0x194   : > { %4399 = vmatprep.mubr.msk.bf16.mxu1 %vm5461_vm0, %v5460_v0  ;;  %s6396_s26 = smov (!%p1125_p2, %s5647_s26), 1  ;;  %4391 = vmatprep.mubr.msk.bf16.mxu0 %vm5461_vm0, %v5460_v0  ;;  %s6378_s0 = sld [smem:[#allocation32_spill]]  ;;  %vm3805_vm5 = vcmask 523264  }
 0x195   : > { %s5916_s1 = sshll.u32 %s6396_s26, 3  ;;  %s5463_s26 = smov 120  }
 0x196   : > { %s1128_s21 = scalar_lea.vmem %s5474_s5, %s5916_s1  ;;  %s6379_s24 = sld [smem:[#allocation33_spill]] }
 0x197   : > { %v5923_v3 = vld [vmem:[%s1128_s21] sm:$0xff]  ;;  %s5464_s10 = smov 112   ;;  %s5465_s15 = smov 104  }
 0x198   : > { %v4895_v1 = vld [vmem:[%s6376_s28] sm:$0xff]   ;;  %v4896_v2 = vld [vmem:[%s6376_s28 + $0x8] sm:$0xff]   ;;  %v5931_v5 = vpack.c.bf16 %v5923_v3, %v5923_v3  ;;  %s6380_s7 = sld [smem:[#allocation29_spill]]  ;;  %s6383_s21 = sld [smem:[#allocation40_spill]] }
 0x199   : > { %1212 = vrot.lane.b32.xlu0 %v4895_v1, %s5462_s11  ;;  %4388 = vmatpush3.bf16.msra.mxu0 %v4895_v1  ;;  %v4142_v4 = vld [vmem:[%s6377_s2] ss:$0 sm:$0xff]  ;;  %s6382_s2 = sld [smem:[#allocation34_spill]] }
 0x19a   : > { %4389 = vmatprep.subr.bf16.mxu0 %v5460_v0  ;;  %1218 = vrot.lane.b32.xlu1 %v4142_v4, %s5462_s11  ;;  %v4897_v29 = vld [vmem:[%s6378_s0] sm:$0xff]   ;;  %v4898_v30 = vld [vmem:[%s6378_s0 + $0x8] sm:$0xff]   ;;  %v4899_v31 = vld [vmem:[%s6378_s0 + $0x10] sm:$0xff]  }
 0x19b   : > { %v4900_v32 = vld [vmem:[%s6378_s0 + $0x18] sm:$0xff]  }
 0x19c   : > { %v4148_v44 = vld [vmem:[%s6379_s24] ss:$0 sm:$0xff]  ;;  %v4158_v52 = vld [vmem:[%s6379_s24 + $0x1] ss:$0 sm:$0xff] }
 0x19d   : > { %1214 = vrot.lane.b32.xlu0 %v4896_v2, %s5462_s11  ;;  %4390 = vmatpush3.bf16.msra.mxu0 %v4896_v2 }
 0x19e   : > { %4403 = vmatprep.subr.bf16.mxu0 %v5460_v0  ;;  %s1132_s22 = scalar_lea.vmem %s6380_s7, %s5916_s1  ;;  %s6384_s7 = sld [smem:[#allocation41_spill]] }
 0x1a0   : > { %4392 = vmatmul.mubr.msk.bf16.vlgmr.msra.gmra.mrb[0].mxu0 %vm1168_vm1, %v5931_v5 }
 0x1a1   : > { %4405 = vmatprep.mubr.msk.bf16.mxu0 %vm5461_vm0, %v5460_v0 }
 0x20b   : > { %v1213_v6 = vpop.permute.xlu0 %1212 }
 0x20c   : > { %4396 = vmatpush3.bf16.msra.mxu1 %v1213_v6  ;;  %v1219_v14 = vpop.permute.xlu1 %1218 }
 0x20d   : > { %4397 = vmatprep.subr.bf16.mxu1 %v5460_v0 }
 0x20f   : > { %v1215_v7 = vpop.permute.xlu0 %1214 }
 0x210   : > { %4398 = vmatpush3.bf16.msra.mxu1 %v1215_v7 }
 0x211   : > { %4409 = vmatprep.subr.bf16.mxu1 %v5460_v0 }
 0x213   : > { %4400 = vmatmul.mubr.msk.bf16.vlgmr.msra.gmra.mrb[0].mxu1 %vm1168_vm1, %v5931_v5 }
 0x214   : > { %4413 = vmatprep.mubr.msk.bf16.mxu1 %vm5461_vm0, %v5460_v0  ;;  %4410 = vmatpush3.bf16.msra.mxu1 %v4897_v29 }
 0x215   : > { %4411 = vmatprep.subr.bf16.mxu1 %v5460_v0 }
 0x218   : > { %4412 = vmatpush3.bf16.msra.mxu1 %v4898_v30 }
 0x219   : > { %4423 = vmatprep.subr.bf16.mxu1 %v5460_v0 }
 0x21b   : > { %4414 = vmatmul.mubr.msk.bf16.vlgmr.msra.gmra.mrb[4].mxu1 %vm1168_vm1, %v5931_v5 }
 0x21c   : > { %4424 = vmatpush3.bf16.msra.mxu1 %v4899_v31  ;;  %4427 = vmatprep.mubr.msk.bf16.mxu1 %vm5461_vm0, %v5460_v0 }
 0x21d   : > { %4425 = vmatprep.subr.bf16.mxu1 %v5460_v0 }
 0x220   : > { %4426 = vmatpush3.bf16.msra.mxu1 %v4900_v32 }
 0x221   : > { %4437 = vmatprep.subr.bf16.mxu1 %v5460_v0 }
 0x223   : > { %4428 = vmatmul.mubr.msk.bf16.vlgmr.msra.gmra.mrb[8].mxu1 %vm1168_vm1, %v5931_v5 }
 0x224   : > { %4439 = vmatprep.mubr.msk.bf16.mxu1 %vm5461_vm0, %v5460_v0 }
 0x273   : > { %v1206_v8 = vpop.f32.mrb[0].mxu0 }
 0x274   : > { %v1207_v9 = vadd.f32 %v4142_v4, %v1206_v8  ;;  %v4393_v10 = vpop.f32.mrb[1].mxu0 }
 0x275   : > { %v1209_v11 = vpop.f32.mrb[2].mxu0 }
 0x276   : > { %v1261_v12 = vpack.c.bf16 %v1207_v9, %v1207_v9  ;;  %v4394_v13 = vpop.f32.mrb[3].mxu0 }
 0x278   : > { %1387 = vrot.lane.b32.xlu0 %v1261_v12, %s5463_s26 }
 0x2e6   : > { %v1255_v15 = vpop.f32.mrb[0].mxu1 }
 0x2e7   : > { %v1256_v16 = vadd.f32 %v1255_v15, %v1219_v14  ;;  %v4401_v17 = vpop.f32.mrb[1].mxu1  ;;  %v4901_v14 = vld [vmem:[%s6378_s0 + $0x20] sm:$0xff]  }
 0x2e8   : > { %v1258_v18 = vpop.f32.mrb[2].mxu1 }
 0x2e9   : > { %v5945_v19 = vpack.c.bf16 %v1256_v16, %v1256_v16  ;;  %v4402_v20 = vpop.f32.mrb[3].mxu1  ;;  %v4902_v16 = vld [vmem:[%s6378_s0 + $0x28] sm:$0xff]  }
 0x2ea   : > { %v1388_v24 = vpop.permute.xlu0 %1387 }
 0x2eb   : > { %1390 = vrot.lane.b32.xlu1 %v5945_v19, %s5463_s26  ;;  %v1268_v21 = vsel %vm1263_vm2, %v5945_v19, 0 }
 0x2ec   : > { %4404 = vmatpush3.bf16.xpose.msra.mxu0 %v1268_v21 }
 0x2ed   : > { %4417 = vmatprep.subr.bf16.mxu0 %v5460_v0 }
 0x2ee   : > { %v1378_v45 = vpop.f32.mrb[4].mxu1 }
 0x2ef   : > { %v1379_v46 = vadd.f32 %v4148_v44, %v1378_v45  ;;  %v4415_v47 = vpop.f32.mrb[5].mxu1 }
 0x2f0   : > { %v1381_v48 = vpop.f32.mrb[6].mxu1 }
 0x2f1   : > { %v1385_v49 = vpack.c.bf16 %v1379_v46, %v1379_v46  ;;  %v4416_v50 = vpop.f32.mrb[7].mxu1 }
 0x2f3   : > { %4406 = vmatmul.mubr.msk.bf16.vlgmr.msra.gmra.mrb[4].mxu0 %vm1263_vm2, %v1261_v12  ;;  %v1567_v51 = vsel %vm1519_vm3, %v1385_v49, 0 }
 0x2f4   : > { %4419 = vmatprep.mubr.msk.bf16.mxu0 %vm5461_vm0, %v5460_v0  ;;  %4438 = vmatpush3.bf16.msra.mxu1 %v1567_v51 }
 0x2f5   : > { %4449 = vmatprep.subr.bf16.mxu1 %v5460_v0 }
 0x2f6   : > { %v1508_v53 = vpop.f32.mrb[8].mxu1 }
 0x2f7   : > { %v1509_v54 = vadd.f32 %v4158_v52, %v1508_v53  ;;  %v4429_v55 = vpop.f32.mrb[9].mxu1  ;;  %v4905_v52 = vld [vmem:[#allocation4] sm:$0xff]  }
 0x2f8   : > { %v1511_v56 = vpop.f32.mrb[10].mxu1 }
 0x2f9   : > { %v1515_v57 = vpack.c.bf16 %v1509_v54, %v1509_v54  ;;  %v4430_v58 = vpop.f32.mrb[11].mxu1 }
 0x2fb   : > { %v1521_v59 = vsel %vm1519_vm3, %v1515_v57, 0 }
 0x35d   : > { %v1391_v22 = vpop.permute.xlu1 %1390 }
 0x35e   : > { %v1396_v23 = vsel %vm1263_vm2, %v1391_v22, 0 }
 0x35f   : > { %4418 = vmatpush3.bf16.xpose.msra.mxu0 %v1396_v23 }
 0x360   : > { %4431 = vmatprep.subr.bf16.mxu0 %v5460_v0 }
 0x366   : > { %4420 = vmatmul.mubr.msk.bf16.vlgmr.msra.gmra.mrb[8].mxu0 %vm1263_vm2, %v1388_v24 }
 0x367   : > { %4433 = vmatprep.mubr.msk.bf16.mxu0 %vm5461_vm0, %v5460_v0  ;;  %4432 = vmatpush3.bf16.msra.mxu0 %v1521_v59  ;;  %v4903_v59 = vld [vmem:[%s6378_s0 + $0x30] sm:$0xff]  }
 0x368   : > { %4443 = vmatprep.subr.bf16.mxu0 %v5460_v0 }
 0x3c6   : > { %v5960_v25 = vpop.f32.mrb[4].mxu0 }
 0x3c7   : > { %v4407_v26 = vpop.f32.mrb[5].mxu0  ;;  %v1310_v38 = vsel %vm1263_vm2, %v5960_v25, -inf }
 0x3c8   : > { %v1307_v27 = vpop.f32.mrb[6].mxu0 }
 0x3c9   : > { %v4408_v28 = vpop.f32.mrb[7].mxu0 }
 0x439   : > { %v1432_v33 = vpop.f32.mrb[8].mxu0 }
 0x43a   : > { %v4421_v34 = vpop.f32.mrb[9].mxu0  ;;  %v1438_v35 = vsel %vm1263_vm2, %v1432_v33, -inf }
 0x43b   : > { %1439 = vmax.xlane.f32.xlu1 %v1438_v35  ;;  %v1435_v36 = vpop.f32.mrb[10].mxu0  ;;  %v4170_v34 = vld [vmem:[%s6379_s24 + $0x2] ss:$0 sm:$0xff] }
 0x43c   : > { %v4422_v37 = vpop.f32.mrb[11].mxu0 }
 0x44c   : > { %1609 = vrot.lane.b32.xlu1 %v1261_v12, %s5464_s10 }
 0x470   : > { %1311 = vmax.xlane.f32.xlu1 %v1310_v38 }
 0x481   : > { %1784 = vrot.lane.b32.xlu1 %v1261_v12, %s5465_s15 }
 0x4c8   : > { %v1440_v39 = vpop.xlane.xlu1 %1439 }
 0x4c9   : > { %v1441_v40 = vsub.f32 %v1432_v33, %v1440_v39 }
 0x4cb   : > { %v1442_v41 = vmul.f32 1.442695, %v1441_v40 }
 0x4cc   : > { %v1610_v60 = vpop.permute.xlu1 %1609 }
 0x4cd   : > { %4931 = vpow2.f32 %v1442_v41 }
 0x4d7   : > { %v4932_v42 = vpop.eup %4931 }
 0x4d8   : > { %v1444_v43 = vsel %vm1263_vm2, %v4932_v42, 0.0 }
 0x4d9   : > { %1445 = vadd.xlane.f32.xlu0 %v1444_v43 }
 0x4ef   : > { %1611 = vrot.lane.b32.xlu0 %v5945_v19, %s5464_s10 }
 0x4fd   : > { %v1312_v61 = vpop.xlane.xlu1 %1311 }
 0x4fe   : > { %v1313_v62 = vsub.f32 %v5960_v25, %v1312_v61  ;;  %v4904_v61 = vld [vmem:[%s6378_s0 + $0x38] sm:$0xff]  }
 0x500   : > { %v1314_v63 = vmul.f32 1.442695, %v1313_v62 }
 0x502   : > { %4933 = vpow2.f32 %v1314_v63 }
 0x50c   : > { %v4934_v1 = vpop.eup %4933 }
 0x50d   : > { %v1316_v2 = vsel %vm1263_vm2, %v4934_v1, 0.0 }
 0x50e   : > { %1317 = vadd.xlane.f32.xlu0 %v1316_v2  ;;  %v1141_v2 = vld [vmem:[%s5878_s8] sm:$0x1]  ;;  %s6381_s8 = sld [smem:[#allocation36_spill]] }
 0x524   : > { %1786 = vrot.lane.b32.xlu0 %v5945_v19, %s5465_s15  ;;  %v1785_v19 = vpop.permute.xlu1 %1784 }
 0x566   : > { %v1446_v4 = vpop.xlane.xlu0 %1445 }
 0x567   : > { %4935 = vrcp.f32 %v1446_v4  ;;  %v2059_v4 = vlaneseq }
 0x56a   : > { %v1612_v8 = vpop.permute.xlu0 %1611 }
 0x56b   : > { %v1617_v10 = vsel %vm1263_vm2, %v1612_v8, 0 }
 0x571   : > { %v4936_v6 = vpop.eup %4935 }
 0x572   : > { %v1448_v7 = vmul.f32 %v4936_v6, %v4932_v42  ;;  %v1142_v6 = vpack.c.bf16 %v1141_v2, %v1141_v2 }
 0x574   : > { %v1514_v9 = vpack.c.bf16 %v1448_v7, %v1448_v7  ;;  %v6045_v7 = vshrl.u32 %v2059_v4, 7 }
 0x576   : > { %4434 = vmatmul.mubr.msk.bf16.vlgmr.msra.gmra.mrb[12].mxu0 %vm1263_vm2, %v1514_v9  ;;  %v2061_v8 = vsub.s32 0, %v6045_v7 }
 0x577   : > { %4444 = vmatpush3.bf16.xpose.msra.mxu0 %v1617_v10  ;;  %4445 = vmatprep.mubr.msk.bf16.mxu0 %vm5461_vm0, %v5460_v0 }
 0x578   : > { %4457 = vmatprep.subr.bf16.mxu0 %v5460_v0 }
 0x57e   : > { %4446 = vmatmul.mubr.msk.bf16.vlgmr.msra.gmra.mrb[16].mxu0 %vm1263_vm2, %v1610_v60 }
 0x57f   : > { %4459 = vmatprep.mubr.msk.bf16.mxu0 %vm5461_vm0, %v5460_v0 }
 0x59b   : > { %v1318_v11 = vpop.xlane.xlu0 %1317 }
 0x59c   : > { %4937 = vrcp.f32 %v1318_v11 }
 0x59f   : > { %v1787_v17 = vpop.permute.xlu0 %1786 }
 0x5a0   : > { %v1792_v18 = vsel %vm1263_vm2, %v1787_v17, 0 }
 0x5a6   : > { %v4938_v12 = vpop.eup %4937 }
 0x5a7   : > { %v1320_v13 = vmul.f32 %v4938_v12, %v4934_v1  ;;  %v4906_v1 = vld [vmem:[#allocation4 + $0x8] sm:$0xff]  }
 0x5a9   : > { %v1384_v15 = vpack.c.bf16 %v1320_v13, %v1320_v13 }
 0x5ab   : > { %4440 = vmatmul.mubr.msk.bf16.vlgmr.msra.gmra.mrb[12].mxu1 %vm1263_vm2, %v1384_v15 }
 0x5ac   : > { %4450 = vmatpush3.bf16.msra.mxu1 %v4901_v14  ;;  %4453 = vmatprep.mubr.msk.bf16.mxu1 %vm5461_vm0, %v5460_v0 }
 0x5ad   : > { %4451 = vmatprep.subr.bf16.mxu1 %v5460_v0 }
 0x5b0   : > { %4452 = vmatpush3.bf16.msra.mxu1 %v4902_v16  ;;  %v4181_v16 = vld [vmem:[%s6379_s24 + $0x3] ss:$0 sm:$0xff] }
 0x5b1   : > { %4463 = vmatprep.subr.bf16.mxu1 %v5460_v0 }
 0x5b3   : > { %4454 = vmatmul.mubr.msk.bf16.vlgmr.msra.gmra.mrb[16].mxu1 %vm1168_vm1, %v5931_v5 }
 0x5b4   : > { %4465 = vmatprep.mubr.msk.bf16.mxu1 %vm5461_vm0, %v5460_v0 }
 0x5b9   : > { %4464 = vmatpush3.bf16.xpose.msra.mxu1 %v1792_v18 }
 0x5ba   : > { %4477 = vmatprep.subr.bf16.mxu1 %v5460_v0 }
 0x5c0   : > { %4466 = vmatmul.mubr.msk.bf16.vlgmr.msra.gmra.mrb[20].mxu1 %vm1263_vm2, %v1785_v19 }
 0x5c1   : > { %4479 = vmatprep.mubr.msk.bf16.mxu1 %vm5461_vm0, %v5460_v0 }
 0x649   : > { %v1557_v20 = vpop.f32.mrb[12].mxu0 }
 0x64a   : > { %v4435_v21 = vpop.f32.mrb[13].mxu0 }
 0x64b   : > { %v1560_v22 = vpop.f32.mrb[14].mxu0 }
 0x64c   : > { %v4436_v23 = vpop.f32.mrb[15].mxu0 }
 0x651   : > { %v1653_v24 = vpop.f32.mrb[16].mxu0 }
 0x652   : > { %v4447_v25 = vpop.f32.mrb[17].mxu0  ;;  %v1659_v26 = vsel %vm1263_vm2, %v1653_v24, -inf }
 0x653   : > { %1660 = vmax.xlane.f32.xlu1 %v1659_v26  ;;  %v1656_v27 = vpop.f32.mrb[18].mxu0 }
 0x654   : > { %v4448_v28 = vpop.f32.mrb[19].mxu0 }
 0x655   : > { %v1139_v28 = vld [vmem:[%s1132_s22] sm:$0xff]  ;;  %s6385_s22 = sld [smem:[#allocation42_spill]] }
 0x67e   : > { %v1603_v29 = vpop.f32.mrb[12].mxu1 }
 0x67f   : > { %v6021_v30 = vadd.f32 %v1603_v29, %v1557_v20  ;;  %v4441_v31 = vpop.f32.mrb[13].mxu1 }
 0x680   : > { %v1606_v32 = vpop.f32.mrb[14].mxu1 }
 0x681   : > { %v4442_v33 = vpop.f32.mrb[15].mxu1 }
 0x686   : > { %v1729_v35 = vpop.f32.mrb[16].mxu1 }
 0x687   : > { %v1730_v36 = vadd.f32 %v4170_v34, %v1729_v35  ;;  %v4455_v37 = vpop.f32.mrb[17].mxu1 }
 0x688   : > { %v1732_v38 = vpop.f32.mrb[18].mxu1 }
 0x689   : > { %v1736_v39 = vpack.c.bf16 %v1730_v36, %v1730_v36  ;;  %v4456_v40 = vpop.f32.mrb[19].mxu1 }
 0x68b   : > { %v1741_v41 = vsel %vm1519_vm3, %v1736_v39, 0 }
 0x68c   : > { %4458 = vmatpush3.bf16.msra.mxu0 %v1741_v41 }
 0x68d   : > { %4469 = vmatprep.subr.bf16.mxu0 %v5460_v0 }
 0x693   : > { %v1828_v42 = vpop.f32.mrb[20].mxu1 }
 0x694   : > { %v4467_v43 = vpop.f32.mrb[21].mxu1  ;;  %v1834_v51 = vsel %vm1263_vm2, %v1828_v42, -inf }
 0x695   : > { %v1831_v44 = vpop.f32.mrb[22].mxu1 }
 0x696   : > { %v4468_v45 = vpop.f32.mrb[23].mxu1 }
 0x6e0   : > { %v1661_v46 = vpop.xlane.xlu1 %1660 }
 0x6e1   : > { %v1662_v47 = vsub.f32 %v1653_v24, %v1661_v46 }
 0x6e3   : > { %v1663_v48 = vmul.f32 1.442695, %v1662_v47 }
 0x6e5   : > { %4939 = vpow2.f32 %v1663_v48 }
 0x6ef   : > { %v4940_v49 = vpop.eup %4939 }
 0x6f0   : > { %v1665_v50 = vsel %vm1263_vm2, %v4940_v49, 0.0 }
 0x6f1   : > { %1666 = vadd.xlane.f32.xlu0 %v1665_v50 }
 0x6f5   : > { %1835 = vmax.xlane.f32.xlu0 %v1834_v51 }
 0x70b   : > { %2063 = vrot.lane.b32.xlu0 %v4905_v52, %s5462_s11 }
 0x77e   : > { %v1667_v53 = vpop.xlane.xlu0 %1666 }
 0x77f   : > { %4941 = vrcp.f32 %v1667_v53 }
 0x782   : > { %v1836_v54 = vpop.xlane.xlu0 %1835 }
 0x783   : > { %v1837_v55 = vsub.f32 %v1828_v42, %v1836_v54 }
 0x785   : > { %v1838_v56 = vmul.f32 1.442695, %v1837_v55 }
 0x786   : > { %v2064_v26 = vpop.permute.xlu0 %2063 }
 0x787   : > { %4943 = vpow2.f32 %v1838_v56 }
 0x789   : > { %v4942_v57 = vpop.eup %4941 }
 0x78a   : > { %v1669_v58 = vmul.f32 %v4942_v57, %v4940_v49  ;;  %v4907_v57 = vld [vmem:[%s6381_s8] sm:$0xff]  }
 0x78c   : > { %v1735_v60 = vpack.c.bf16 %v1669_v58, %v1669_v58  ;;  %v4908_v58 = vld [vmem:[%s6381_s8 + $0x8] sm:$0xff]  }
 0x78e   : > { %4460 = vmatmul.mubr.msk.bf16.vlgmr.msra.gmra.mrb[20].mxu0 %vm1263_vm2, %v1735_v60  ;;  %v4910_v60 = vld [vmem:[%s6381_s8 + $0x18] sm:$0xff]  }
 0x78f   : > { %4470 = vmatpush3.bf16.msra.mxu0 %v4903_v59  ;;  %4473 = vmatprep.mubr.msk.bf16.mxu0 %vm5461_vm0, %v5460_v0  ;;  %v4909_v59 = vld [vmem:[%s6381_s8 + $0x10] sm:$0xff]  }
 0x790   : > { %4471 = vmatprep.subr.bf16.mxu0 %v5460_v0 }
 0x791   : > { %v4944_v62 = vpop.eup %4943 }
 0x792   : > { %v1840_v63 = vsel %vm1263_vm2, %v4944_v62, 0.0 }
 0x793   : > { %4472 = vmatpush3.bf16.msra.mxu0 %v4904_v61  ;;  %1841 = vadd.xlane.f32.xlu1 %v1840_v63 }
 0x794   : > { %4483 = vmatprep.subr.bf16.mxu0 %v5460_v0 }
 0x796   : > { %4474 = vmatmul.mubr.msk.bf16.vlgmr.msra.gmra.mrb[24].mxu0 %vm1168_vm1, %v5931_v5  ;;  %v2001_v5 = vld [vmem:[#allocation6] sm:$0x1] }
 0x797   : > { %4484 = vmatpush3.bf16.msra.mxu0 %v4905_v52  ;;  %4487 = vmatprep.mubr.msk.bf16.mxu0 %vm5461_vm0, %v5460_v0  ;;  %v2062_v9 = vrot.slane %v2001_v5, %v2061_v8 }
 0x798   : > { %4485 = vmatprep.subr.bf16.mxu0 %v5460_v0 }
 0x79b   : > { %4486 = vmatpush3.bf16.msra.mxu0 %v4906_v1 }
 0x79c   : > { %4499 = vmatprep.subr.bf16.mxu0 %v5460_v0 }
 0x79e   : > { %4488 = vmatmul.mubr.msk.bf16.vlgmr.msra.gmra.mrb[28].mxu0 %vm1168_vm1, %v1142_v6 }
 0x79f   : > { %4501 = vmatprep.mubr.msk.bf16.mxu0 %vm5461_vm0, %v5460_v0 }
 0x7a4   : > { %2065 = vrot.lane.b32.xlu1 %v4906_v1, %s5462_s11 }
 0x7a8   : > { %2069 = vrot.lane.b32.xlu1 %v2062_v9, %s5462_s11 }
 0x820   : > { %v1842_v10 = vpop.xlane.xlu1 %1841 }
 0x821   : > { %4945 = vrcp.f32 %v1842_v10 }
 0x824   : > { %v2066_v29 = vpop.permute.xlu1 %2065 }
 0x828   : > { %v2070_v42 = vpop.permute.xlu1 %2069 }
 0x82b   : > { %v4946_v17 = vpop.eup %4945 }
 0x82c   : > { %v1844_v22 = vmul.f32 %v4946_v17, %v4944_v62 }
 0x82e   : > { %v1910_v27 = vpack.c.bf16 %v1844_v22, %v1844_v22 }
 0x861   : > { %v1777_v11 = vpop.f32.mrb[20].mxu0 }
 0x862   : > { %v1783_v12 = vadd.f32 %v1777_v11, %v6021_v30  ;;  %v4461_v13 = vpop.f32.mrb[21].mxu0  ;;  %v6064_v30 = vpack.c.bf16 %v1139_v28, %v1139_v28 }
 0x863   : > { %v1780_v14 = vpop.f32.mrb[22].mxu0 }
 0x864   : > { %v4462_v15 = vpop.f32.mrb[23].mxu0 }
 0x869   : > { %v1904_v18 = vpop.f32.mrb[24].mxu0 }
 0x86a   : > { %v1905_v19 = vadd.f32 %v4181_v16, %v1904_v18  ;;  %v4475_v20 = vpop.f32.mrb[25].mxu0 }
 0x86b   : > { %v1907_v21 = vpop.f32.mrb[26].mxu0  ;;  %v4203_v20 = vld [vmem:[#allocation7 + $0x1] ss:$0 sm:$0xff] }
 0x86c   : > { %v1911_v23 = vpack.c.bf16 %v1905_v19, %v1905_v19  ;;  %v4476_v24 = vpop.f32.mrb[27].mxu0 }
 0x86e   : > { %v1916_v25 = vsel %vm1519_vm3, %v1911_v23, 0 }
 0x86f   : > { %4478 = vmatpush3.bf16.msra.mxu1 %v1916_v25 }
 0x870   : > { %4491 = vmatprep.subr.bf16.mxu1 %v5460_v0 }
 0x871   : > { %v2052_v31 = vpop.f32.mrb[28].mxu0 }
 0x872   : > { %4480 = vmatmul.mubr.msk.bf16.vlgmr.msra.gmra.mrb[24].mxu1 %vm1263_vm2, %v1910_v27  ;;  %v2053_v32 = vadd.f32 %v2052_v31, %v2001_v5  ;;  %v4489_v33 = vpop.f32.mrb[29].mxu0 }
 0x873   : > { %4492 = vmatpush3.bf16.msra.mxu1 %v2064_v26  ;;  %4495 = vmatprep.mubr.msk.bf16.mxu1 %vm5461_vm0, %v5460_v0  ;;  %v2055_v34 = vpop.f32.mrb[30].mxu0 }
 0x874   : > { %4493 = vmatprep.subr.bf16.mxu1 %v5460_v0  ;;  %v6071_v35 = vpack.c.bf16 %v2053_v32, %v2053_v32  ;;  %v4490_v36 = vpop.f32.mrb[31].mxu0 }
 0x876   : > { %2241 = vrot.lane.b32.xlu1 %v6071_v35, %s5463_s26 }
 0x877   : > { %4494 = vmatpush3.bf16.msra.mxu1 %v2066_v29 }
 0x878   : > { %4505 = vmatprep.subr.bf16.mxu1 %v5460_v0 }
 0x87a   : > { %4496 = vmatmul.mubr.msk.bf16.vlgmr.msra.gmra.mrb[28].mxu1 %vm1168_vm1, %v6064_v30 }
 0x87b   : > { %4509 = vmatprep.mubr.msk.bf16.mxu1 %vm5461_vm0, %v5460_v0  ;;  %4506 = vmatpush3.bf16.msra.mxu1 %v4907_v57 }
 0x87c   : > { %4507 = vmatprep.subr.bf16.mxu1 %v5460_v0 }
 0x87f   : > { %4508 = vmatpush3.bf16.msra.mxu1 %v4908_v58 }
 0x880   : > { %4519 = vmatprep.subr.bf16.mxu1 %v5460_v0 }
 0x882   : > { %4510 = vmatmul.mubr.msk.bf16.vlgmr.msra.gmra.mrb[32].mxu1 %vm1168_vm1, %v6064_v30 }
 0x883   : > { %4520 = vmatpush3.bf16.msra.mxu1 %v4909_v59  ;;  %4523 = vmatprep.mubr.msk.bf16.mxu1 %vm5461_vm0, %v5460_v0 }
 0x884   : > { %4521 = vmatprep.subr.bf16.mxu1 %v5460_v0 }
 0x887   : > { %4522 = vmatpush3.bf16.msra.mxu1 %v4910_v60 }
 0x888   : > { %4533 = vmatprep.subr.bf16.mxu1 %v5460_v0 }
 0x88a   : > { %4524 = vmatmul.mubr.msk.bf16.vlgmr.msra.gmra.mrb[36].mxu1 %vm1168_vm1, %v6064_v30 }
 0x88b   : > { %4535 = vmatprep.mubr.msk.bf16.mxu1 %vm5461_vm0, %v5460_v0 }
 0x8e8   : > { %v2242_v52 = vpop.permute.xlu1 %2241 }
 0x945   : > { %v1952_v37 = vpop.f32.mrb[24].mxu1 }
 0x946   : > { %v6075_v38 = vadd.f32 %v1952_v37, %v1783_v12  ;;  %v4481_v39 = vpop.f32.mrb[25].mxu1  ;;  %v4194_v12 = vld [vmem:[#allocation7] ss:$0 sm:$0xff] }
 0x947   : > { %v1955_v40 = vpop.f32.mrb[26].mxu1 }
 0x948   : > { %v4482_v41 = vpop.f32.mrb[27].mxu1 }
 0x94d   : > { %v2109_v43 = vpop.f32.mrb[28].mxu1 }
 0x94e   : > { %v2110_v44 = vadd.f32 %v2109_v43, %v2070_v42  ;;  %v4497_v45 = vpop.f32.mrb[29].mxu1 }
 0x94f   : > { %v2112_v46 = vpop.f32.mrb[30].mxu1  ;;  %v4911_v45 = vld [vmem:[%s6381_s8 + $0x20] sm:$0xff]  }
 0x950   : > { %v2116_v47 = vpack.c.bf16 %v2110_v44, %v2110_v44  ;;  %v4498_v48 = vpop.f32.mrb[31].mxu1 }
 0x952   : > { %2244 = vrot.lane.b32.xlu0 %v2116_v47, %s5463_s26  ;;  %v2121_v49 = vsel %vm1263_vm2, %v2116_v47, 0 }
 0x953   : > { %4500 = vmatpush3.bf16.xpose.msra.mxu0 %v2121_v49 }
 0x954   : > { %4513 = vmatprep.subr.bf16.mxu0 %v5460_v0 }
 0x955   : > { %v2232_v13 = vpop.f32.mrb[32].mxu1 }
 0x956   : > { %v2233_v14 = vadd.f32 %v4194_v12, %v2232_v13  ;;  %v4511_v15 = vpop.f32.mrb[33].mxu1 }
 0x957   : > { %v2235_v16 = vpop.f32.mrb[34].mxu1 }
 0x958   : > { %v2239_v17 = vpack.c.bf16 %v2233_v14, %v2233_v14  ;;  %v4512_v18 = vpop.f32.mrb[35].mxu1 }
 0x95a   : > { %4502 = vmatmul.mubr.msk.bf16.vlgmr.msra.gmra.mrb[32].mxu0 %vm1263_vm2, %v6071_v35  ;;  %v2420_v19 = vsel %vm1519_vm3, %v2239_v17, 0 }
 0x95b   : > { %4515 = vmatprep.mubr.msk.bf16.mxu0 %vm5461_vm0, %v5460_v0  ;;  %4534 = vmatpush3.bf16.msra.mxu1 %v2420_v19 }
 0x95c   : > { %4545 = vmatprep.subr.bf16.mxu1 %v5460_v0 }
 0x95d   : > { %v2362_v21 = vpop.f32.mrb[36].mxu1 }
 0x95e   : > { %v2363_v22 = vadd.f32 %v4203_v20, %v2362_v21  ;;  %v4525_v23 = vpop.f32.mrb[37].mxu1  ;;  %v4186_v21 = vld [vmem:[%s6382_s2] ss:$0 sm:$0xff]  ;;  %s6390_s2 = sld [smem:[#allocation45_spill]] }
 0x95f   : > { %v2365_v24 = vpop.f32.mrb[38].mxu1 }
 0x960   : > { %v2369_v25 = vpack.c.bf16 %v2363_v22, %v2363_v22  ;;  %v4526_v26 = vpop.f32.mrb[39].mxu1  ;;  %v1965_v22 = vadd.f32 %v4186_v21, %v6075_v38 }
 0x962   : > { %v2374_v27 = vsel %vm1519_vm3, %v2369_v25, 0  ;;  %v1966_v25 = vadd.f32 %v1965_v22, %v5923_v3 }
 0x964   : > { %v1969_v26 = vsel %vm1168_vm1, %v1966_v25, 0.0 }
 0x9c4   : > { %v2245_v50 = vpop.permute.xlu0 %2244 }
 0x9c5   : > { %v2250_v51 = vsel %vm1263_vm2, %v2245_v50, 0 }
 0x9c6   : > { %4514 = vmatpush3.bf16.xpose.msra.mxu0 %v2250_v51 }
 0x9c7   : > { %4527 = vmatprep.subr.bf16.mxu0 %v5460_v0 }
 0x9cd   : > { %4516 = vmatmul.mubr.msk.bf16.vlgmr.msra.gmra.mrb[36].mxu0 %vm1263_vm2, %v2242_v52 }
 0x9ce   : > { %4529 = vmatprep.mubr.msk.bf16.mxu0 %vm5461_vm0, %v5460_v0  ;;  %4528 = vmatpush3.bf16.msra.mxu0 %v2374_v27 }
 0x9cf   : > { %4539 = vmatprep.subr.bf16.mxu0 %v5460_v0 }
 0xa2d   : > { %v2157_v53 = vpop.f32.mrb[32].mxu0 }
 0xa2e   : > { %v4503_v54 = vpop.f32.mrb[33].mxu0  ;;  %v2164_v4 = vsel %vm2163_vm4, %v2157_v53, -inf }
 0xa2f   : > { %v2160_v55 = vpop.f32.mrb[34].mxu0 }
 0xa30   : > { %v4504_v56 = vpop.f32.mrb[35].mxu0 }
 0xaa0   : > { %v2286_v61 = vpop.f32.mrb[36].mxu0 }
 0xaa1   : > { %v4517_v62 = vpop.f32.mrb[37].mxu0  ;;  %v2292_v63 = vsel %vm2163_vm4, %v2286_v61, -inf }
 0xaa2   : > { %2293 = vmax.xlane.f32.xlu0 %v2292_v63  ;;  %v2289_v1 = vpop.f32.mrb[38].mxu0 }
 0xaa3   : > { %v4518_v2 = vpop.f32.mrb[39].mxu0 }
 0xaa4   : > { %v4214_v2 = vld [vmem:[#allocation7 + $0x2] ss:$0 sm:$0xff] }
 0xab8   : > { %2464 = vrot.lane.b32.xlu0 %v2116_v47, %s5464_s10 }
 0xad7   : > { %2165 = vmax.xlane.f32.xlu0 %v2164_v4 }
 0xaed   : > { %2639 = vrot.lane.b32.xlu0 %v2116_v47, %s5465_s15  ;;  %v4912_v47 = vld [vmem:[%s6381_s8 + $0x28] sm:$0xff]  }
 0xb2f   : > { %v2294_v6 = vpop.xlane.xlu0 %2293 }
 0xb30   : > { %v2295_v5 = vsub.f32 %v2286_v61, %v2294_v6 }
 0xb32   : > { %v2296_v9 = vmul.f32 1.442695, %v2295_v5 }
 0xb33   : > { %v2465_v28 = vpop.permute.xlu0 %2464 }
 0xb34   : > { %4947 = vpow2.f32 %v2296_v9  ;;  %v2470_v41 = vsel %vm1263_vm2, %v2465_v28, 0 }
 0xb3e   : > { %v4948_v10 = vpop.eup %4947 }
 0xb3f   : > { %v2298_v11 = vsel %vm2163_vm4, %v4948_v10, 0.0 }
 0xb40   : > { %2299 = vadd.xlane.f32.xlu1 %v2298_v11 }
 0xb51   : > { %2462 = vrot.lane.b32.xlu1 %v6071_v35, %s5464_s10 }
 0xb64   : > { %v2166_v29 = vpop.xlane.xlu0 %2165 }
 0xb65   : > { %v2167_v31 = vsub.f32 %v2157_v53, %v2166_v29 }
 0xb67   : > { %v2168_v32 = vmul.f32 1.442695, %v2167_v31 }
 0xb68   : > { %v2640_v48 = vpop.permute.xlu0 %2639 }
 0xb69   : > { %4949 = vpow2.f32 %v2168_v32  ;;  %v2645_v49 = vsel %vm1263_vm2, %v2640_v48, 0 }
 0xb73   : > { %v4950_v33 = vpop.eup %4949 }
 0xb74   : > { %v2170_v34 = vsel %vm2163_vm4, %v4950_v33, 0.0 }
 0xb75   : > { %2171 = vadd.xlane.f32.xlu1 %v2170_v34 }
 0xb86   : > { %2637 = vrot.lane.b32.xlu1 %v6071_v35, %s5465_s15 }
 0xbcd   : > { %v2300_v36 = vpop.xlane.xlu1 %2299 }
 0xbce   : > { %4951 = vrcp.f32 %v2300_v36 }
 0xbd1   : > { %v2463_v42 = vpop.permute.xlu1 %2462 }
 0xbd8   : > { %v4952_v37 = vpop.eup %4951 }
 0xbd9   : > { %v2302_v39 = vmul.f32 %v4952_v37, %v4948_v10 }
 0xbdb   : > { %v2368_v40 = vpack.c.bf16 %v2302_v39, %v2302_v39 }
 0xbdd   : > { %4530 = vmatmul.mubr.msk.bf16.vlgmr.msra.gmra.mrb[40].mxu0 %vm1263_vm2, %v2368_v40 }
 0xbde   : > { %4540 = vmatpush3.bf16.xpose.msra.mxu0 %v2470_v41  ;;  %4541 = vmatprep.mubr.msk.bf16.mxu0 %vm5461_vm0, %v5460_v0  ;;  %v4913_v41 = vld [vmem:[%s6381_s8 + $0x30] sm:$0xff]  }
 0xbdf   : > { %4553 = vmatprep.subr.bf16.mxu0 %v5460_v0 }
 0xbe5   : > { %4542 = vmatmul.mubr.msk.bf16.vlgmr.msra.gmra.mrb[44].mxu0 %vm1263_vm2, %v2463_v42 }
 0xbe6   : > { %4555 = vmatprep.mubr.msk.bf16.mxu0 %vm5461_vm0, %v5460_v0 }
 0xc02   : > { %v2172_v35 = vpop.xlane.xlu1 %2171 }
 0xc03   : > { %4953 = vrcp.f32 %v2172_v35  ;;  %v4914_v35 = vld [vmem:[%s6381_s8 + $0x38] sm:$0xff]  }
 0xc06   : > { %v2638_v50 = vpop.permute.xlu1 %2637 }
 0xc0d   : > { %v4954_v43 = vpop.eup %4953 }
 0xc0e   : > { %v2174_v44 = vmul.f32 %v4954_v43, %v4950_v33 }
 0xc10   : > { %v2238_v46 = vpack.c.bf16 %v2174_v44, %v2174_v44 }
 0xc12   : > { %4536 = vmatmul.mubr.msk.bf16.vlgmr.msra.gmra.mrb[40].mxu1 %vm1263_vm2, %v2238_v46 }
 0xc13   : > { %4546 = vmatpush3.bf16.msra.mxu1 %v4911_v45  ;;  %4549 = vmatprep.mubr.msk.bf16.mxu1 %vm5461_vm0, %v5460_v0 }
 0xc14   : > { %4547 = vmatprep.subr.bf16.mxu1 %v5460_v0 }
 0xc17   : > { %4548 = vmatpush3.bf16.msra.mxu1 %v4912_v47 }
 0xc18   : > { %4559 = vmatprep.subr.bf16.mxu1 %v5460_v0 }
 0xc1a   : > { %4550 = vmatmul.mubr.msk.bf16.vlgmr.msra.gmra.mrb[44].mxu1 %vm1168_vm1, %v6064_v30 }
 0xc1b   : > { %4561 = vmatprep.mubr.msk.bf16.mxu1 %vm5461_vm0, %v5460_v0 }
 0xc20   : > { %4560 = vmatpush3.bf16.xpose.msra.mxu1 %v2645_v49  ;;  %v4224_v49 = vld [vmem:[#allocation7 + $0x3] ss:$0 sm:$0xff] }
 0xc21   : > { %4573 = vmatprep.subr.bf16.mxu1 %v5460_v0 }
 0xc27   : > { %4562 = vmatmul.mubr.msk.bf16.vlgmr.msra.gmra.mrb[48].mxu1 %vm1263_vm2, %v2638_v50 }
 0xc28   : > { %4575 = vmatprep.mubr.msk.bf16.mxu1 %vm5461_vm0, %v5460_v0 }
 0xcb0   : > { %v2410_v51 = vpop.f32.mrb[40].mxu0 }
 0xcb1   : > { %v4531_v52 = vpop.f32.mrb[41].mxu0 }
 0xcb2   : > { %v2413_v53 = vpop.f32.mrb[42].mxu0 }
 0xcb3   : > { %v4532_v54 = vpop.f32.mrb[43].mxu0 }
 0xcb8   : > { %v2506_v55 = vpop.f32.mrb[44].mxu0 }
 0xcb9   : > { %v4543_v56 = vpop.f32.mrb[45].mxu0  ;;  %v2512_v57 = vsel %vm2163_vm4, %v2506_v55, -inf }
 0xcba   : > { %2513 = vmax.xlane.f32.xlu0 %v2512_v57  ;;  %v2509_v58 = vpop.f32.mrb[46].mxu0 }
 0xcbb   : > { %v4544_v59 = vpop.f32.mrb[47].mxu0 }
 0xce5   : > { %v2456_v60 = vpop.f32.mrb[40].mxu1 }
 0xce6   : > { %v6144_v61 = vadd.f32 %v2456_v60, %v2410_v51  ;;  %v4537_v62 = vpop.f32.mrb[41].mxu1 }
 0xce7   : > { %v2459_v63 = vpop.f32.mrb[42].mxu1 }
 0xce8   : > { %v4538_v1 = vpop.f32.mrb[43].mxu1 }
 0xced   : > { %v2582_v4 = vpop.f32.mrb[44].mxu1 }
 0xcee   : > { %v2583_v6 = vadd.f32 %v4214_v2, %v2582_v4  ;;  %v4551_v5 = vpop.f32.mrb[45].mxu1  ;;  %v4187_v2 = vld [vmem:[%s6383_s21] ss:$0 sm:$0xff]  ;;  %v2002_v4 = vld [vmem:[#allocation9] sm:$0x1]  ;;  %s1136_s21 = scalar_lea.vmem %s6390_s2, %s5916_s1 }
 0xcef   : > { %v2585_v9 = vpop.f32.mrb[46].mxu1 }
 0xcf0   : > { %v2589_v10 = vpack.c.bf16 %v2583_v6, %v2583_v6  ;;  %v4552_v11 = vpop.f32.mrb[47].mxu1 }
 0xcf2   : > { %v2594_v12 = vsel %vm1519_vm3, %v2589_v10, 0 }
 0xcf3   : > { %4554 = vmatpush3.bf16.msra.mxu0 %v2594_v12  ;;  %v4188_v12 = vld [vmem:[#allocation21] ss:$0 sm:$0xff] }
 0xcf4   : > { %4565 = vmatprep.subr.bf16.mxu0 %v5460_v0 }
 0xcfa   : > { %v2681_v13 = vpop.f32.mrb[48].mxu1 }
 0xcfb   : > { %v4563_v14 = vpop.f32.mrb[49].mxu1  ;;  %v2687_v15 = vsel %vm2163_vm4, %v2681_v13, -inf }
 0xcfc   : > { %v2684_v16 = vpop.f32.mrb[50].mxu1  ;;  %2688 = vmax.xlane.f32.xlu0 %v2687_v15 }
 0xcfd   : > { %v4564_v17 = vpop.f32.mrb[51].mxu1 }
 0xd47   : > { %v2514_v18 = vpop.xlane.xlu0 %2513 }
 0xd48   : > { %v2515_v19 = vsub.f32 %v2506_v55, %v2514_v18 }
 0xd4a   : > { %v2516_v20 = vmul.f32 1.442695, %v2515_v19  ;;  %v4915_v19 = vld [vmem:[#allocation10] sm:$0xff]  }
 0xd4c   : > { %4955 = vpow2.f32 %v2516_v20  ;;  %v4916_v20 = vld [vmem:[#allocation10 + $0x8] sm:$0xff]  }
 0xd56   : > { %v4956_v23 = vpop.eup %4955 }
 0xd57   : > { %v2518_v24 = vsel %vm2163_vm4, %v4956_v23, 0.0 }
 0xd58   : > { %2519 = vadd.xlane.f32.xlu1 %v2518_v24 }
 0xd5c   : > { %1970 = vadd.xlane.f32.xlu1 %v1969_v26 }
 0xd89   : > { %v2689_v27 = vpop.xlane.xlu0 %2688 }
 0xd8a   : > { %v2690_v28 = vsub.f32 %v2681_v13, %v2689_v27 }
 0xd8c   : > { %v2691_v29 = vmul.f32 1.442695, %v2690_v28 }
 0xd8e   : > { %4957 = vpow2.f32 %v2691_v29 }
 0xd98   : > { %v4958_v31 = vpop.eup %4957 }
 0xd99   : > { %v2693_v32 = vsel %vm2163_vm4, %v4958_v31, 0.0 }
 0xd9a   : > { %2694 = vadd.xlane.f32.xlu0 %v2693_v32  ;;  %v4229_v32 = vld [vmem:[%s6384_s7] ss:$0 sm:$0xff] }
 0xde5   : > { %v2520_v38 = vpop.xlane.xlu1 %2519 }
 0xde6   : > { %4959 = vrcp.f32 %v2520_v38 }
 0xde9   : > { %v1971_v33 = vpop.xlane.xlu1 %1970 }
 0xdea   : > { %v1973_v34 = vmul.f32 0.03125, %v1971_v33  ;;  %v4230_v33 = vld [vmem:[%s6385_s22] ss:$0 sm:$0xff] }
 0xdec   : > { %v1974_v36 = vsub.f32 %v1966_v25, %v1973_v34  ;;  %v4231_v25 = vld [vmem:[#allocation12] ss:$0 sm:$0xff] }
 0xdee   : > { %v1975_v3 = vmul.f32 %v1974_v36, %v1974_v36 }
 0xdf0   : > { %v4960_v37 = vpop.eup %4959  ;;  %v1976_v39 = vsel %vm1168_vm1, %v1975_v3, 0.0 }
 0xdf1   : > { %v2522_v40 = vmul.f32 %v4960_v37, %v4956_v23  ;;  %1977 = vadd.xlane.f32.xlu0 %v1976_v39 }
 0xdf3   : > { %v2588_v42 = vpack.c.bf16 %v2522_v40, %v2522_v40 }
 0xdf5   : > { %4556 = vmatmul.mubr.msk.bf16.vlgmr.msra.gmra.mrb[48].mxu0 %vm1263_vm2, %v2588_v42 }
 0xdf6   : > { %4566 = vmatpush3.bf16.msra.mxu0 %v4913_v41  ;;  %4569 = vmatprep.mubr.msk.bf16.mxu0 %vm5461_vm0, %v5460_v0 }
 0xdf7   : > { %4567 = vmatprep.subr.bf16.mxu0 %v5460_v0 }
 0xdfa   : > { %4568 = vmatpush3.bf16.msra.mxu0 %v4914_v35 }
 0xdfb   : > { %4579 = vmatprep.subr.bf16.mxu0 %v5460_v0 }
 0xdfd   : > { %4570 = vmatmul.mubr.msk.bf16.vlgmr.msra.gmra.mrb[52].mxu0 %vm1168_vm1, %v6064_v30 }
 0xdfe   : > { %4583 = vmatprep.mubr.msk.bf16.mxu0 %vm5461_vm0, %v5460_v0  ;;  %4580 = vmatpush3.bf16.msra.mxu0 %v4915_v19 }
 0xdff   : > { %4581 = vmatprep.subr.bf16.mxu0 %v5460_v0 }
 0xe02   : > { %4582 = vmatpush3.bf16.msra.mxu0 %v4916_v20 }
 0xe03   : > { %4595 = vmatprep.subr.bf16.mxu0 %v5460_v0 }
 0xe27   : > { %v2695_v43 = vpop.xlane.xlu0 %2694 }
 0xe28   : > { %4961 = vrcp.f32 %v2695_v43 }
 0xe32   : > { %v4962_v50 = vpop.eup %4961 }
 0xe33   : > { %v2697_v55 = vmul.f32 %v4962_v50, %v4958_v31 }
 0xe35   : > { %v2763_v59 = vpack.c.bf16 %v2697_v55, %v2697_v55 }
 0xe7e   : > { %v1978_v60 = vpop.xlane.xlu0 %1977 }
 0xec8   : > { %v2630_v44 = vpop.f32.mrb[48].mxu0 }
 0xec9   : > { %v2636_v45 = vadd.f32 %v2630_v44, %v6144_v61  ;;  %v4557_v46 = vpop.f32.mrb[49].mxu0  ;;  %v1979_v61 = vmul.f32 0.03125, %v1978_v60  ;;  %v4919_v60 = vld [vmem:[#allocation13 + $0x10] sm:$0xff]  }
 0xeca   : > { %v2633_v47 = vpop.f32.mrb[50].mxu0 }
 0xecb   : > { %v4558_v48 = vpop.f32.mrb[51].mxu0  ;;  %v1980_v62 = vadd.f32 1e-05, %v1979_v61  ;;  %v4920_v61 = vld [vmem:[#allocation13 + $0x18] sm:$0xff]  }
 0xecd   : > { %4963 = vrsqrt.f32 %v1980_v62 }
 0xed0   : > { %v2757_v51 = vpop.f32.mrb[52].mxu0 }
 0xed1   : > { %v2758_v52 = vadd.f32 %v4224_v49, %v2757_v51  ;;  %v4571_v53 = vpop.f32.mrb[53].mxu0 }
 0xed2   : > { %v2760_v54 = vpop.f32.mrb[54].mxu0 }
 0xed3   : > { %v2764_v56 = vpack.c.bf16 %v2758_v52, %v2758_v52  ;;  %v4572_v57 = vpop.f32.mrb[55].mxu0 }
 0xed5   : > { %v2769_v58 = vsel %vm1519_vm3, %v2764_v56, 0 }
 0xed6   : > { %4574 = vmatpush3.bf16.msra.mxu1 %v2769_v58  ;;  %v4917_v58 = vld [vmem:[#allocation13] sm:$0xff]  }
 0xed7   : > { %4587 = vmatprep.subr.bf16.mxu1 %v5460_v0  ;;  %v4964_v63 = vpop.eup %4963 }
 0xed8   : > { %v1982_v1 = vmul.f32 %v4964_v63, %v1974_v36 }
 0xed9   : > { %4576 = vmatmul.mubr.msk.bf16.vlgmr.msra.gmra.mrb[52].mxu1 %vm1263_vm2, %v2763_v59  ;;  %v4918_v59 = vld [vmem:[#allocation13 + $0x8] sm:$0xff]  }
 0xeda   : > { %4591 = vmatprep.mubr.msk.bf16.mxu1 %vm5461_vm0, %v5460_v0  ;;  %v1989_v10 = vmul.f32 %v4187_v2, %v1982_v1 }
 0xedc   : > { %v1996_v15 = vadd.f32 %v4188_v12, %v1989_v10 }
 0xfac   : > { %v2805_v6 = vpop.f32.mrb[52].mxu1 }
 0xfad   : > { %v2811_v5 = vadd.f32 %v2805_v6, %v2636_v45  ;;  %v4577_v9 = vpop.f32.mrb[53].mxu1 }
 0xfae   : > { %v2808_v11 = vpop.f32.mrb[54].mxu1 }
 0xfaf   : > { %v2812_v13 = vadd.f32 %v2811_v5, %v2002_v4  ;;  %v4578_v14 = vpop.f32.mrb[55].mxu1 }
 0xfb1   : > { %v2816_v16 = vrot.slane %v2812_v13, %v2061_v8  ;;  %v4237_v13 = vld [vmem:[#allocation15] ss:$0 sm:$0xff] }
 0xfb3   : > { %v2817_v17 = vadd.f32 %v2816_v16, %v1996_v15 }
 0xfb5   : > { %v2820_v18 = vsel %vm1168_vm1, %v2817_v17, 0.0 }
 0xfb6   : > { %2821 = vadd.xlane.f32.xlu1 %v2820_v18 }
 0xfc7   : > { %2915 = vrot.lane.b32.xlu1 %v4915_v19, %s5462_s11 }
 0xfcb   : > { %2921 = vrot.lane.b32.xlu1 %v4231_v25, %s5462_s11 }
0x1043   : > { %v2822_v21 = vpop.xlane.xlu1 %2821 }
0x1044   : > { %v2823_v22 = vmul.f32 0.03125, %v2822_v21  ;;  %v4242_v21 = vld [vmem:[#allocation15 + $0x1] ss:$0 sm:$0xff] }
0x1046   : > { %v2824_v23 = vsub.f32 %v2817_v17, %v2823_v22 }
0x1047   : > { %v2916_v8 = vpop.permute.xlu1 %2915 }
0x1048   : > { %v2825_v24 = vmul.f32 %v2824_v23, %v2824_v23  ;;  %4588 = vmatpush3.bf16.msra.mxu1 %v2916_v8 }
0x1049   : > { %4589 = vmatprep.subr.bf16.mxu1 %v5460_v0 }
0x104a   : > { %v2826_v7 = vsel %vm1168_vm1, %v2825_v24, 0.0 }
0x104b   : > { %2827 = vadd.xlane.f32.xlu0 %v2826_v7  ;;  %v2922_v37 = vpop.permute.xlu1 %2921 }
0x1061   : > { %2917 = vrot.lane.b32.xlu0 %v4916_v20, %s5462_s11  ;;  %s6386_s11 = sld [smem:[#allocation38_spill]] }
0x10d8   : > { %v2828_v26 = vpop.xlane.xlu0 %2827 }
0x10d9   : > { %v2829_v27 = vmul.f32 0.03125, %v2828_v26 }
0x10db   : > { %v2830_v28 = vadd.f32 1e-05, %v2829_v27 }
0x10dc   : > { %v2918_v29 = vpop.permute.xlu0 %2917 }
0x10dd   : > { %4965 = vrsqrt.f32 %v2830_v28  ;;  %4590 = vmatpush3.bf16.msra.mxu1 %v2918_v29 }
0x10de   : > { %4601 = vmatprep.subr.bf16.mxu1 %v5460_v0 }
0x10e0   : > { %4592 = vmatmul.mubr.msk.bf16.vlgmr.msra.gmra.mrb[56].mxu1 %vm1168_vm1, %v6064_v30 }
0x10e1   : > { %4605 = vmatprep.mubr.msk.bf16.mxu1 %vm5461_vm0, %v5460_v0  ;;  %4602 = vmatpush3.bf16.msra.mxu1 %v4917_v58 }
0x10e2   : > { %4603 = vmatprep.subr.bf16.mxu1 %v5460_v0 }
0x10e5   : > { %4604 = vmatpush3.bf16.msra.mxu1 %v4918_v59 }
0x10e6   : > { %4615 = vmatprep.subr.bf16.mxu1 %v5460_v0 }
0x10e7   : > { %v4966_v31 = vpop.eup %4965 }
0x10e8   : > { %v2832_v38 = vmul.f32 %v4966_v31, %v2824_v23  ;;  %4606 = vmatmul.mubr.msk.bf16.vlgmr.msra.gmra.mrb[60].mxu1 %vm1168_vm1, %v6064_v30 }
0x10e9   : > { %4616 = vmatpush3.bf16.msra.mxu1 %v4919_v60  ;;  %4619 = vmatprep.mubr.msk.bf16.mxu1 %vm5461_vm0, %v5460_v0 }
0x10ea   : > { %v2839_v34 = vmul.f32 %v4229_v32, %v2832_v38  ;;  %4617 = vmatprep.subr.bf16.mxu1 %v5460_v0 }
0x10ec   : > { %v6191_v36 = vadd.f32 %v4230_v33, %v2839_v34 }
0x10ed   : > { %4618 = vmatpush3.bf16.msra.mxu1 %v4920_v61 }
0x10ee   : > { %v2847_v3 = vpack.c.bf16 %v6191_v36, %v6191_v36  ;;  %4629 = vmatprep.subr.bf16.mxu1 %v5460_v0 }
0x10f0   : > { %4584 = vmatmul.mubr.msk.bf16.vlgmr.msra.gmra.mrb[56].mxu0 %vm1168_vm1, %v2847_v3  ;;  %4620 = vmatmul.mubr.msk.bf16.vlgmr.msra.gmra.mrb[64].mxu1 %vm1168_vm1, %v6064_v30 }
0x10f1   : > { %4597 = vmatprep.mubr.msk.bf16.mxu0 %vm5461_vm0, %v5460_v0  ;;  %4631 = vmatprep.mubr.msk.bf16.mxu1 %vm5461_vm0, %v5460_v0 }
0x11b3   : > { %v2958_v39 = vpop.f32.mrb[56].mxu1 }
0x11b4   : > { %v4593_v40 = vpop.f32.mrb[57].mxu1  ;;  %v2959_v41 = vadd.f32 %v2958_v39, %v2922_v37 }
0x11b5   : > { %v2961_v42 = vpop.f32.mrb[58].mxu1 }
0x11b6   : > { %v6198_v35 = vpack.c.bf16 %v2959_v41, %v2959_v41  ;;  %v4594_v43 = vpop.f32.mrb[59].mxu1 }
0x11b7   : > { %v4921_v43 = vld [vmem:[#allocation13 + $0x20] sm:$0xff]  }
0x11b8   : > { %3092 = vrot.lane.b32.xlu1 %v6198_v35, %s5463_s26  ;;  %v2970_v44 = vsel %vm1263_vm2, %v6198_v35, 0 }
0x11b9   : > { %4596 = vmatpush3.bf16.xpose.msra.mxu0 %v2970_v44 }
0x11ba   : > { %4609 = vmatprep.subr.bf16.mxu0 %v5460_v0 }
0x11bb   : > { %v3080_v14 = vpop.f32.mrb[60].mxu1 }
0x11bc   : > { %v3081_v15 = vadd.f32 %v4237_v13, %v3080_v14  ;;  %v4607_v16 = vpop.f32.mrb[61].mxu1 }
0x11bd   : > { %v3083_v17 = vpop.f32.mrb[62].mxu1 }
0x11be   : > { %v3087_v18 = vpack.c.bf16 %v3081_v15, %v3081_v15  ;;  %v4608_v19 = vpop.f32.mrb[63].mxu1 }
0x11c0   : > { %v3268_v20 = vsel %vm1519_vm3, %v3087_v18, 0 }
0x11c1   : > { %4630 = vmatpush3.bf16.msra.mxu1 %v3268_v20 }
0x11c2   : > { %4641 = vmatprep.subr.bf16.mxu1 %v5460_v0 }
0x11c3   : > { %v2909_v45 = vpop.f32.mrb[56].mxu0  ;;  %v3210_v22 = vpop.f32.mrb[64].mxu1 }
0x11c4   : > { %v2910_v46 = vadd.f32 %v4231_v25, %v2909_v45  ;;  %v4585_v47 = vpop.f32.mrb[57].mxu0  ;;  %v3211_v23 = vadd.f32 %v4242_v21, %v3210_v22  ;;  %v4621_v24 = vpop.f32.mrb[65].mxu1  ;;  %v4922_v45 = vld [vmem:[#allocation13 + $0x28] sm:$0xff]  }
0x11c5   : > { %v2912_v48 = vpop.f32.mrb[58].mxu0  ;;  %v3213_v7 = vpop.f32.mrb[66].mxu1 }
0x11c6   : > { %v2964_v49 = vpack.c.bf16 %v2910_v46, %v2910_v46  ;;  %v4586_v50 = vpop.f32.mrb[59].mxu0  ;;  %v3217_v8 = vpack.c.bf16 %v3211_v23, %v3211_v23  ;;  %v4622_v25 = vpop.f32.mrb[67].mxu1 }
0x11c7   : > { %v4923_v25 = vld [vmem:[#allocation13 + $0x30] sm:$0xff]  }
0x11c8   : > { %3089 = vrot.lane.b32.xlu0 %v2964_v49, %s5463_s26  ;;  %4598 = vmatmul.mubr.msk.bf16.vlgmr.msra.gmra.mrb[60].mxu0 %vm1263_vm2, %v2964_v49  ;;  %v3222_v26 = vsel %vm1519_vm3, %v3217_v8, 0  ;;  %s6387_s26 = sld [smem:[#allocation39_spill]] }
0x11c9   : > { %4611 = vmatprep.mubr.msk.bf16.mxu0 %vm5461_vm0, %v5460_v0 }
0x122a   : > { %v3093_v51 = vpop.permute.xlu1 %3092 }
0x122b   : > { %v3098_v52 = vsel %vm1263_vm2, %v3093_v51, 0 }
0x122c   : > { %4610 = vmatpush3.bf16.xpose.msra.mxu0 %v3098_v52 }
0x122d   : > { %4623 = vmatprep.subr.bf16.mxu0 %v5460_v0 }
0x123a   : > { %v3090_v53 = vpop.permute.xlu0 %3089 }
0x123b   : > { %4612 = vmatmul.mubr.msk.bf16.vlgmr.msra.gmra.mrb[64].mxu0 %vm1263_vm2, %v3090_v53 }
0x123c   : > { %4625 = vmatprep.mubr.msk.bf16.mxu0 %vm5461_vm0, %v5460_v0  ;;  %4624 = vmatpush3.bf16.msra.mxu0 %v3222_v26 }
0x123d   : > { %4635 = vmatprep.subr.bf16.mxu0 %v5460_v0 }
0x129b   : > { %v3006_v54 = vpop.f32.mrb[60].mxu0 }
0x129c   : > { %v4599_v55 = vpop.f32.mrb[61].mxu0  ;;  %v3012_v6 = vsel %vm1263_vm2, %v3006_v54, -inf }
0x129d   : > { %v3009_v56 = vpop.f32.mrb[62].mxu0 }
0x129e   : > { %v4600_v57 = vpop.f32.mrb[63].mxu0 }
0x130e   : > { %v3134_v62 = vpop.f32.mrb[64].mxu0 }
0x130f   : > { %v4613_v63 = vpop.f32.mrb[65].mxu0  ;;  %v3140_v1 = vsel %vm1263_vm2, %v3134_v62, -inf }
0x1310   : > { %3141 = vmax.xlane.f32.xlu1 %v3140_v1  ;;  %v3137_v2 = vpop.f32.mrb[66].mxu0  ;;  %v4249_v63 = vld [vmem:[#allocation15 + $0x2] ss:$0 sm:$0xff] }
0x1311   : > { %v4614_v4 = vpop.f32.mrb[67].mxu0 }
0x1321   : > { %3310 = vrot.lane.b32.xlu1 %v2964_v49, %s5464_s10 }
0x1345   : > { %3013 = vmax.xlane.f32.xlu1 %v3012_v6 }
0x1356   : > { %3485 = vrot.lane.b32.xlu1 %v2964_v49, %s5465_s15 }
0x139d   : > { %v3142_v5 = vpop.xlane.xlu1 %3141 }
0x139e   : > { %v3143_v9 = vsub.f32 %v3134_v62, %v3142_v5 }
0x13a0   : > { %v3144_v10 = vmul.f32 1.442695, %v3143_v9 }
0x13a1   : > { %v3311_v27 = vpop.permute.xlu1 %3310 }
0x13a2   : > { %4967 = vpow2.f32 %v3144_v10 }
0x13ac   : > { %v4968_v11 = vpop.eup %4967 }
0x13ad   : > { %v3146_v12 = vsel %vm1263_vm2, %v4968_v11, 0.0 }
0x13ae   : > { %3147 = vadd.xlane.f32.xlu0 %v3146_v12 }
0x13c4   : > { %3312 = vrot.lane.b32.xlu0 %v6198_v35, %s5464_s10  ;;  %s6388_s10 = sld [smem:[#allocation43_spill]] }
0x13d2   : > { %v3014_v28 = vpop.xlane.xlu1 %3013 }
0x13d3   : > { %v3015_v29 = vsub.f32 %v3006_v54, %v3014_v28 }
0x13d5   : > { %v3016_v31 = vmul.f32 1.442695, %v3015_v29 }
0x13d6   : > { %v3486_v48 = vpop.permute.xlu1 %3485 }
0x13d7   : > { %4969 = vpow2.f32 %v3016_v31 }
0x13e1   : > { %v4970_v32 = vpop.eup %4969 }
0x13e2   : > { %v3018_v38 = vsel %vm1263_vm2, %v4970_v32, 0.0 }
0x13e3   : > { %3019 = vadd.xlane.f32.xlu0 %v3018_v38 }
0x13f9   : > { %3487 = vrot.lane.b32.xlu0 %v6198_v35, %s5465_s15  ;;  %s6389_s15 = sld [smem:[#allocation44_spill]] }
0x143b   : > { %v3148_v33 = vpop.xlane.xlu0 %3147 }
0x143c   : > { %4971 = vrcp.f32 %v3148_v33 }
0x143f   : > { %v3313_v37 = vpop.permute.xlu0 %3312 }
0x1440   : > { %v3318_v40 = vsel %vm1263_vm2, %v3313_v37, 0  ;;  %v4255_v37 = vld [vmem:[#allocation15 + $0x3] ss:$0 sm:$0xff] }
0x1446   : > { %v4972_v34 = vpop.eup %4971 }
0x1447   : > { %v3150_v3 = vmul.f32 %v4972_v34, %v4968_v11 }
0x1449   : > { %v3216_v39 = vpack.c.bf16 %v3150_v3, %v3150_v3 }
0x144b   : > { %4626 = vmatmul.mubr.msk.bf16.vlgmr.msra.gmra.mrb[68].mxu0 %vm1263_vm2, %v3216_v39 }
0x144c   : > { %4636 = vmatpush3.bf16.xpose.msra.mxu0 %v3318_v40  ;;  %4637 = vmatprep.mubr.msk.bf16.mxu0 %vm5461_vm0, %v5460_v0 }
0x144d   : > { %4649 = vmatprep.subr.bf16.mxu0 %v5460_v0 }
0x1453   : > { %4638 = vmatmul.mubr.msk.bf16.vlgmr.msra.gmra.mrb[72].mxu0 %vm1263_vm2, %v3311_v27  ;;  %v4924_v27 = vld [vmem:[#allocation13 + $0x38] sm:$0xff]  }
0x1454   : > { %4651 = vmatprep.mubr.msk.bf16.mxu0 %vm5461_vm0, %v5460_v0 }
0x1470   : > { %v3020_v41 = vpop.xlane.xlu0 %3019 }
0x1471   : > { %4973 = vrcp.f32 %v3020_v41 }
0x1474   : > { %v3488_v46 = vpop.permute.xlu0 %3487 }
0x1475   : > { %v3493_v47 = vsel %vm1263_vm2, %v3488_v46, 0 }
0x147b   : > { %v4974_v42 = vpop.eup %4973 }
0x147c   : > { %v3022_v35 = vmul.f32 %v4974_v42, %v4970_v32 }
0x147e   : > { %v3086_v44 = vpack.c.bf16 %v3022_v35, %v3022_v35 }
0x1480   : > { %4632 = vmatmul.mubr.msk.bf16.vlgmr.msra.gmra.mrb[68].mxu1 %vm1263_vm2, %v3086_v44 }
0x1481   : > { %4642 = vmatpush3.bf16.msra.mxu1 %v4921_v43  ;;  %4645 = vmatprep.mubr.msk.bf16.mxu1 %vm5461_vm0, %v5460_v0 }
0x1482   : > { %4643 = vmatprep.subr.bf16.mxu1 %v5460_v0 }
0x1485   : > { %4644 = vmatpush3.bf16.msra.mxu1 %v4922_v45 }
0x1486   : > { %4655 = vmatprep.subr.bf16.mxu1 %v5460_v0 }
0x1488   : > { %4646 = vmatmul.mubr.msk.bf16.vlgmr.msra.gmra.mrb[72].mxu1 %vm1168_vm1, %v6064_v30 }
0x1489   : > { %4657 = vmatprep.mubr.msk.bf16.mxu1 %vm5461_vm0, %v5460_v0 }
0x148e   : > { %4656 = vmatpush3.bf16.xpose.msra.mxu1 %v3493_v47  ;;  %v4260_v47 = vld [vmem:[#allocation16] ss:$0 sm:$0xff] }
0x148f   : > { %4669 = vmatprep.subr.bf16.mxu1 %v5460_v0 }
0x1495   : > { %4658 = vmatmul.mubr.msk.bf16.vlgmr.msra.gmra.mrb[76].mxu1 %vm1263_vm2, %v3486_v48 }
0x1496   : > { %4671 = vmatprep.mubr.msk.bf16.mxu1 %vm5461_vm0, %v5460_v0 }
0x151e   : > { %v3258_v49 = vpop.f32.mrb[68].mxu0 }
0x151f   : > { %v4627_v50 = vpop.f32.mrb[69].mxu0 }
0x1520   : > { %v3261_v51 = vpop.f32.mrb[70].mxu0 }
0x1521   : > { %v4628_v52 = vpop.f32.mrb[71].mxu0 }
0x1526   : > { %v3354_v53 = vpop.f32.mrb[72].mxu0 }
0x1527   : > { %v4639_v54 = vpop.f32.mrb[73].mxu0  ;;  %v3360_v55 = vsel %vm1263_vm2, %v3354_v53, -inf }
0x1528   : > { %3361 = vmax.xlane.f32.xlu1 %v3360_v55  ;;  %v3357_v56 = vpop.f32.mrb[74].mxu0 }
0x1529   : > { %v4640_v57 = vpop.f32.mrb[75].mxu0 }
0x1553   : > { %v3304_v58 = vpop.f32.mrb[68].mxu1 }
0x1554   : > { %v3305_v59 = vadd.f32 %v3304_v58, %v3258_v49  ;;  %v4633_v60 = vpop.f32.mrb[69].mxu1 }
0x1555   : > { %v3307_v61 = vpop.f32.mrb[70].mxu1 }
0x1556   : > { %v4634_v62 = vpop.f32.mrb[71].mxu1  ;;  %v4925_v61 = vld [vmem:[%s6386_s11] sm:$0xff]  }
0x1557   : > { %v4926_v62 = vld [vmem:[%s6386_s11 + $0x8] sm:$0xff]  }
0x155b   : > { %v3430_v1 = vpop.f32.mrb[72].mxu1 }
0x155c   : > { %v3431_v2 = vadd.f32 %v4249_v63, %v3430_v1  ;;  %v4647_v4 = vpop.f32.mrb[73].mxu1  ;;  %v4928_v63 = vld [vmem:[%s6387_s26 + $0x8] sm:$0xff]  }
0x155d   : > { %v3433_v6 = vpop.f32.mrb[74].mxu1 }
0x155e   : > { %v3437_v5 = vpack.c.bf16 %v3431_v2, %v3431_v2  ;;  %v4648_v9 = vpop.f32.mrb[75].mxu1 }
0x1560   : > { %v3442_v10 = vsel %vm1519_vm3, %v3437_v5, 0  ;;  %v4261_v5 = vld [vmem:[%s6388_s10] ss:$0 sm:$0xff] }
0x1561   : > { %4650 = vmatpush3.bf16.msra.mxu0 %v3442_v10  ;;  %v4262_v10 = vld [vmem:[%s5609_s17] ss:$0 sm:$0xff] }
0x1562   : > { %4661 = vmatprep.subr.bf16.mxu0 %v5460_v0 }
0x1568   : > { %v3529_v11 = vpop.f32.mrb[76].mxu1 }
0x1569   : > { %v4659_v12 = vpop.f32.mrb[77].mxu1  ;;  %v3535_v20 = vsel %vm1263_vm2, %v3529_v11, -inf }
0x156a   : > { %v3532_v13 = vpop.f32.mrb[78].mxu1 }
0x156b   : > { %v4660_v14 = vpop.f32.mrb[79].mxu1 }
0x156c   : > { %v4929_v14 = vld [vmem:[%s6387_s26 + $0x10] sm:$0xff]  }
0x15b5   : > { %v3362_v15 = vpop.xlane.xlu1 %3361 }
0x15b6   : > { %v3363_v16 = vsub.f32 %v3354_v53, %v3362_v15  ;;  %v4930_v15 = vld [vmem:[%s6387_s26 + $0x18] sm:$0xff]  }
0x15b8   : > { %v3364_v17 = vmul.f32 1.442695, %v3363_v16  ;;  %v4263_v16 = vld [vmem:[#allocation18] ss:$0 sm:$0xff] }
0x15ba   : > { %4975 = vpow2.f32 %v3364_v17 }
0x15c4   : > { %v4976_v18 = vpop.eup %4975 }
0x15c5   : > { %v3366_v19 = vsel %vm1263_vm2, %v4976_v18, 0.0 }
0x15c6   : > { %3367 = vadd.xlane.f32.xlu0 %v3366_v19 }
0x15ca   : > { %3536 = vmax.xlane.f32.xlu0 %v3535_v20 }
0x1653   : > { %v3368_v21 = vpop.xlane.xlu0 %3367 }
0x1654   : > { %4977 = vrcp.f32 %v3368_v21 }
0x1657   : > { %v3537_v22 = vpop.xlane.xlu0 %3536 }
0x1658   : > { %v3538_v23 = vsub.f32 %v3529_v11, %v3537_v22 }
0x165a   : > { %v3539_v24 = vmul.f32 1.442695, %v3538_v23 }
0x165c   : > { %4979 = vpow2.f32 %v3539_v24  ;;  %v4267_v24 = vld [vmem:[#allocation19] ss:$0 sm:$0xff] }
0x165e   : > { %v4978_v7 = vpop.eup %4977 }
0x165f   : > { %v3370_v8 = vmul.f32 %v4978_v7, %v4976_v18 }
0x1661   : > { %v3436_v26 = vpack.c.bf16 %v3370_v8, %v3370_v8 }
0x1663   : > { %4652 = vmatmul.mubr.msk.bf16.vlgmr.msra.gmra.mrb[76].mxu0 %vm1263_vm2, %v3436_v26 }
0x1664   : > { %4662 = vmatpush3.bf16.msra.mxu0 %v4923_v25  ;;  %4665 = vmatprep.mubr.msk.bf16.mxu0 %vm5461_vm0, %v5460_v0 }
0x1665   : > { %4663 = vmatprep.subr.bf16.mxu0 %v5460_v0 }
0x1666   : > { %v4980_v28 = vpop.eup %4979 }
0x1667   : > { %v3541_v29 = vsel %vm1263_vm2, %v4980_v28, 0.0 }
0x1668   : > { %4664 = vmatpush3.bf16.msra.mxu0 %v4924_v27  ;;  %3542 = vadd.xlane.f32.xlu1 %v3541_v29 }
0x1669   : > { %4675 = vmatprep.subr.bf16.mxu0 %v5460_v0 }
0x166b   : > { %4666 = vmatmul.mubr.msk.bf16.vlgmr.msra.gmra.mrb[80].mxu0 %vm1168_vm1, %v6064_v30 }
0x166c   : > { %4679 = vmatprep.mubr.msk.bf16.mxu0 %vm5461_vm0, %v5460_v0  ;;  %4676 = vmatpush3.bf16.msra.mxu0 %v4925_v61 }
0x166d   : > { %4677 = vmatprep.subr.bf16.mxu0 %v5460_v0 }
0x1670   : > { %4678 = vmatpush3.bf16.msra.mxu0 %v4926_v62 }
0x16f5   : > { %v3543_v31 = vpop.xlane.xlu1 %3542 }
0x16f6   : > { %4981 = vrcp.f32 %v3543_v31 }
0x1700   : > { %v4982_v39 = vpop.eup %4981 }
0x1701   : > { %v3545_v43 = vmul.f32 %v4982_v39, %v4980_v28 }
0x1703   : > { %v3611_v46 = vpack.c.bf16 %v3545_v43, %v3545_v43 }
0x1736   : > { %v3478_v32 = vpop.f32.mrb[76].mxu0 }
0x1737   : > { %v3484_v38 = vadd.f32 %v3478_v32, %v3305_v59  ;;  %v4653_v33 = vpop.f32.mrb[77].mxu0 }
0x1738   : > { %v3481_v34 = vpop.f32.mrb[78].mxu0 }
0x1739   : > { %v4654_v3 = vpop.f32.mrb[79].mxu0 }
0x173e   : > { %v3605_v40 = vpop.f32.mrb[80].mxu0 }
0x173f   : > { %v3606_v41 = vadd.f32 %v4255_v37, %v3605_v40  ;;  %v4667_v42 = vpop.f32.mrb[81].mxu0  ;;  %v4273_v40 = vld [vmem:[%s5614_s9] ss:$0 sm:$0xff] }
0x1740   : > { %v3608_v35 = vpop.f32.mrb[82].mxu0  ;;  %v4274_v42 = vld [vmem:[%s6389_s15] ss:$0 sm:$0xff] }
0x1741   : > { %v3612_v44 = vpack.c.bf16 %v3606_v41, %v3606_v41  ;;  %v4668_v45 = vpop.f32.mrb[83].mxu0 }
0x1743   : > { %v3617_v30 = vsel %vm1519_vm3, %v3612_v44, 0 }
0x1744   : > { %4670 = vmatpush3.bf16.msra.mxu1 %v3617_v30 }
0x1745   : > { %4683 = vmatprep.subr.bf16.mxu1 %v5460_v0 }
0x1747   : > { %4672 = vmatmul.mubr.msk.bf16.vlgmr.msra.gmra.mrb[80].mxu1 %vm1263_vm2, %v3611_v46 }
0x1748   : > { %4691 = vmatprep.mubr.msk.bf16.mxu1 %vm5461_vm0, %v5460_v0 }
0x181a   : > { %v3653_v48 = vpop.f32.mrb[80].mxu1 }
0x181b   : > { %v3659_v49 = vadd.f32 %v3653_v48, %v3484_v38  ;;  %v4673_v50 = vpop.f32.mrb[81].mxu1 }
0x181c   : > { %v3656_v51 = vpop.f32.mrb[82].mxu1 }
0x181d   : > { %v3666_v52 = vadd.f32 %v4260_v47, %v3659_v49  ;;  %v4674_v53 = vpop.f32.mrb[83].mxu1 }
0x181f   : > { %v3667_v54 = vadd.f32 %v3666_v52, %v6191_v36  ;;  %v4927_v36 = vld [vmem:[%s6387_s26] sm:$0xff]  }
0x1820   : > { %4684 = vmatpush3.bf16.msra.mxu1 %v4927_v36 }
0x1821   : > { %v3670_v55 = vsel %vm1168_vm1, %v3667_v54, 0.0  ;;  %4685 = vmatprep.subr.bf16.mxu1 %v5460_v0 }
0x1822   : > { %3671 = vadd.xlane.f32.xlu0 %v3670_v55 }
0x1824   : > { %4686 = vmatpush3.bf16.msra.mxu1 %v4928_v63 }
0x1825   : > { %4687 = vmatprep.subr.bf16.mxu1 %v5460_v0 }
0x1828   : > { %4688 = vmatpush3.bf16.msra.mxu1 %v4929_v14 }
0x1829   : > { %4689 = vmatprep.subr.bf16.mxu1 %v5460_v0 }
0x182c   : > { %4690 = vmatpush3.bf16.msra.mxu1 %v4930_v15 }
0x18af   : > { %v3672_v56 = vpop.xlane.xlu0 %3671 }
0x18b0   : > { %v3673_v57 = vmul.f32 0.03125, %v3672_v56 }
0x18b2   : > { %v3674_v58 = vsub.f32 %v3667_v54, %v3673_v57 }
0x18b4   : > { %v3675_v59 = vmul.f32 %v3674_v58, %v3674_v58 }
0x18b6   : > { %v3676_v60 = vsel %vm1168_vm1, %v3675_v59, 0.0 }
0x18b7   : > { %3677 = vadd.xlane.f32.xlu1 %v3676_v60 }
0x1944   : > { %v3678_v1 = vpop.xlane.xlu1 %3677 }
0x1945   : > { %v3679_v2 = vmul.f32 0.03125, %v3678_v1 }
0x1947   : > { %v3680_v4 = vadd.f32 1e-05, %v3679_v2 }
0x1949   : > { %4983 = vrsqrt.f32 %v3680_v4 }
0x1953   : > { %v4984_v6 = vpop.eup %4983 }
0x1954   : > { %v3682_v9 = vmul.f32 %v4984_v6, %v3674_v58 }
0x1956   : > { %v3689_v11 = vmul.f32 %v4261_v5, %v3682_v9 }
0x1958   : > { %v3696_v12 = vadd.f32 %v4262_v10, %v3689_v11 }
0x195a   : > { %v3697_v13 = vpack.c.bf16 %v3696_v12, %v3696_v12 }
0x195c   : > { %4680 = vmatmul.mubr.msk.bf16.vlgmr.msra.gmra.mrb[84].mxu0 %vm1168_vm1, %v3697_v13 }
0x1a2f   : > { %v3758_v17 = vpop.f32.mrb[84].mxu0 }
0x1a30   : > { %v3759_v18 = vadd.f32 %v4263_v16, %v3758_v17  ;;  %v4681_v19 = vpop.f32.mrb[85].mxu0 }
0x1a31   : > { %v3761_v20 = vpop.f32.mrb[86].mxu0 }
0x1a32   : > { %v3764_v21 = vmax.f32 %v3759_v18, 0.0  ;;  %v4682_v22 = vpop.f32.mrb[87].mxu0 }
0x1a34   : > { %v3765_v23 = vpack.c.bf16 %v3764_v21, %v3764_v21 }
0x1a36   : > { %4692 = vmatmul.mubr.msk.bf16.vlgmr.msra.gmra.mrb[84].mxu1 %vm3805_vm5, %v3765_v23 }
0x1b09   : > { %v3843_v7 = vpop.f32.mrb[84].mxu1 }
0x1b0a   : > { %v3844_v8 = vadd.f32 %v4267_v24, %v3843_v7  ;;  %v4693_v25 = vpop.f32.mrb[85].mxu1 }
0x1b0b   : > { %v3846_v26 = vpop.f32.mrb[86].mxu1 }
0x1b0c   : > { %v4694_v27 = vpop.f32.mrb[87].mxu1  ;;  %v3849_v0 = vadd.f32 %v3844_v8, %v3696_v12 }
0x1b0e   : > { %v3852_v28 = vsel %vm1168_vm1, %v3849_v0, 0.0 }
0x1b0f   : > { %3853 = vadd.xlane.f32.xlu0 %v3852_v28 }
0x1b9c   : > { %v3854_v29 = vpop.xlane.xlu0 %3853 }
0x1b9d   : > { %v3855_v31 = vmul.f32 0.03125, %v3854_v29 }
0x1b9f   : > { %v3856_v32 = vsub.f32 %v3849_v0, %v3855_v31 }
0x1ba1   : > { %v3857_v38 = vmul.f32 %v3856_v32, %v3856_v32 }
0x1ba3   : > { %v3858_v33 = vsel %vm1168_vm1, %v3857_v38, 0.0 }
0x1ba4   : > { %3859 = vadd.xlane.f32.xlu1 %v3858_v33 }
0x1c31   : > { %v3860_v34 = vpop.xlane.xlu1 %3859 }
0x1c32   : > { %v3861_v3 = vmul.f32 0.03125, %v3860_v34 }
0x1c34   : > { %v3862_v37 = vadd.f32 1e-05, %v3861_v3 }
0x1c36   : > { %4985 = vrsqrt.f32 %v3862_v37 }
0x1c40   : > { %v4986_v39 = vpop.eup %4985 }
0x1c41   : > { %v3864_v41 = vmul.f32 %v4986_v39, %v3856_v32 }
0x1c43   : > { %v3871_v35 = vmul.f32 %v4273_v40, %v3864_v41 }
0x1c45   : > { %v3878_v43 = vadd.f32 %v4274_v42, %v3871_v35 }
0x1c47   : > { %3879 = vst.msk [vmem:[%s1136_s21] sm:$0xff] %vm1168_vm1, %v3878_v43 }
0x1c48 PF: > { %p77_p13 = scmp.ge.s32.totalorder %s5823_s3, 4   ;;  %s6391_s15 = smov %s5403_s16 }
0x1c49   : > { %s6392_s16 = smov %s5407_s18  ;;  %s6393_s18 = smov %s5835_s23 }
0x1c4a   : > { %s6394_s22 = smov %s5823_s3  ;;  %79 = sbr.rel (!%p77_p13) target bundleno = 65 (0x41), region = 282 }
0x1c51   :  { %3899 = vsyncpa [#allocation3], 1 }
0x1c52   :  { %3901 = vsyncpa [#allocation3 + $0x1], 1 }
0x1c53   :  { %3902 = vsyncpa [#allocation5], 1 }
0x1c54   :  { %3903 = vsyncpa [#allocation8], 1 }
0x1c55   :  { %3904 = vsyncpa [#allocation11], 1 }
0x1c56   :  { %3905 = vsyncpa [#allocation14], 1 }
0x1c57   :  { %3906 = vsyncpa [#allocation17], 1 }
0x1c58   :  { %3907 = vsyncpa [#allocation20], 1 }

</bundles_post_ra>
